<compile_context>
chip_gen: v6e
topology: v6e:2x2x1
jax: 0.10.0
libtpu: 0.0.40
codegen_flags: <defaults>
</compile_context>

<pallas_src>
import functools

import jax
import jax.numpy as jnp
from jax import lax
from jax.experimental import pallas as pl
from jax.experimental.pallas import tpu as pltpu

HIDDEN = 512
LANE = 128


def _round_up(x, m):
    return ((x + m - 1) // m) * m


def _full_spec(shape):
    return pl.BlockSpec(shape, lambda: tuple(0 for _ in shape))


# ----------------------------------------------------------------------------
# Fused Pallas kernel: all GCNConv+ReLU layers + final Linear in one call.
# ----------------------------------------------------------------------------
def fused_gcn_kernel(a_ref, x_ref, w1_ref, b1_ref, wh_ref, bh_ref,
                     wf_ref, bf_ref, o_ref, h_ref):
    a = a_ref[...]                                           # (Np, Np) bf16

    # --- layer 1: (A_hat @ X) @ W1   (F_in < F_out => A-matmul first) ---
    ax = jnp.dot(a, x_ref[...], preferred_element_type=jnp.float32)
    h = jnp.dot(ax.astype(jnp.bfloat16), w1_ref[...],
                preferred_element_type=jnp.float32)
    h_ref[...] = jnp.maximum(h + b1_ref[...], 0.0).astype(jnp.bfloat16)

    # --- hidden layers (512 -> 512): A_hat @ (H @ W) + b, ReLU ---
    num_hidden = wh_ref.shape[0]                             # static
    if num_hidden > 0:
        def body(i, carry):
            hw = jnp.dot(h_ref[...], wh_ref[i],
                         preferred_element_type=jnp.float32)
            hh = jnp.dot(a, hw.astype(jnp.bfloat16),
                         preferred_element_type=jnp.float32)
            h_ref[...] = jnp.maximum(hh + bh_ref[i], 0.0).astype(jnp.bfloat16)
            return carry
        lax.fori_loop(0, num_hidden, body, 0, unroll=True)

    # --- final fc: H @ Wfc^T + b (output kept f32, lane-dense padded width) ---
    out = jnp.dot(h_ref[...], wf_ref[...], preferred_element_type=jnp.float32)
    o_ref[...] = out + bf_ref[...]


@functools.partial(jax.jit, static_argnames=("num_nodes", "input_dim"))
def fused_gcn_forward(a_hat_p, x_p, w1_p, b1, wh, bh, wf_p, bf_p,
                      *, num_nodes, input_dim):
    np_, fin_p = x_p.shape
    fout_p = wf_p.shape[1]
    num_hidden = wh.shape[0]
    out_p = pl.pallas_call(
        fused_gcn_kernel,
        out_shape=jax.ShapeDtypeStruct((np_, fout_p), jnp.float32),
        in_specs=[
            _full_spec((np_, np_)),                 # A_hat (padded, bf16)
            _full_spec((np_, fin_p)),               # X     (padded, bf16)
            _full_spec((fin_p, HIDDEN)),            # W1    (padded, bf16)
            _full_spec((1, HIDDEN)),                # b1    (f32)
            _full_spec((num_hidden, HIDDEN, HIDDEN)),  # stacked hidden W (bf16)
            _full_spec((num_hidden, 1, HIDDEN)),       # stacked hidden b (f32)
            _full_spec((HIDDEN, fout_p)),           # fc W^T (padded, bf16)
            _full_spec((1, fout_p)),                # fc b   (padded, f32)
        ],
        out_specs=_full_spec((np_, fout_p)),
        scratch_shapes=[pltpu.VMEM((np_, HIDDEN), jnp.bfloat16)],  # resident H
    )(a_hat_p, x_p, w1_p, b1, wh, bh, wf_p, bf_p)
    return out_p[:num_nodes, :input_dim]


# ----------------------------------------------------------------------------
# Model params / graph preprocessing (plain JAX glue, done once).
# ----------------------------------------------------------------------------
def init_gcn_params(key, input_dim, num_layers):
    """GCNConv(in,out): weight (in,out), bias zeros. fc = Linear(512, input_dim)."""
    dims = [input_dim] + [HIDDEN] * num_layers
    conv_params = []
    for i in range(num_layers):
        key, kw = jax.random.split(key)
        fan_in, fan_out = dims[i], dims[i + 1]
        scale = jnp.sqrt(6.0 / (fan_in + fan_out))
        w = jax.random.uniform(kw, (fan_in, fan_out), jnp.float32, -scale, scale)
        b = jnp.zeros((fan_out,), jnp.float32)
        conv_params.append((w, b))
    key, kw, kb = jax.random.split(key, 3)
    bound = 1.0 / jnp.sqrt(HIDDEN)
    fc_w = jax.random.uniform(kw, (input_dim, HIDDEN), jnp.float32, -bound, bound)
    fc_b = jax.random.uniform(kb, (input_dim,), jnp.float32, -bound, bound)
    return conv_params, (fc_w, fc_b)


def build_a_hat(edge_index, num_nodes):
    """Dense normalized adjacency D^{-1/2}(A + I)D^{-1/2} from edge_index."""
    src, dst = edge_index[0], edge_index[1]
    a = jnp.zeros((num_nodes, num_nodes), jnp.float32)
    a = a.at[dst, src].set(1.0)
    a = a + jnp.eye(num_nodes, dtype=jnp.float32)
    deg = a.sum(axis=1)
    d_inv_sqrt = jnp.where(deg > 0, 1.0 / jnp.sqrt(deg), 0.0)
    return d_inv_sqrt[:, None] * a * d_inv_sqrt[None, :]


def prepare_inputs(x, edge_index, conv_params, fc_params):
    """Pad to lane-dense multiples of 128, cast MXU operands to bf16, stack weights."""
    n, f_in = x.shape
    np_ = _round_up(n, LANE)
    fin_p = _round_up(f_in, LANE)

    a_hat = build_a_hat(edge_index, n)
    a_hat_p = (jnp.zeros((np_, np_), jnp.float32)
               .at[:n, :n].set(a_hat).astype(jnp.bfloat16))
    x_p = (jnp.zeros((np_, fin_p), jnp.float32)
           .at[:n, :f_in].set(x).astype(jnp.bfloat16))

    (w1, b1), rest = conv_params[0], conv_params[1:]
    assert len(rest) >= 1, "expect num_layers >= 2"
    w1_p = (jnp.zeros((fin_p, HIDDEN), jnp.float32)
            .at[:f_in, :].set(w1).astype(jnp.bfloat16))
    b1_2d = b1.reshape(1, HIDDEN)
    wh = jnp.stack([w for w, _ in rest]).astype(jnp.bfloat16)
    bh = jnp.stack([b for _, b in rest]).reshape(len(rest), 1, HIDDEN)

    fc_w, fc_b = fc_params
    f_out = fc_w.shape[0]
    fout_p = _round_up(f_out, LANE)
    wf_p = (jnp.zeros((HIDDEN, fout_p), jnp.float32)
            .at[:, :f_out].set(fc_w.T).astype(jnp.bfloat16))
    bf_p = jnp.zeros((1, fout_p), jnp.float32).at[:, :f_out].set(fc_b.reshape(1, f_out))
    return a_hat_p, x_p, w1_p, b1_2d, wh, bh, wf_p, bf_p


# ----------------------------------------------------------------------------
if __name__ == "__main__":
    NUM_NODES = 64
    INPUT_DIM = 32
    NUM_LAYERS = 3

    key = jax.random.PRNGKey(0)
    key, kx = jax.random.split(key)
    x = jax.random.normal(kx, (NUM_NODES, INPUT_DIM), jnp.float32)

    # Deterministic undirected ring graph (both directions per edge).
    src = jnp.arange(NUM_NODES, dtype=jnp.int32)
    dst = (src + 1) % NUM_NODES
    edge_index = jnp.stack(
        [jnp.concatenate([src, dst]), jnp.concatenate([dst, src])], axis=0
    )  # (2, 2*NUM_NODES)

    conv_params, fc_params = init_gcn_params(key, INPUT_DIM, NUM_LAYERS)

    # Static graph: A_hat construction + padding/casting done once, outside hot path.
    inputs = prepare_inputs(x, edge_index, conv_params, fc_params)
    out = fused_gcn_forward(*inputs, num_nodes=NUM_NODES, input_dim=INPUT_DIM)
    jax.block_until_ready(out)

    assert out.shape == (NUM_NODES, INPUT_DIM), out.shape
    assert out.dtype == jnp.float32
    print("KERNEL_OK")
</pallas_src>

<mosaic_0001>
module attributes {stable_mosaic.version = 11 : i64} {
  func.func @fused_gcn_kernel(%arg0: memref<128x128xbf16, #tpu.memory_space<vmem>>, %arg1: memref<128x128xbf16, #tpu.memory_space<vmem>>, %arg2: memref<128x512xbf16, #tpu.memory_space<vmem>>, %arg3: memref<1x512xf32, #tpu.memory_space<vmem>>, %arg4: memref<2x512x512xbf16, #tpu.memory_space<vmem>>, %arg5: memref<2x1x512xf32, #tpu.memory_space<vmem>>, %arg6: memref<512x128xbf16, #tpu.memory_space<vmem>>, %arg7: memref<1x128xf32, #tpu.memory_space<vmem>>, %arg8: memref<128x128xf32, #tpu.memory_space<vmem>>, %arg9: memref<128x512xbf16, #tpu.memory_space<vmem>>) attributes {dimension_semantics = [], scalar_prefetch = 0 : i64, scratch_operands = 1 : i64, tpu.core_type = #tpu.core_type<tc>} {
    %c0 = arith.constant 0 : index
    %c0_0 = arith.constant 0 : index
    %0 = vector.load %arg0[%c0, %c0_0] : memref<128x128xbf16, #tpu.memory_space<vmem>>, vector<128x128xbf16>
    %c0_1 = arith.constant 0 : index
    %c0_2 = arith.constant 0 : index
    %1 = vector.load %arg1[%c0_1, %c0_2] : memref<128x128xbf16, #tpu.memory_space<vmem>>, vector<128x128xbf16>
    %cst = arith.constant dense<0.000000e+00> : vector<128x128xf32>
    %2 = tpu.matmul %0, %1, %cst {dimension_numbers = #tpu.dot_dimension_numbers<[1], [0], [0], [1], [0, 0, 1, 1], [], []>} : vector<128x128xbf16>, vector<128x128xbf16>, vector<128x128xf32> -> vector<128x128xf32>
    %3 = arith.truncf %2 : vector<128x128xf32> to vector<128x128xbf16>
    %c0_3 = arith.constant 0 : index
    %c0_4 = arith.constant 0 : index
    %4 = vector.load %arg2[%c0_3, %c0_4] : memref<128x512xbf16, #tpu.memory_space<vmem>>, vector<128x512xbf16>
    %cst_5 = arith.constant dense<0.000000e+00> : vector<128x512xf32>
    %5 = tpu.matmul %3, %4, %cst_5 {dimension_numbers = #tpu.dot_dimension_numbers<[1], [0], [0], [1], [0, 0, 1, 1], [], []>} : vector<128x128xbf16>, vector<128x512xbf16>, vector<128x512xf32> -> vector<128x512xf32>
    %c0_6 = arith.constant 0 : index
    %c0_7 = arith.constant 0 : index
    %6 = vector.load %arg3[%c0_6, %c0_7] : memref<1x512xf32, #tpu.memory_space<vmem>>, vector<1x512xf32>
    %7 = vector.broadcast %6 : vector<1x512xf32> to vector<128x512xf32>
    %8 = arith.addf %5, %7 : vector<128x512xf32>
    %cst_8 = arith.constant 0.000000e+00 : f32
    %9 = vector.broadcast %cst_8 : f32 to vector<128x512xf32>
    %10 = arith.maximumf %8, %9 : vector<128x512xf32>
    %11 = arith.truncf %10 : vector<128x512xf32> to vector<128x512xbf16>
    %c0_9 = arith.constant 0 : index
    %c0_10 = arith.constant 0 : index
    %12 = vector.load %arg9[%c0_9, %c0_10] : memref<128x512xbf16, #tpu.memory_space<vmem>>, vector<128x512xbf16>
    tpu.vector_store %arg9[%c0_9, %c0_10], %11 {strides = array<i32>} : memref<128x512xbf16, #tpu.memory_space<vmem>>, vector<128x512xbf16>,
    %c0_i32 = arith.constant 0 : i32
    %c0_11 = arith.constant 0 : index
    %c0_12 = arith.constant 0 : index
    %13 = vector.load %arg9[%c0_11, %c0_12] : memref<128x512xbf16, #tpu.memory_space<vmem>>, vector<128x512xbf16>
    %14 = arith.index_cast %c0_i32 : i32 to index
    %c0_13 = arith.constant 0 : index
    %c0_14 = arith.constant 0 : index
    %15 = vector.load %arg4[%14, %c0_13, %c0_14] : memref<2x512x512xbf16, #tpu.memory_space<vmem>>, vector<1x512x512xbf16>
    %16 = vector.shape_cast %15 : vector<1x512x512xbf16> to vector<512x512xbf16>
    %cst_15 = arith.constant dense<0.000000e+00> : vector<128x512xf32>
    %17 = tpu.matmul %13, %16, %cst_15 {dimension_numbers = #tpu.dot_dimension_numbers<[1], [0], [0], [1], [0, 0, 1, 1], [], []>} : vector<128x512xbf16>, vector<512x512xbf16>, vector<128x512xf32> -> vector<128x512xf32>
    %18 = arith.truncf %17 : vector<128x512xf32> to vector<128x512xbf16>
    %cst_16 = arith.constant dense<0.000000e+00> : vector<128x512xf32>
    %19 = tpu.matmul %0, %18, %cst_16 {dimension_numbers = #tpu.dot_dimension_numbers<[1], [0], [0], [1], [0, 0, 1, 1], [], []>} : vector<128x128xbf16>, vector<128x512xbf16>, vector<128x512xf32> -> vector<128x512xf32>
    %20 = arith.index_cast %c0_i32 : i32 to index
    %c0_17 = arith.constant 0 : index
    %c0_18 = arith.constant 0 : index
    %21 = vector.load %arg5[%20, %c0_17, %c0_18] : memref<2x1x512xf32, #tpu.memory_space<vmem>>, vector<1x1x512xf32>
    %22 = vector.shape_cast %21 : vector<1x1x512xf32> to vector<1x512xf32>
    %23 = vector.broadcast %22 : vector<1x512xf32> to vector<128x512xf32>
    %24 = arith.addf %19, %23 : vector<128x512xf32>
    %cst_19 = arith.constant 0.000000e+00 : f32
    %25 = vector.broadcast %cst_19 : f32 to vector<128x512xf32>
    %26 = arith.maximumf %24, %25 : vector<128x512xf32>
    %27 = arith.truncf %26 : vector<128x512xf32> to vector<128x512xbf16>
    %c0_20 = arith.constant 0 : index
    %c0_21 = arith.constant 0 : index
    %28 = vector.load %arg9[%c0_20, %c0_21] : memref<128x512xbf16, #tpu.memory_space<vmem>>, vector<128x512xbf16>
    tpu.vector_store %arg9[%c0_20, %c0_21], %27 {strides = array<i32>} : memref<128x512xbf16, #tpu.memory_space<vmem>>, vector<128x512xbf16>,
    %c1_i32 = arith.constant 1 : i32
    %c0_22 = arith.constant 0 : index
    %c0_23 = arith.constant 0 : index
    %29 = vector.load %arg9[%c0_22, %c0_23] : memref<128x512xbf16, #tpu.memory_space<vmem>>, vector<128x512xbf16>
    %30 = arith.index_cast %c1_i32 : i32 to index
    %c0_24 = arith.constant 0 : index
    %c0_25 = arith.constant 0 : index
    %31 = vector.load %arg4[%30, %c0_24, %c0_25] : memref<2x512x512xbf16, #tpu.memory_space<vmem>>, vector<1x512x512xbf16>
    %32 = vector.shape_cast %31 : vector<1x512x512xbf16> to vector<512x512xbf16>
    %cst_26 = arith.constant dense<0.000000e+00> : vector<128x512xf32>
    %33 = tpu.matmul %29, %32, %cst_26 {dimension_numbers = #tpu.dot_dimension_numbers<[1], [0], [0], [1], [0, 0, 1, 1], [], []>} : vector<128x512xbf16>, vector<512x512xbf16>, vector<128x512xf32> -> vector<128x512xf32>
    %34 = arith.truncf %33 : vector<128x512xf32> to vector<128x512xbf16>
    %cst_27 = arith.constant dense<0.000000e+00> : vector<128x512xf32>
    %35 = tpu.matmul %0, %34, %cst_27 {dimension_numbers = #tpu.dot_dimension_numbers<[1], [0], [0], [1], [0, 0, 1, 1], [], []>} : vector<128x128xbf16>, vector<128x512xbf16>, vector<128x512xf32> -> vector<128x512xf32>
    %36 = arith.index_cast %c1_i32 : i32 to index
    %c0_28 = arith.constant 0 : index
    %c0_29 = arith.constant 0 : index
    %37 = vector.load %arg5[%36, %c0_28, %c0_29] : memref<2x1x512xf32, #tpu.memory_space<vmem>>, vector<1x1x512xf32>
    %38 = vector.shape_cast %37 : vector<1x1x512xf32> to vector<1x512xf32>
    %39 = vector.broadcast %38 : vector<1x512xf32> to vector<128x512xf32>
    %40 = arith.addf %35, %39 : vector<128x512xf32>
    %cst_30 = arith.constant 0.000000e+00 : f32
    %41 = vector.broadcast %cst_30 : f32 to vector<128x512xf32>
    %42 = arith.maximumf %40, %41 : vector<128x512xf32>
    %43 = arith.truncf %42 : vector<128x512xf32> to vector<128x512xbf16>
    %c0_31 = arith.constant 0 : index
    %c0_32 = arith.constant 0 : index
    %44 = vector.load %arg9[%c0_31, %c0_32] : memref<128x512xbf16, #tpu.memory_space<vmem>>, vector<128x512xbf16>
    tpu.vector_store %arg9[%c0_31, %c0_32], %43 {strides = array<i32>} : memref<128x512xbf16, #tpu.memory_space<vmem>>, vector<128x512xbf16>,
    %c2_i32 = arith.constant 2 : i32
    %c0_33 = arith.constant 0 : index
    %c0_34 = arith.constant 0 : index
    %45 = vector.load %arg9[%c0_33, %c0_34] : memref<128x512xbf16, #tpu.memory_space<vmem>>, vector<128x512xbf16>
    %c0_35 = arith.constant 0 : index
    %c0_36 = arith.constant 0 : index
    %46 = vector.load %arg6[%c0_35, %c0_36] : memref<512x128xbf16, #tpu.memory_space<vmem>>, vector<512x128xbf16>
    %cst_37 = arith.constant dense<0.000000e+00> : vector<128x128xf32>
    %47 = tpu.matmul %45, %46, %cst_37 {dimension_numbers = #tpu.dot_dimension_numbers<[1], [0], [0], [1], [0, 0, 1, 1], [], []>} : vector<128x512xbf16>, vector<512x128xbf16>, vector<128x128xf32> -> vector<128x128xf32>
    %c0_38 = arith.constant 0 : index
    %c0_39 = arith.constant 0 : index
    %48 = vector.load %arg7[%c0_38, %c0_39] : memref<1x128xf32, #tpu.memory_space<vmem>>, vector<1x128xf32>
    %49 = vector.broadcast %48 : vector<1x128xf32> to vector<128x128xf32>
    %50 = arith.addf %47, %49 : vector<128x128xf32>
    %c0_40 = arith.constant 0 : index
    %c0_41 = arith.constant 0 : index
    %51 = vector.load %arg8[%c0_40, %c0_41] : memref<128x128xf32, #tpu.memory_space<vmem>>, vector<128x128xf32>
    tpu.vector_store %arg8[%c0_40, %c0_41], %50 {strides = array<i32>} : memref<128x128xf32, #tpu.memory_space<vmem>>, vector<128x128xf32>,
    return
  }
}

</mosaic_0001>

<bundles_post_ra>
// kernel: fused_gcn_forward.1
= control target key start
LH: loop header
LB: loop body
LE: loop exit
PB: predicated region body
PF: predicated region fallthrough
CT: control target
= control target key end

     0   :  { %13 = vsyncpa [#allocation4], 0  ;;  %s8562_s0 = inlined_call_operand.hbm [shape: bf16[128,128], index: 0, kind: input, shape index: {}]   ;;  %s8563_s1 = inlined_call_operand.hbm [shape: bf16[128,128], index: 1, kind: input, shape index: {}]   ;;  %s8564_s2 = inlined_call_operand.hbm [shape: bf16[128,512], index: 2, kind: input, shape index: {}]   ;;  %s8565_s3 = inlined_call_operand.hbm [shape: f32[1,512], index: 3, kind: input, shape index: {}]   ;;  %s8566_s4 = inlined_call_operand.hbm [shape: bf16[2,512,512], index: 4, kind: input, shape index: {}]   ;;  %s8567_s5 = inlined_call_operand.vmem [shape: f32[2,1,512], index: 5, kind: input, shape index: {}]   ;;  %s8568_s6 = inlined_call_operand.hbm [shape: bf16[512,128], index: 6, kind: input, shape index: {}]   ;;  %s8569_s7 = inlined_call_operand.vmem [shape: f32[1,128], index: 7, kind: input, shape index: {}]   ;;  %s8570_s8 = inlined_call_operand.vmem [shape: f32[128,128], index: 8, kind: output, shape index: {}]  }
   0x1   :  { %14 = vsyncpa [#allocation6], 0 }
   0x2   :  { %15 = vsyncpa [#allocation9], 0 }
   0x3   :  { %16 = vsyncpa [#allocation12], 0  ;;  %s7255_s27 = smov [#allocation5]   ;;  %s7256_s29 = smov [#allocation8]  }
   0x4   :  { %s34_s28 = sshll.u32 %s7255_s27, 4  ;;  %s59_s30 = sshll.u32 %s7256_s29, 4  ;;  %s35_s28 = int_to_ptr.vmem [resolvable:$true] %s34_s28  ;;  %s60_s30 = int_to_ptr.vmem [resolvable:$true] %s59_s30 }
   0x5   :  { %s7135_s9 = scalar_lea.vmem %s35_s28, 1024  ;;  %p7140_p1 = scmp.lt.s32.totalorder %s35_s28, %s35_s28 }
   0x6   :  { %p7136_p0 = scmp.ne.s32.totalorder %s35_s28, %s7135_s9  ;;  %p7141_p2 = scmp.lt.s32.totalorder %s7135_s9, %s7135_s9 }
   0x8   :  { %p7142_p3 = por %p7141_p2, %p7140_p1 }
   0xa   :  { %p7143_p4 = pnand %p7142_p3, %p7136_p0 }
   0xc   :  { %7146 = shalt.err (!%p7143_p4)
}
   0xd   :  { %s7257_s10 = smov 64   ;;  %s7258_s11 = smov 4  }
   0xe   :  { %40 = dma.hbm_to_vmem [thread:$0]  %s8563_s1, 1024, %s35_s28, [#allocation6], %s7257_s10, %s7257_s10, %s7258_s11  }
   0xf   :  { %s7155_s14 = scalar_lea.vmem %s60_s30, 64  ;;  %p7160_p6 = scmp.lt.s32.totalorder %s60_s30, %s60_s30 }
  0x10   :  { %p7156_p5 = scmp.ne.s32.totalorder %s60_s30, %s7155_s14  ;;  %p7161_p7 = scmp.lt.s32.totalorder %s7155_s14, %s7155_s14 }
  0x12   :  { %p7162_p8 = por %p7161_p7, %p7160_p6 }
  0x14   :  { %p7163_p9 = pnand %p7162_p8, %p7156_p5 }
  0x16   :  { %7166 = shalt.err (!%p7163_p9)
}
  0x17   :  { %62 = dma.hbm_to_vmem [thread:$0]  %s8565_s3, 64, %s60_s30, [#allocation9]  }
  0x18   :  { %s7259_s17 = smov [#allocation3]   ;;  %s7260_s19 = smov [#allocation7]  }
  0x19   :  { %s22_s18 = sshll.u32 %s7259_s17, 4  ;;  %s46_s20 = sshll.u32 %s7260_s19, 4  ;;  %s23_s18 = int_to_ptr.vmem [resolvable:$true] %s22_s18  ;;  %s47_s20 = int_to_ptr.vmem [resolvable:$true] %s46_s20 }
  0x1a   :  { %s7175_s21 = scalar_lea.vmem %s23_s18, 1024  ;;  %p7180_p11 = scmp.lt.s32.totalorder %s23_s18, %s23_s18 }
  0x1b   :  { %p7176_p10 = scmp.ne.s32.totalorder %s23_s18, %s7175_s21  ;;  %p7181_p12 = scmp.lt.s32.totalorder %s7175_s21, %s7175_s21 }
  0x1d   :  { %p7182_p13 = por %p7181_p12, %p7180_p11 }
  0x1f   :  { %p7183_p0 = pnand %p7182_p13, %p7176_p10 }
  0x21   :  { %7186 = shalt.err (!%p7183_p0)
}
  0x22   :  { %28 = dma.hbm_to_vmem [thread:$0]  %s8562_s0, 1024, %s23_s18, [#allocation4], %s7257_s10, %s7257_s10, %s7258_s11  }
  0x23   :  { %s7195_s3 = scalar_lea.vmem %s47_s20, 4096  ;;  %p7200_p2 = scmp.lt.s32.totalorder %s47_s20, %s47_s20 }
  0x24   :  { %p7196_p1 = scmp.ne.s32.totalorder %s47_s20, %s7195_s3  ;;  %p7201_p3 = scmp.lt.s32.totalorder %s7195_s3, %s7195_s3 }
  0x26   :  { %p7202_p4 = por %p7201_p3, %p7200_p2 }
  0x28   :  { %p7203_p5 = pnand %p7202_p4, %p7196_p1 }
  0x2a   :  { %7206 = shalt.err (!%p7203_p5)
}
  0x2b   :  { %s7261_s23 = smov 256   ;;  %s7262_s24 = smov 16  }
  0x2c   :  { %52 = dma.hbm_to_vmem [thread:$0]  %s8564_s2, 4096, %s47_s20, [#allocation6], %s7261_s23, %s7261_s23, %s7262_s24  }
  0x2d   :  { %s7263_s27 = smov [#allocation10]   ;;  %s7264_s29 = smov [#allocation11]  }
  0x2e   :  { %s68_s28 = sshll.u32 %s7263_s27, 4  ;;  %s82_s30 = sshll.u32 %s7264_s29, 4  ;;  %s69_s28 = int_to_ptr.vmem [resolvable:$true] %s68_s28  ;;  %s83_s30 = int_to_ptr.vmem [resolvable:$true] %s82_s30 }
  0x2f   :  { %s7215_s0 = scalar_lea.vmem %s69_s28, 32768  ;;  %p7220_p7 = scmp.lt.s32.totalorder %s69_s28, %s69_s28 }
  0x30   :  { %p7216_p6 = scmp.ne.s32.totalorder %s69_s28, %s7215_s0  ;;  %p7221_p8 = scmp.lt.s32.totalorder %s7215_s0, %s7215_s0 }
  0x32   :  { %p7222_p9 = por %p7221_p8, %p7220_p7 }
  0x34   :  { %p7223_p10 = pnand %p7222_p9, %p7216_p6 }
  0x36   :  { %7226 = shalt.err (!%p7223_p10)
}
  0x37   :  { %74 = dma.hbm_to_vmem [thread:$0]  %s8566_s4, 32768, %s69_s28, [#allocation9], %s7261_s23, %s7261_s23, %s7262_s24  }
  0x38   :  { %s7235_s13 = scalar_lea.vmem %s83_s30, 4096  ;;  %p7240_p12 = scmp.lt.s32.totalorder %s83_s30, %s83_s30 }
  0x39   :  { %p7236_p11 = scmp.ne.s32.totalorder %s83_s30, %s7235_s13  ;;  %p7241_p13 = scmp.lt.s32.totalorder %s7235_s13, %s7235_s13 }
  0x3b   :  { %p7242_p0 = por %p7241_p13, %p7240_p12 }
  0x3d   :  { %p7243_p1 = pnand %p7242_p0, %p7236_p11 }
  0x3f   :  { %7246 = shalt.err (!%p7243_p1)
}
  0x40   :  { %88 = dma.hbm_to_vmem [thread:$0]  %s8568_s6, 4096, %s83_s30, [#allocation12], %s7257_s10, %s7257_s10, %s7258_s11  }
  0x41   :  { %7247 = dma.done.wait [#allocation4], 1024  }
  0x42   :  { %7248 = vsyncadd [#allocation4], 4294966272 }
  0x43   :  { %7249 = dma.done.wait [#allocation6], 5120  }
  0x44   :  { %7250 = vsyncadd [#allocation6], 4294962176 }
  0x45   :  { %7251 = dma.done.wait [#allocation9], 32832  }
  0x46   :  { %7252 = vsyncadd [#allocation9], 4294934464 }
  0x47   :  { %7253 = dma.done.wait [#allocation12], 4096  }
  0x48   :  { %7254 = vsyncadd [#allocation12], 4294963200  ;;  %v6631_v0 = vld [vmem:[#allocation5 + $0x38] sm:$0xff]   ;;  %v6632_v1 = vld [vmem:[#allocation5 + $0x30] sm:$0xff]   ;;  %v8571_v48 = vmov 0  }
  0x49   :  { %6572 = vmatprep.subr.bf16.mxu0 %v6631_v0  ;;  %v6633_v2 = vld [vmem:[#allocation5 + $0x28] sm:$0xff]   ;;  %v6634_v3 = vld [vmem:[#allocation5 + $0x20] sm:$0xff]   ;;  %v6635_v5 = vld [vmem:[#allocation5 + $0x18] sm:$0xff]   ;;  %589 = vmatprep.mubr.bf16.mxu1 %v8571_v48 }
  0x4a   :  { %6573 = vmatpush3.bf16.msra.mxu0 %v6631_v0  ;;  %v6639_v4 = vld [vmem:[#allocation3] sm:$0xff]   ;;  %v6636_v6 = vld [vmem:[#allocation5 + $0x10] sm:$0xff]   ;;  %v6637_v10 = vld [vmem:[#allocation5 + $0x8] sm:$0xff]  }
  0x4b   :  { %6574 = vmatprep.subr.bf16.mxu0 %v6632_v1  ;;  %6588 = vmatprep.mubr.bf16.mxu0 %v6639_v4  ;;  %v6647_v7 = vld [vmem:[#allocation7 + $0xe4] ss:$16 sps:$4 sm:$0xff]   ;;  %v6652_v8 = vld [vmem:[#allocation7 + $0xe0] ss:$16 sps:$4 sm:$0xff]   ;;  %v6640_v16 = vld [vmem:[#allocation3 + $0x8] sm:$0xff]  }
  0x4c   :  { %557 = vmatprep.subr.bf16.mxu1 %v6647_v7  ;;  %v6653_v9 = vld [vmem:[#allocation7 + $0xc4] ss:$16 sps:$4 sm:$0xff]   ;;  %v6658_v11 = vld [vmem:[#allocation7 + $0xc0] ss:$16 sps:$4 sm:$0xff]   ;;  %v6651_v17 = vld [vmem:[#allocation7 + $0xec] ss:$16 sps:$4 sm:$0xff]  }
  0x4d   :  { %558 = vmatpush1.bf16.msra.mxu1 %v6652_v8  ;;  %v6659_v12 = vld [vmem:[#allocation7 + $0xa4] ss:$16 sps:$4 sm:$0xff]   ;;  %v6664_v14 = vld [vmem:[#allocation7 + $0xa0] ss:$16 sps:$4 sm:$0xff]   ;;  %v6649_v21 = vld [vmem:[#allocation7 + $0xe8] ss:$16 sps:$4 sm:$0xff]  }
  0x4e   :  { %6575 = vmatpush3.bf16.msra.mxu0 %v6632_v1  ;;  %559 = vmatprep.subr.bf16.mxu1 %v6653_v9  ;;  %v6638_v13 = vld [vmem:[#allocation5] sm:$0xff]   ;;  %v6641_v19 = vld [vmem:[#allocation3 + $0x10] sm:$0xff]   ;;  %v6657_v22 = vld [vmem:[#allocation7 + $0xcc] ss:$16 sps:$4 sm:$0xff]  }
  0x4f   :  { %6576 = vmatprep.subr.bf16.mxu0 %v6633_v2  ;;  %v6665_v15 = vld [vmem:[#allocation7 + $0x84] ss:$16 sps:$4 sm:$0xff]   ;;  %v6670_v18 = vld [vmem:[#allocation7 + $0x80] ss:$16 sps:$4 sm:$0xff]   ;;  %v6655_v25 = vld [vmem:[#allocation7 + $0xc8] ss:$16 sps:$4 sm:$0xff]  }
  0x50   :  { %v6671_v20 = vld [vmem:[#allocation7 + $0x64] ss:$16 sps:$4 sm:$0xff]   ;;  %v6676_v23 = vld [vmem:[#allocation7 + $0x60] ss:$16 sps:$4 sm:$0xff]   ;;  %v6663_v26 = vld [vmem:[#allocation7 + $0xac] ss:$16 sps:$4 sm:$0xff]  }
  0x51   :  { %560 = vmatpush1.bf16.msra.mxu1 %v6658_v11  ;;  %v6677_v24 = vld [vmem:[#allocation7 + $0x44] ss:$16 sps:$4 sm:$0xff]   ;;  %v6682_v27 = vld [vmem:[#allocation7 + $0x40] ss:$16 sps:$4 sm:$0xff]   ;;  %v6642_v28 = vld [vmem:[#allocation3 + $0x18] sm:$0xff]  }
  0x52   :  { %6577 = vmatpush3.bf16.msra.mxu0 %v6633_v2  ;;  %561 = vmatprep.subr.bf16.mxu1 %v6659_v12  ;;  %v6643_v29 = vld [vmem:[#allocation3 + $0x20] sm:$0xff]   ;;  %v6661_v30 = vld [vmem:[#allocation7 + $0xa8] ss:$16 sps:$4 sm:$0xff]   ;;  %v6669_v31 = vld [vmem:[#allocation7 + $0x8c] ss:$16 sps:$4 sm:$0xff]  }
  0x53   :  { %6578 = vmatprep.subr.bf16.mxu0 %v6634_v3  ;;  %v6667_v32 = vld [vmem:[#allocation7 + $0x88] ss:$16 sps:$4 sm:$0xff]   ;;  %v6675_v33 = vld [vmem:[#allocation7 + $0x6c] ss:$16 sps:$4 sm:$0xff]   ;;  %v6645_v35 = vld [vmem:[#allocation3 + $0x30] sm:$0xff]  }
  0x54   :  { %v6644_v34 = vld [vmem:[#allocation3 + $0x28] sm:$0xff]   ;;  %v6646_v39 = vld [vmem:[#allocation3 + $0x38] sm:$0xff]   ;;  %v6683_v40 = vld [vmem:[#allocation7 + $0x24] ss:$16 sps:$4 sm:$0xff]  }
  0x55   :  { %562 = vmatpush1.bf16.msra.mxu1 %v6664_v14  ;;  %v6673_v36 = vld [vmem:[#allocation7 + $0x68] ss:$16 sps:$4 sm:$0xff]   ;;  %v6681_v37 = vld [vmem:[#allocation7 + $0x4c] ss:$16 sps:$4 sm:$0xff]   ;;  %v6688_v43 = vld [vmem:[#allocation7 + $0x20] ss:$16 sps:$4 sm:$0xff]  }
  0x56   :  { %6579 = vmatpush3.bf16.msra.mxu0 %v6634_v3  ;;  %563 = vmatprep.subr.bf16.mxu1 %v6665_v15  ;;  %v6679_v38 = vld [vmem:[#allocation7 + $0x48] ss:$16 sps:$4 sm:$0xff]   ;;  %v6687_v41 = vld [vmem:[#allocation7 + $0x2c] ss:$16 sps:$4 sm:$0xff]   ;;  %v6689_v44 = vld [vmem:[#allocation7 + $0x4] ss:$16 sps:$4 sm:$0xff]  }
  0x57   :  { %6580 = vmatprep.subr.bf16.mxu0 %v6635_v5  ;;  %v6685_v42 = vld [vmem:[#allocation7 + $0x28] ss:$16 sps:$4 sm:$0xff]   ;;  %v6693_v45 = vld [vmem:[#allocation7 + $0xc] ss:$16 sps:$4 sm:$0xff]   ;;  %v6694_v47 = vld [vmem:[#allocation7] ss:$16 sps:$4 sm:$0xff]  }
  0x58   :  { %v6691_v46 = vld [vmem:[#allocation7 + $0x8] ss:$16 sps:$4 sm:$0xff]   ;;  %v6695_v56 = vld [vmem:[#allocation10 + $0xe0] ss:$16 sps:$4 sm:$0xff]  }
  0x59   :  { %564 = vmatpush1.bf16.msra.mxu1 %v6670_v18  ;;  %v6697_v49 = vld [vmem:[#allocation10 + $0xe4] ss:$16 sps:$4 sm:$0xff]   ;;  %v6698_v57 = vld [vmem:[#allocation10 + $0x2e0] ss:$16 sps:$4 sm:$0xff]  }
  0x5a   :  { %6581 = vmatpush3.bf16.msra.mxu0 %v6635_v5  ;;  %565 = vmatprep.subr.bf16.mxu1 %v6671_v20  ;;  %v6700_v50 = vld [vmem:[#allocation10 + $0x2e4] ss:$16 sps:$4 sm:$0xff]   ;;  %v6701_v61 = vld [vmem:[#allocation10 + $0xc0] ss:$16 sps:$4 sm:$0xff]  }
  0x5b   :  { %6582 = vmatprep.subr.bf16.mxu0 %v6636_v6  ;;  %v6703_v59 = vld [vmem:[#allocation10 + $0xc4] ss:$16 sps:$4 sm:$0xff]   ;;  %v6704_v62 = vld [vmem:[#allocation10 + $0x2c0] ss:$16 sps:$4 sm:$0xff]  }
  0x5c   :  { %v6706_v60 = vld [vmem:[#allocation10 + $0x2c4] ss:$16 sps:$4 sm:$0xff]   ;;  %v6707_v3 = vld [vmem:[#allocation10 + $0xa0] ss:$16 sps:$4 sm:$0xff]  }
  0x5d   :  { %566 = vmatpush1.bf16.msra.mxu1 %v6676_v23  ;;  %v6709_v0 = vld [vmem:[#allocation10 + $0xa4] ss:$16 sps:$4 sm:$0xff]   ;;  %v6710_v4 = vld [vmem:[#allocation10 + $0x2a0] ss:$16 sps:$4 sm:$0xff]  }
  0x5e   :  { %6583 = vmatpush3.bf16.msra.mxu0 %v6636_v6  ;;  %567 = vmatprep.subr.bf16.mxu1 %v6677_v24  ;;  %v6712_v1 = vld [vmem:[#allocation10 + $0x2a4] ss:$16 sps:$4 sm:$0xff]   ;;  %v6713_v8 = vld [vmem:[#allocation10 + $0x80] ss:$16 sps:$4 sm:$0xff]  }
  0x5f   :  { %6584 = vmatprep.subr.bf16.mxu0 %v6637_v10  ;;  %v6715_v6 = vld [vmem:[#allocation10 + $0x84] ss:$16 sps:$4 sm:$0xff]   ;;  %v6716_v9 = vld [vmem:[#allocation10 + $0x280] ss:$16 sps:$4 sm:$0xff]  }
  0x60   :  { %v6718_v7 = vld [vmem:[#allocation10 + $0x284] ss:$16 sps:$4 sm:$0xff]   ;;  %v6719_v14 = vld [vmem:[#allocation10 + $0x60] ss:$16 sps:$4 sm:$0xff]  }
  0x61   :  { %568 = vmatpush1.bf16.msra.mxu1 %v6682_v27  ;;  %v6721_v11 = vld [vmem:[#allocation10 + $0x64] ss:$16 sps:$4 sm:$0xff]   ;;  %v6722_v15 = vld [vmem:[#allocation10 + $0x260] ss:$16 sps:$4 sm:$0xff]  }
  0x62   :  { %6585 = vmatpush3.bf16.msra.mxu0 %v6637_v10  ;;  %569 = vmatprep.subr.bf16.mxu1 %v6683_v40  ;;  %v6724_v12 = vld [vmem:[#allocation10 + $0x264] ss:$16 sps:$4 sm:$0xff]   ;;  %v6728_v20 = vld [vmem:[#allocation10 + $0x240] ss:$16 sps:$4 sm:$0xff]  }
  0x63   :  { %6586 = vmatprep.subr.bf16.mxu0 %v6638_v13  ;;  %v6730_v18 = vld [vmem:[#allocation10 + $0x244] ss:$16 sps:$4 sm:$0xff]  }
  0x64   :  { %v6736_v23 = vld [vmem:[#allocation10 + $0x224] ss:$16 sps:$4 sm:$0xff]  }
  0x65   :  { %570 = vmatpush1.bf16.msra.mxu1 %v6688_v43  ;;  %v6754_v40 = vld [vmem:[#allocation10 + $0x3c4] ss:$16 sps:$4 sm:$0xff]  }
  0x66   :  { %6587 = vmatpush3.bf16.msra.mxu0 %v6638_v13  ;;  %571 = vmatprep.subr.bf16.mxu1 %v6689_v44  ;;  %v6757_v44 = vld [vmem:[#allocation10 + $0x1a4] ss:$16 sps:$4 sm:$0xff]  }
  0x67   :  { %670 = vmatprep.subr.bf16.mxu0 %v6651_v17  ;;  %v6727_v17 = vld [vmem:[#allocation10 + $0x44] ss:$16 sps:$4 sm:$0xff]  }
  0x69   :  { %6589 = vmatmul.mubr.bf16.vlgmr.msra.gmra.mxu0 %v6640_v16  ;;  %572 = vmatpush1.bf16.msra.mxu1 %v6694_v47  ;;  %v6755_v47 = vld [vmem:[#allocation10 + $0x1a0] ss:$16 sps:$4 sm:$0xff]  }
  0x6a   :  { %6592 = vmatprep.mubr.bf16.mxu0 %v6641_v19  ;;  %671 = vmatpush1.bf16.msra.mxu0 %v6649_v21  ;;  %v6725_v19 = vld [vmem:[#allocation10 + $0x40] ss:$16 sps:$4 sm:$0xff]  }
  0x6b   :  { %672 = vmatprep.subr.bf16.mxu0 %v6657_v22  ;;  %2031 = vmatprep.subr.bf16.mxu1 %v6697_v49  ;;  %v6733_v22 = vld [vmem:[#allocation10 + $0x24] ss:$16 sps:$4 sm:$0xff]   ;;  %v6758_v49 = vld [vmem:[#allocation10 + $0x3a0] ss:$16 sps:$4 sm:$0xff]  }
  0x6e   :  { %673 = vmatpush1.bf16.msra.mxu0 %v6655_v25  ;;  %v6731_v25 = vld [vmem:[#allocation10 + $0x20] ss:$16 sps:$4 sm:$0xff]  }
  0x6f   :  { %674 = vmatprep.subr.bf16.mxu0 %v6663_v26  ;;  %v6734_v26 = vld [vmem:[#allocation10 + $0x220] ss:$16 sps:$4 sm:$0xff]  }
  0x71   :  { %6593 = vmatmul.mubr.bf16.gmra.mxu0 %v6642_v28  ;;  %v6739_v28 = vld [vmem:[#allocation10 + $0x4] ss:$16 sps:$4 sm:$0xff]  }
  0x72   :  { %6596 = vmatprep.mubr.bf16.mxu0 %v6643_v29  ;;  %675 = vmatpush1.bf16.msra.mxu0 %v6661_v30  ;;  %v6742_v29 = vld [vmem:[#allocation10 + $0x204] ss:$16 sps:$4 sm:$0xff]   ;;  %v6737_v30 = vld [vmem:[#allocation10] ss:$16 sps:$4 sm:$0xff]  }
  0x73   :  { %676 = vmatprep.subr.bf16.mxu0 %v6669_v31  ;;  %v6740_v31 = vld [vmem:[#allocation10 + $0x200] ss:$16 sps:$4 sm:$0xff]  }
  0x76   :  { %677 = vmatpush1.bf16.msra.mxu0 %v6667_v32 }
  0x77   :  { %678 = vmatprep.subr.bf16.mxu0 %v6675_v33  ;;  %v6745_v33 = vld [vmem:[#allocation10 + $0x1e4] ss:$16 sps:$4 sm:$0xff]  }
  0x79   :  { %6597 = vmatmul.mubr.bf16.gmra.mxu0 %v6644_v34  ;;  %v6748_v34 = vld [vmem:[#allocation10 + $0x3e4] ss:$16 sps:$4 sm:$0xff]  }
  0x7a   :  { %6600 = vmatprep.mubr.bf16.mxu0 %v6645_v35  ;;  %679 = vmatpush1.bf16.msra.mxu0 %v6673_v36  ;;  %v6743_v36 = vld [vmem:[#allocation10 + $0x1e0] ss:$16 sps:$4 sm:$0xff]  }
  0x7b   :  { %680 = vmatprep.subr.bf16.mxu0 %v6681_v37  ;;  %v6746_v37 = vld [vmem:[#allocation10 + $0x3e0] ss:$16 sps:$4 sm:$0xff]  }
  0x7e   :  { %681 = vmatpush1.bf16.msra.mxu0 %v6679_v38 }
  0x7f   :  { %682 = vmatprep.subr.bf16.mxu0 %v6687_v41  ;;  %v6749_v41 = vld [vmem:[#allocation10 + $0x1c0] ss:$16 sps:$4 sm:$0xff]  }
  0x81   :  { %6601 = vmatmul.mubr.bf16.gmra.mxu0 %v6646_v39  ;;  %v6751_v39 = vld [vmem:[#allocation10 + $0x1c4] ss:$16 sps:$4 sm:$0xff]  }
  0x82   :  { %683 = vmatpush1.bf16.msra.mxu0 %v6685_v42  ;;  %702 = vmatprep.mubr.bf16.mxu0 %v8571_v48  ;;  %v6752_v42 = vld [vmem:[#allocation10 + $0x3c0] ss:$16 sps:$4 sm:$0xff]  }
  0x83   :  { %684 = vmatprep.subr.bf16.mxu0 %v6693_v45  ;;  %v6760_v45 = vld [vmem:[#allocation10 + $0x3a4] ss:$16 sps:$4 sm:$0xff]  }
  0x86   :  { %685 = vmatpush1.bf16.msra.mxu0 %v6691_v46 }
  0x87   :  { %2144 = vmatprep.subr.bf16.mxu0 %v6700_v50 }
 0x129   :  { %v6590_v51 = vpop.f32.mrf.mxu0 }
 0x12b   :  { %v272_v52 = vpop.f32.mrf.mxu0 }
 0x12d   :  { %v6591_v53 = vpop.f32.mrf.mxu0 }
 0x12e   :  { %v336_v2 = vpack.c.bf16 %v6591_v53, %v6590_v51  ;;  %v6763_v51 = vld [vmem:[#allocation10 + $0x184] ss:$16 sps:$4 sm:$0xff]   ;;  %v6761_v53 = vld [vmem:[#allocation10 + $0x180] ss:$16 sps:$4 sm:$0xff]  }
 0x12f   :  { %v275_v54 = vpop.f32.mrf.mxu0 }
 0x130   :  { %v335_v55 = vpack.c.bf16 %v275_v54, %v272_v52  ;;  %v6766_v52 = vld [vmem:[#allocation10 + $0x384] ss:$16 sps:$4 sm:$0xff]   ;;  %v6764_v54 = vld [vmem:[#allocation10 + $0x380] ss:$16 sps:$4 sm:$0xff]  }
 0x131   :  { %v6594_v58 = vpop.f32.mrf.mxu0 }
 0x132   :  { %590 = vmatmul.mubr.bf16.vlgmr.msra.gmra.mxu1 %v335_v55  ;;  %703 = vmatmul.mubr.bf16.vlgmr.msra.gmra.mxu0 %v335_v55 }
 0x133   :  { %599 = vmatprep.mubr.bf16.mxu1 %v8571_v48  ;;  %712 = vmatprep.mubr.bf16.mxu0 %v8571_v48  ;;  %v288_v63 = vpop.f32.mrf.mxu0 }
 0x134   :  { %2032 = vmatpush1.bf16.msra.mxu1 %v6695_v56  ;;  %2145 = vmatpush1.bf16.msra.mxu0 %v6698_v57  ;;  %v6769_v56 = vld [vmem:[#allocation10 + $0x164] ss:$16 sps:$4 sm:$0xff]  }
 0x135   :  { %2033 = vmatprep.subr.bf16.mxu1 %v6703_v59  ;;  %2146 = vmatprep.subr.bf16.mxu0 %v6706_v60  ;;  %v6595_v5 = vpop.f32.mrf.mxu0  ;;  %v6772_v57 = vld [vmem:[#allocation10 + $0x364] ss:$16 sps:$4 sm:$0xff]   ;;  %v6767_v59 = vld [vmem:[#allocation10 + $0x160] ss:$16 sps:$4 sm:$0xff]  }
 0x136   :  { %v338_v24 = vpack.c.bf16 %v6595_v5, %v6594_v58  ;;  %v6770_v60 = vld [vmem:[#allocation10 + $0x360] ss:$16 sps:$4 sm:$0xff]  }
 0x137   :  { %v291_v10 = vpop.f32.mrf.mxu0  ;;  %v6782_v5 = vld [vmem:[#allocation10 + $0x320] ss:$16 sps:$4 sm:$0xff]  }
 0x138   :  { %2034 = vmatpush1.bf16.msra.mxu1 %v6701_v61  ;;  %2147 = vmatpush1.bf16.msra.mxu0 %v6704_v62  ;;  %v337_v13 = vpack.c.bf16 %v291_v10, %v288_v63  ;;  %v6775_v62 = vld [vmem:[#allocation10 + $0x144] ss:$16 sps:$4 sm:$0xff]   ;;  %v6793_v10 = vld [vmem:[#allocation10 + $0xec] ss:$16 sps:$4 sm:$0xff]  }
 0x139   :  { %2035 = vmatprep.subr.bf16.mxu1 %v6709_v0  ;;  %2148 = vmatprep.subr.bf16.mxu0 %v6712_v1  ;;  %v7344_v16 = vpop.f32.mrf.mxu0  ;;  %v6778_v63 = vld [vmem:[#allocation10 + $0x344] ss:$16 sps:$4 sm:$0xff]   ;;  %v6773_v0 = vld [vmem:[#allocation10 + $0x140] ss:$16 sps:$4 sm:$0xff]  }
 0x13a   :  { %600 = vmatmul.mubr.bf16.gmra.mxu1 %v336_v2  ;;  %713 = vmatmul.mubr.bf16.gmra.mxu0 %v336_v2  ;;  %v6776_v1 = vld [vmem:[#allocation10 + $0x340] ss:$16 sps:$4 sm:$0xff]   ;;  %v6781_v2 = vld [vmem:[#allocation10 + $0x124] ss:$16 sps:$4 sm:$0xff]  }
 0x13b   :  { %609 = vmatprep.mubr.bf16.mxu1 %v8571_v48  ;;  %722 = vmatprep.mubr.bf16.mxu0 %v8571_v48  ;;  %v304_v21 = vpop.f32.mrf.mxu0 }
 0x13c   :  { %2036 = vmatpush1.bf16.msra.mxu1 %v6707_v3  ;;  %2149 = vmatpush1.bf16.msra.mxu0 %v6710_v4  ;;  %v6784_v3 = vld [vmem:[#allocation10 + $0x324] ss:$16 sps:$4 sm:$0xff]   ;;  %v6779_v4 = vld [vmem:[#allocation10 + $0x120] ss:$16 sps:$4 sm:$0xff]  }
 0x13d   :  { %2037 = vmatprep.subr.bf16.mxu1 %v6715_v6  ;;  %2150 = vmatprep.subr.bf16.mxu0 %v6718_v7  ;;  %v6599_v27 = vpop.f32.mrf.mxu0  ;;  %v6787_v6 = vld [vmem:[#allocation10 + $0x104] ss:$16 sps:$4 sm:$0xff]  }
 0x13e   :  { %v340_v46 = vpack.c.bf16 %v6599_v27, %v7344_v16  ;;  %v6790_v7 = vld [vmem:[#allocation10 + $0x304] ss:$16 sps:$4 sm:$0xff]  }
 0x13f   :  { %v307_v32 = vpop.f32.mrf.mxu0 }
 0x140   :  { %2038 = vmatpush1.bf16.msra.mxu1 %v6713_v8  ;;  %2151 = vmatpush1.bf16.msra.mxu0 %v6716_v9  ;;  %v339_v35 = vpack.c.bf16 %v307_v32, %v304_v21  ;;  %v6785_v8 = vld [vmem:[#allocation10 + $0x100] ss:$16 sps:$4 sm:$0xff]  }
 0x141   :  { %2039 = vmatprep.subr.bf16.mxu1 %v6721_v11  ;;  %2152 = vmatprep.subr.bf16.mxu0 %v6724_v12  ;;  %v6602_v38 = vpop.f32.mrf.mxu0  ;;  %v6788_v9 = vld [vmem:[#allocation10 + $0x300] ss:$16 sps:$4 sm:$0xff]   ;;  %v6796_v11 = vld [vmem:[#allocation10 + $0x2ec] ss:$16 sps:$4 sm:$0xff]   ;;  %v377_v12 = vlaneseq }
 0x142   :  { %610 = vmatmul.mubr.bf16.gmra.mxu1 %v337_v13  ;;  %723 = vmatmul.mubr.bf16.gmra.mxu0 %v337_v13 }
 0x143   :  { %619 = vmatprep.mubr.bf16.mxu1 %v8571_v48  ;;  %732 = vmatprep.mubr.bf16.mxu0 %v8571_v48  ;;  %v320_v43 = vpop.f32.mrf.mxu0  ;;  %v378_v13 = vshrl.u32 %v377_v12, 7 }
 0x144   :  { %2040 = vmatpush1.bf16.msra.mxu1 %v6719_v14  ;;  %2153 = vmatpush1.bf16.msra.mxu0 %v6722_v15 }
 0x145   :  { %2041 = vmatprep.subr.bf16.mxu1 %v6727_v17  ;;  %2154 = vmatprep.subr.bf16.mxu0 %v6730_v18  ;;  %v6603_v50 = vpop.f32.mrf.mxu0  ;;  %v7357_v14 = vsub.s32 1, %v378_v13  ;;  %v7359_v15 = vsub.s32 3, %v378_v13  ;;  %v7361_v16 = vsub.s32 0, %v378_v13  ;;  %v7363_v17 = vsub.s32 2, %v378_v13  ;;  %v375_v18 = vld [vmem:[#allocation8] sm:$0xf] }
 0x146   :  { %v342_v61 = vpack.c.bf16 %v6603_v50, %v6602_v38 }
 0x147   :  { %v323_v55 = vpop.f32.mrf.mxu0  ;;  %8600 = vst [vmem:[#allocation17_spill] sm:$0xff] %v7357_v14  ;;  %8601 = vst [vmem:[#allocation18_spill] sm:$0xff] %v7359_v15  ;;  %v7366_v21 = vrot.slane %v375_v18, %v7357_v14 }
 0x148   :  { %2042 = vmatpush1.bf16.msra.mxu1 %v6725_v19  ;;  %2155 = vmatpush1.bf16.msra.mxu0 %v6728_v20  ;;  %v341_v58 = vpack.c.bf16 %v323_v55, %v320_v43  ;;  %8602 = vst [vmem:[#allocation19_spill] sm:$0xff] %v7361_v16  ;;  %8603 = vst [vmem:[#allocation20_spill] sm:$0xff] %v7363_v17  ;;  %v6794_v55 = vld [vmem:[#allocation10 + $0x2e8] ss:$16 sps:$4 sm:$0xff]  }
 0x149   :  { %2043 = vmatprep.subr.bf16.mxu1 %v6733_v22  ;;  %2156 = vmatprep.subr.bf16.mxu0 %v6736_v23  ;;  %v7369_v22 = vrot.slane %v375_v18, %v7359_v15  ;;  %v7372_v23 = vrot.slane %v375_v18, %v7361_v16 }
 0x14a   :  { %620 = vmatmul.mubr.bf16.gmra.mxu1 %v338_v24  ;;  %733 = vmatmul.mubr.bf16.gmra.mxu0 %v338_v24  ;;  %v7375_v24 = vrot.slane %v375_v18, %v7363_v17  ;;  %v6805_v18 = vld [vmem:[#allocation10 + $0xac] ss:$16 sps:$4 sm:$0xff]  }
 0x14b   :  { %629 = vmatprep.mubr.bf16.mxu1 %v8571_v48  ;;  %742 = vmatprep.mubr.bf16.mxu0 %v8571_v48 }
 0x14c   :  { %2044 = vmatpush1.bf16.msra.mxu1 %v6731_v25  ;;  %2157 = vmatpush1.bf16.msra.mxu0 %v6734_v26 }
 0x14d   :  { %2045 = vmatprep.subr.bf16.mxu1 %v6739_v28  ;;  %2158 = vmatprep.subr.bf16.mxu0 %v6742_v29 }
 0x150   :  { %2046 = vmatpush1.bf16.msra.mxu1 %v6737_v30  ;;  %2159 = vmatpush1.bf16.msra.mxu0 %v6740_v31 }
 0x151   :  { %2047 = vmatprep.subr.bf16.mxu1 %v6745_v33  ;;  %2160 = vmatprep.subr.bf16.mxu0 %v6748_v34 }
 0x152   :  { %630 = vmatmul.mubr.bf16.gmra.mxu1 %v339_v35  ;;  %743 = vmatmul.mubr.bf16.gmra.mxu0 %v339_v35 }
 0x153   :  { %639 = vmatprep.mubr.bf16.mxu1 %v8571_v48  ;;  %752 = vmatprep.mubr.bf16.mxu0 %v8571_v48 }
 0x154   :  { %2048 = vmatpush2.bf16.msra.mxu1 %v6743_v36  ;;  %2161 = vmatpush2.bf16.msra.mxu0 %v6746_v37 }
 0x155   :  { %2049 = vmatprep.subr.bf16.mxu1 %v6751_v39  ;;  %2162 = vmatprep.subr.bf16.mxu0 %v6754_v40 }
 0x158   :  { %2050 = vmatpush2.bf16.msra.mxu1 %v6749_v41  ;;  %2163 = vmatpush2.bf16.msra.mxu0 %v6752_v42 }
 0x159   :  { %2051 = vmatprep.subr.bf16.mxu1 %v6757_v44  ;;  %2164 = vmatprep.subr.bf16.mxu0 %v6760_v45 }
 0x15a   :  { %640 = vmatmul.mubr.bf16.gmra.mxu1 %v340_v46  ;;  %753 = vmatmul.mubr.bf16.gmra.mxu0 %v340_v46 }
 0x15b   :  { %649 = vmatprep.mubr.bf16.mxu1 %v8571_v48  ;;  %762 = vmatprep.mubr.bf16.mxu0 %v8571_v48 }
 0x15c   :  { %2052 = vmatpush2.bf16.msra.mxu1 %v6755_v47  ;;  %2165 = vmatpush2.bf16.msra.mxu0 %v6758_v49 }
 0x15d   :  { %2053 = vmatprep.subr.bf16.mxu1 %v6763_v51  ;;  %2166 = vmatprep.subr.bf16.mxu0 %v6766_v52 }
 0x160   :  { %2054 = vmatpush2.bf16.msra.mxu1 %v6761_v53  ;;  %2167 = vmatpush2.bf16.msra.mxu0 %v6764_v54  ;;  %v6791_v54 = vld [vmem:[#allocation10 + $0xe8] ss:$16 sps:$4 sm:$0xff]  }
 0x161   :  { %2055 = vmatprep.subr.bf16.mxu1 %v6769_v56  ;;  %2168 = vmatprep.subr.bf16.mxu0 %v6772_v57 }
 0x162   :  { %650 = vmatmul.mubr.bf16.gmra.mxu1 %v341_v58  ;;  %763 = vmatmul.mubr.bf16.gmra.mxu0 %v341_v58 }
 0x163   :  { %659 = vmatprep.mubr.bf16.mxu1 %v8571_v48  ;;  %772 = vmatprep.mubr.bf16.mxu0 %v8571_v48 }
 0x164   :  { %2056 = vmatpush2.bf16.msra.mxu1 %v6767_v59  ;;  %2169 = vmatpush2.bf16.msra.mxu0 %v6770_v60  ;;  %v6799_v60 = vld [vmem:[#allocation10 + $0xcc] ss:$16 sps:$4 sm:$0xff]  }
 0x165   :  { %2057 = vmatprep.subr.bf16.mxu1 %v6775_v62  ;;  %2170 = vmatprep.subr.bf16.mxu0 %v6778_v63 }
 0x168   :  { %2058 = vmatpush2.bf16.msra.mxu1 %v6773_v0  ;;  %2171 = vmatpush2.bf16.msra.mxu0 %v6776_v1 }
 0x169   :  { %2059 = vmatprep.subr.bf16.mxu1 %v6781_v2  ;;  %2172 = vmatprep.subr.bf16.mxu0 %v6784_v3 }
 0x16a   :  { %660 = vmatmul.mubr.bf16.gmra.mxu1 %v342_v61  ;;  %773 = vmatmul.mubr.bf16.gmra.mxu0 %v342_v61  ;;  %v6802_v61 = vld [vmem:[#allocation10 + $0x2cc] ss:$16 sps:$4 sm:$0xff]  }
 0x16c   :  { %2060 = vmatpush2.bf16.msra.mxu1 %v6779_v4  ;;  %2173 = vmatpush2.bf16.msra.mxu0 %v6782_v5 }
 0x16d   :  { %2061 = vmatprep.subr.bf16.mxu1 %v6787_v6  ;;  %2174 = vmatprep.subr.bf16.mxu0 %v6790_v7 }
 0x170   :  { %2062 = vmatpush2.bf16.msra.mxu1 %v6785_v8  ;;  %2175 = vmatpush2.bf16.msra.mxu0 %v6788_v9  ;;  %v6797_v8 = vld [vmem:[#allocation10 + $0xc8] ss:$16 sps:$4 sm:$0xff]  }
 0x171   :  { %2257 = vmatprep.subr.bf16.mxu1 %v6793_v10  ;;  %2370 = vmatprep.subr.bf16.mxu0 %v6796_v11  ;;  %v6800_v9 = vld [vmem:[#allocation10 + $0x2c8] ss:$16 sps:$4 sm:$0xff]  }
 0x1f2   :  { %v591_v19 = vpop.f32.mrf.mxu1  ;;  %v704_v20 = vpop.f32.mrf.mxu0 }
 0x1f3   :  { %v592_v33 = vadd.f32 %v591_v19, %v7372_v23  ;;  %v705_v34 = vadd.f32 %v704_v20, %v7375_v24  ;;  %v6808_v19 = vld [vmem:[#allocation10 + $0x2ac] ss:$16 sps:$4 sm:$0xff]  }
 0x1f4   :  { %v593_v25 = vpop.f32.mrf.mxu1  ;;  %v706_v26 = vpop.f32.mrf.mxu0 }
 0x1f5   :  { %v594_v29 = vadd.f32 %v593_v25, %v7366_v21  ;;  %v707_v30 = vadd.f32 %v706_v26, %v7369_v22  ;;  %v783_v47 = vmax.f32 %v592_v33, 0.0  ;;  %v785_v49 = vmax.f32 %v705_v34, 0.0  ;;  %v6803_v33 = vld [vmem:[#allocation10 + $0xa8] ss:$16 sps:$4 sm:$0xff]  }
 0x1f6   :  { %v595_v27 = vpop.f32.mrf.mxu1  ;;  %v708_v28 = vpop.f32.mrf.mxu0 }
 0x1f7   :  { %v596_v31 = vadd.f32 %v595_v27, %v7372_v23  ;;  %v709_v32 = vadd.f32 %v708_v28, %v7375_v24  ;;  %v784_v43 = vmax.f32 %v594_v29, 0.0  ;;  %v786_v44 = vmax.f32 %v707_v30, 0.0 }
 0x1f8   :  { %v597_v35 = vpop.f32.mrf.mxu1  ;;  %v710_v36 = vpop.f32.mrf.mxu0 }
 0x1f9   :  { %v598_v37 = vadd.f32 %v597_v35, %v7366_v21  ;;  %v711_v38 = vadd.f32 %v710_v36, %v7369_v22  ;;  %v787_v39 = vmax.f32 %v596_v31, 0.0  ;;  %v789_v40 = vmax.f32 %v709_v32, 0.0 }
 0x1fa   :  { %v601_v41 = vpop.f32.mrf.mxu1  ;;  %v714_v42 = vpop.f32.mrf.mxu0 }
 0x1fb   :  { %v788_v45 = vmax.f32 %v598_v37, 0.0  ;;  %v790_v46 = vmax.f32 %v711_v38, 0.0  ;;  %v7389_v56 = vpack.c.bf16 %v787_v39, %v783_v47  ;;  %v7391_v57 = vpack.c.bf16 %v789_v40, %v785_v49  ;;  %v6806_v39 = vld [vmem:[#allocation10 + $0x2a8] ss:$16 sps:$4 sm:$0xff]   ;;  %v6811_v40 = vld [vmem:[#allocation10 + $0x8c] ss:$16 sps:$4 sm:$0xff]  }
 0x1fc   :  { %v603_v50 = vpop.f32.mrf.mxu1  ;;  %v716_v51 = vpop.f32.mrf.mxu0  ;;  %v602_v1 = vadd.f32 %v601_v41, %v7372_v23  ;;  %v715_v2 = vadd.f32 %v714_v42, %v7375_v24 }
 0x1fd   :  { %v7385_v52 = vpack.c.bf16 %v788_v45, %v784_v43  ;;  %v7387_v53 = vpack.c.bf16 %v790_v46, %v786_v44  ;;  %v604_v62 = vadd.f32 %v603_v50, %v7366_v21  ;;  %v717_v3 = vadd.f32 %v716_v51, %v7369_v22  ;;  %v6814_v45 = vld [vmem:[#allocation10 + $0x28c] ss:$16 sps:$4 sm:$0xff]  }
 0x1fe   :  { %v605_v58 = vpop.f32.mrf.mxu1  ;;  %v718_v59 = vpop.f32.mrf.mxu0  ;;  %v791_v27 = vmax.f32 %v602_v1, 0.0  ;;  %v793_v28 = vmax.f32 %v715_v2, 0.0 }
 0x1ff   :  { %v606_v63 = vadd.f32 %v605_v58, %v7372_v23  ;;  %v719_v0 = vadd.f32 %v718_v59, %v7375_v24  ;;  %2063 = vmatprep.mubr.bf16.mxu1 %v7385_v52  ;;  %2176 = vmatprep.mubr.bf16.mxu0 %v7387_v53  ;;  %v792_v20 = vmax.f32 %v604_v62, 0.0  ;;  %v794_v29 = vmax.f32 %v717_v3, 0.0  ;;  %v6812_v62 = vld [vmem:[#allocation10 + $0x288] ss:$16 sps:$4 sm:$0xff]  }
 0x200   :  { %v607_v4 = vpop.f32.mrf.mxu1  ;;  %v720_v5 = vpop.f32.mrf.mxu0  ;;  %2064 = vmatmul.mubr.bf16.vlgmr.msra.gmra.mxu1 %v7389_v56  ;;  %2177 = vmatmul.mubr.bf16.vlgmr.msra.gmra.mxu0 %v7391_v57 }
 0x201   :  { %v608_v6 = vadd.f32 %v607_v4, %v7366_v21  ;;  %v721_v7 = vadd.f32 %v720_v5, %v7369_v22  ;;  %2258 = vmatpush1.bf16.msra.mxu1 %v6791_v54  ;;  %2371 = vmatpush1.bf16.msra.mxu0 %v6794_v55  ;;  %v795_v10 = vmax.f32 %v606_v63, 0.0  ;;  %v797_v11 = vmax.f32 %v719_v0, 0.0  ;;  %v6809_v55 = vld [vmem:[#allocation10 + $0x88] ss:$16 sps:$4 sm:$0xff]   ;;  %v6817_v63 = vld [vmem:[#allocation10 + $0x6c] ss:$16 sps:$4 sm:$0xff]  }
 0x202   :  { %v611_v12 = vpop.f32.mrf.mxu1  ;;  %v724_v13 = vpop.f32.mrf.mxu0  ;;  %2259 = vmatprep.subr.bf16.mxu1 %v6799_v60  ;;  %2372 = vmatprep.subr.bf16.mxu0 %v6802_v61 }
 0x203   :  { %v796_v25 = vmax.f32 %v608_v6, 0.0  ;;  %v798_v26 = vmax.f32 %v721_v7, 0.0  ;;  %v7407_v34 = vpack.c.bf16 %v795_v10, %v791_v27  ;;  %v7409_v35 = vpack.c.bf16 %v797_v11, %v793_v28  ;;  %v6815_v11 = vld [vmem:[#allocation10 + $0x68] ss:$16 sps:$4 sm:$0xff]  }
 0x204   :  { %v613_v30 = vpop.f32.mrf.mxu1  ;;  %v726_v31 = vpop.f32.mrf.mxu0  ;;  %v612_v46 = vadd.f32 %v611_v12, %v7372_v23  ;;  %v725_v47 = vadd.f32 %v724_v13, %v7375_v24 }
 0x205   :  { %2260 = vmatpush1.bf16.msra.mxu1 %v6797_v8  ;;  %2373 = vmatpush1.bf16.msra.mxu0 %v6800_v9  ;;  %v7405_v32 = vpack.c.bf16 %v796_v25, %v792_v20  ;;  %v7411_v38 = vpack.c.bf16 %v798_v26, %v794_v29  ;;  %v614_v41 = vadd.f32 %v613_v30, %v7366_v21  ;;  %v6820_v8 = vld [vmem:[#allocation10 + $0x26c] ss:$16 sps:$4 sm:$0xff]   ;;  %v6818_v25 = vld [vmem:[#allocation10 + $0x268] ss:$16 sps:$4 sm:$0xff]  }
 0x206   :  { %v615_v36 = vpop.f32.mrf.mxu1  ;;  %v728_v37 = vpop.f32.mrf.mxu0  ;;  %2261 = vmatprep.subr.bf16.mxu1 %v6805_v18  ;;  %2374 = vmatprep.subr.bf16.mxu0 %v6808_v19  ;;  %v727_v42 = vadd.f32 %v726_v31, %v7369_v22  ;;  %v799_v4 = vmax.f32 %v612_v46, 0.0  ;;  %v801_v5 = vmax.f32 %v725_v47, 0.0  ;;  %v6823_v26 = vld [vmem:[#allocation10 + $0x4c] ss:$16 sps:$4 sm:$0xff]   ;;  %v6824_v46 = vld [vmem:[#allocation10 + $0x248] ss:$16 sps:$4 sm:$0xff]  }
 0x207   :  { %v616_v43 = vadd.f32 %v615_v36, %v7372_v23  ;;  %v729_v44 = vadd.f32 %v728_v37, %v7375_v24  ;;  %2073 = vmatprep.mubr.bf16.mxu1 %v7405_v32  ;;  %2186 = vmatprep.mubr.bf16.mxu0 %v7411_v38  ;;  %v800_v0 = vmax.f32 %v614_v41, 0.0  ;;  %v6826_v30 = vld [vmem:[#allocation10 + $0x24c] ss:$16 sps:$4 sm:$0xff]   ;;  %v6821_v41 = vld [vmem:[#allocation10 + $0x48] ss:$16 sps:$4 sm:$0xff]  }
 0x208   :  { %v617_v49 = vpop.f32.mrf.mxu1  ;;  %v730_v50 = vpop.f32.mrf.mxu0  ;;  %2074 = vmatmul.mubr.bf16.gmra.mxu1 %v7407_v34  ;;  %2187 = vmatmul.mubr.bf16.gmra.mxu0 %v7409_v35  ;;  %v802_v1 = vmax.f32 %v727_v42, 0.0  ;;  %v6829_v47 = vld [vmem:[#allocation10 + $0x2c] ss:$16 sps:$4 sm:$0xff]  }
 0x209   :  { %v618_v51 = vadd.f32 %v617_v49, %v7366_v21  ;;  %v731_v54 = vadd.f32 %v730_v50, %v7369_v22  ;;  %2262 = vmatpush1.bf16.msra.mxu1 %v6803_v33  ;;  %v803_v58 = vmax.f32 %v616_v43, 0.0  ;;  %v805_v59 = vmax.f32 %v729_v44, 0.0  ;;  %2375 = vmatpush1.bf16.msra.mxu0 %v6806_v39 }
 0x20a   :  { %v621_v60 = vpop.f32.mrf.mxu1  ;;  %v734_v61 = vpop.f32.mrf.mxu0  ;;  %2263 = vmatprep.subr.bf16.mxu1 %v6811_v40  ;;  %2376 = vmatprep.subr.bf16.mxu0 %v6814_v45 }
 0x20b   :  { %v804_v2 = vmax.f32 %v618_v51, 0.0  ;;  %v806_v3 = vmax.f32 %v731_v54, 0.0  ;;  %v7429_v12 = vpack.c.bf16 %v803_v58, %v799_v4  ;;  %v7431_v13 = vpack.c.bf16 %v805_v59, %v801_v5 }
 0x20c   :  { %v623_v6 = vpop.f32.mrf.mxu1  ;;  %v736_v7 = vpop.f32.mrf.mxu0  ;;  %v622_v31 = vadd.f32 %v621_v60, %v7372_v23  ;;  %v735_v33 = vadd.f32 %v734_v61, %v7375_v24  ;;  %v6832_v61 = vld [vmem:[#allocation10 + $0x22c] ss:$16 sps:$4 sm:$0xff]  }
 0x20d   :  { %2264 = vmatpush1.bf16.msra.mxu1 %v6809_v55  ;;  %v7425_v9 = vpack.c.bf16 %v804_v2, %v800_v0  ;;  %v7427_v10 = vpack.c.bf16 %v806_v3, %v802_v1  ;;  %v624_v18 = vadd.f32 %v623_v6, %v7366_v21  ;;  %2377 = vmatpush1.bf16.msra.mxu0 %v6812_v62  ;;  %v6827_v0 = vld [vmem:[#allocation10 + $0x28] ss:$16 sps:$4 sm:$0xff]  }
 0x20e   :  { %v625_v19 = vpop.f32.mrf.mxu1  ;;  %v738_v20 = vpop.f32.mrf.mxu0  ;;  %2265 = vmatprep.subr.bf16.mxu1 %v6817_v63  ;;  %v737_v27 = vadd.f32 %v736_v7, %v7369_v22  ;;  %2378 = vmatprep.subr.bf16.mxu0 %v6820_v8  ;;  %v807_v55 = vmax.f32 %v622_v31, 0.0  ;;  %v809_v58 = vmax.f32 %v735_v33, 0.0  ;;  %v6830_v6 = vld [vmem:[#allocation10 + $0x228] ss:$16 sps:$4 sm:$0xff]   ;;  %v6835_v7 = vld [vmem:[#allocation10 + $0xc] ss:$16 sps:$4 sm:$0xff]  }
 0x20f   :  { %v626_v28 = vadd.f32 %v625_v19, %v7372_v23  ;;  %v739_v29 = vadd.f32 %v738_v20, %v7375_v24  ;;  %2083 = vmatprep.mubr.bf16.mxu1 %v7425_v9  ;;  %2196 = vmatprep.mubr.bf16.mxu0 %v7427_v10  ;;  %v808_v49 = vmax.f32 %v624_v18, 0.0  ;;  %v6838_v19 = vld [vmem:[#allocation10 + $0x20c] ss:$16 sps:$4 sm:$0xff]  }
 0x210   :  { %v627_v36 = vpop.f32.mrf.mxu1  ;;  %v740_v37 = vpop.f32.mrf.mxu0  ;;  %2084 = vmatmul.mubr.bf16.gmra.mxu1 %v7429_v12  ;;  %2197 = vmatmul.mubr.bf16.gmra.mxu0 %v7431_v13  ;;  %v810_v50 = vmax.f32 %v737_v27, 0.0 }
 0x211   :  { %v628_v39 = vadd.f32 %v627_v36, %v7366_v21  ;;  %v741_v40 = vadd.f32 %v740_v37, %v7369_v22  ;;  %2266 = vmatpush1.bf16.msra.mxu1 %v6815_v11  ;;  %v811_v42 = vmax.f32 %v626_v28, 0.0  ;;  %v813_v43 = vmax.f32 %v739_v29, 0.0  ;;  %2379 = vmatpush1.bf16.msra.mxu0 %v6818_v25 }
 0x212   :  { %v631_v44 = vpop.f32.mrf.mxu1  ;;  %v744_v45 = vpop.f32.mrf.mxu0  ;;  %2267 = vmatprep.subr.bf16.mxu1 %v6823_v26  ;;  %2380 = vmatprep.subr.bf16.mxu0 %v6826_v30  ;;  %v6833_v30 = vld [vmem:[#allocation10 + $0x8] ss:$16 sps:$4 sm:$0xff]  }
 0x213   :  { %v812_v51 = vmax.f32 %v628_v39, 0.0  ;;  %v814_v54 = vmax.f32 %v741_v40, 0.0  ;;  %v7449_v1 = vpack.c.bf16 %v811_v42, %v807_v55  ;;  %v7451_v2 = vpack.c.bf16 %v813_v43, %v809_v58  ;;  %v6836_v39 = vld [vmem:[#allocation10 + $0x208] ss:$16 sps:$4 sm:$0xff]   ;;  %v6841_v40 = vld [vmem:[#allocation10 + $0x1ec] ss:$16 sps:$4 sm:$0xff]  }
 0x214   :  { %v633_v59 = vpop.f32.mrf.mxu1  ;;  %v746_v60 = vpop.f32.mrf.mxu0  ;;  %v632_v20 = vadd.f32 %v631_v44, %v7372_v23  ;;  %v745_v25 = vadd.f32 %v744_v45, %v7375_v24  ;;  %v6839_v55 = vld [vmem:[#allocation10 + $0x1e8] ss:$16 sps:$4 sm:$0xff]  }
 0x215   :  { %2268 = vmatpush1.bf16.msra.mxu1 %v6821_v41  ;;  %v7445_v62 = vpack.c.bf16 %v812_v51, %v808_v49  ;;  %v7447_v63 = vpack.c.bf16 %v814_v54, %v810_v50  ;;  %v634_v3 = vadd.f32 %v633_v59, %v7366_v21  ;;  %2381 = vmatpush1.bf16.msra.mxu0 %v6824_v46  ;;  %v6844_v50 = vld [vmem:[#allocation10 + $0x3ec] ss:$16 sps:$4 sm:$0xff]  }
 0x216   :  { %v635_v4 = vpop.f32.mrf.mxu1  ;;  %v748_v5 = vpop.f32.mrf.mxu0  ;;  %2269 = vmatprep.subr.bf16.mxu1 %v6829_v47  ;;  %v747_v8 = vadd.f32 %v746_v60, %v7369_v22  ;;  %2382 = vmatprep.subr.bf16.mxu0 %v6832_v61  ;;  %v815_v45 = vmax.f32 %v632_v20, 0.0  ;;  %v817_v46 = vmax.f32 %v745_v25, 0.0 }
 0x217   :  { %v636_v11 = vadd.f32 %v635_v4, %v7372_v23  ;;  %v749_v18 = vadd.f32 %v748_v5, %v7375_v24  ;;  %2093 = vmatprep.mubr.bf16.mxu1 %v7445_v62  ;;  %2206 = vmatprep.mubr.bf16.mxu0 %v7447_v63  ;;  %v816_v41 = vmax.f32 %v634_v3, 0.0  ;;  %v6842_v3 = vld [vmem:[#allocation10 + $0x3e8] ss:$16 sps:$4 sm:$0xff]   ;;  %v6847_v4 = vld [vmem:[#allocation10 + $0x1cc] ss:$16 sps:$4 sm:$0xff]  }
 0x218   :  { %v637_v26 = vpop.f32.mrf.mxu1  ;;  %v750_v27 = vpop.f32.mrf.mxu0  ;;  %2094 = vmatmul.mubr.bf16.gmra.mxu1 %v7449_v1  ;;  %2207 = vmatmul.mubr.bf16.gmra.mxu0 %v7451_v2  ;;  %v818_v42 = vmax.f32 %v747_v8, 0.0  ;;  %v6850_v8 = vld [vmem:[#allocation10 + $0x3cc] ss:$16 sps:$4 sm:$0xff]  }
 0x219   :  { %v638_v28 = vadd.f32 %v637_v26, %v7366_v21  ;;  %v751_v29 = vadd.f32 %v750_v27, %v7369_v22  ;;  %2270 = vmatpush1.bf16.msra.mxu1 %v6827_v0  ;;  %v819_v31 = vmax.f32 %v636_v11, 0.0  ;;  %v821_v33 = vmax.f32 %v749_v18, 0.0  ;;  %2383 = vmatpush1.bf16.msra.mxu0 %v6830_v6  ;;  %v6845_v27 = vld [vmem:[#allocation10 + $0x1c8] ss:$16 sps:$4 sm:$0xff]  }
 0x21a   :  { %v641_v36 = vpop.f32.mrf.mxu1  ;;  %v754_v37 = vpop.f32.mrf.mxu0  ;;  %2271 = vmatprep.subr.bf16.mxu1 %v6835_v7  ;;  %2384 = vmatprep.subr.bf16.mxu0 %v6838_v19 }
 0x21b   :  { %v820_v43 = vmax.f32 %v638_v28, 0.0  ;;  %v822_v44 = vmax.f32 %v751_v29, 0.0  ;;  %v7469_v58 = vpack.c.bf16 %v819_v31, %v815_v45  ;;  %v7471_v59 = vpack.c.bf16 %v821_v33, %v817_v46  ;;  %v6848_v33 = vld [vmem:[#allocation10 + $0x3c8] ss:$16 sps:$4 sm:$0xff]   ;;  %v6856_v46 = vld [vmem:[#allocation10 + $0x3ac] ss:$16 sps:$4 sm:$0xff]  }
 0x21c   :  { %v643_v47 = vpop.f32.mrf.mxu1  ;;  %v756_v49 = vpop.f32.mrf.mxu0  ;;  %v642_v11 = vadd.f32 %v641_v36, %v7372_v23  ;;  %v755_v18 = vadd.f32 %v754_v37, %v7375_v24  ;;  %v6853_v36 = vld [vmem:[#allocation10 + $0x1ac] ss:$16 sps:$4 sm:$0xff]  }
 0x21d   :  { %2272 = vmatpush1.bf16.msra.mxu1 %v6833_v30  ;;  %v7465_v51 = vpack.c.bf16 %v820_v43, %v816_v41  ;;  %v7467_v54 = vpack.c.bf16 %v822_v44, %v818_v42  ;;  %v644_v60 = vadd.f32 %v643_v47, %v7366_v21  ;;  %2385 = vmatpush1.bf16.msra.mxu0 %v6836_v39 }
 0x21e   :  { %v645_v61 = vpop.f32.mrf.mxu1  ;;  %v758_v0 = vpop.f32.mrf.mxu0  ;;  %2273 = vmatprep.subr.bf16.mxu1 %v6841_v40  ;;  %v757_v5 = vadd.f32 %v756_v49, %v7369_v22  ;;  %2386 = vmatprep.subr.bf16.mxu0 %v6844_v50  ;;  %v823_v42 = vmax.f32 %v642_v11, 0.0  ;;  %v825_v43 = vmax.f32 %v755_v18, 0.0  ;;  %v6851_v50 = vld [vmem:[#allocation10 + $0x1a8] ss:$16 sps:$4 sm:$0xff]   ;;  %v6862_v11 = vld [vmem:[#allocation10 + $0x38c] ss:$16 sps:$4 sm:$0xff]  }
 0x21f   :  { %v646_v6 = vadd.f32 %v645_v61, %v7372_v23  ;;  %v759_v7 = vadd.f32 %v758_v0, %v7375_v24  ;;  %2103 = vmatprep.mubr.bf16.mxu1 %v7465_v51  ;;  %2216 = vmatprep.mubr.bf16.mxu0 %v7467_v54  ;;  %v824_v37 = vmax.f32 %v644_v60, 0.0 }
 0x220   :  { %v647_v19 = vpop.f32.mrf.mxu1  ;;  %v760_v20 = vpop.f32.mrf.mxu0  ;;  %2104 = vmatmul.mubr.bf16.gmra.mxu1 %v7469_v58  ;;  %2217 = vmatmul.mubr.bf16.gmra.mxu0 %v7471_v59  ;;  %v826_v39 = vmax.f32 %v757_v5, 0.0  ;;  %v6859_v5 = vld [vmem:[#allocation10 + $0x18c] ss:$16 sps:$4 sm:$0xff]  }
 0x221   :  { %v648_v25 = vadd.f32 %v647_v19, %v7366_v21  ;;  %v761_v26 = vadd.f32 %v760_v20, %v7369_v22  ;;  %2274 = vmatpush2.bf16.msra.mxu1 %v6839_v55  ;;  %v827_v28 = vmax.f32 %v646_v6, 0.0  ;;  %v829_v29 = vmax.f32 %v759_v7, 0.0  ;;  %2387 = vmatpush2.bf16.msra.mxu0 %v6842_v3 }
 0x222   :  { %v651_v30 = vpop.f32.mrf.mxu1  ;;  %v764_v31 = vpop.f32.mrf.mxu0  ;;  %2275 = vmatprep.subr.bf16.mxu1 %v6847_v4  ;;  %2388 = vmatprep.subr.bf16.mxu0 %v6850_v8  ;;  %v6854_v4 = vld [vmem:[#allocation10 + $0x3a8] ss:$16 sps:$4 sm:$0xff]  }
 0x223   :  { %v828_v40 = vmax.f32 %v648_v25, 0.0  ;;  %v830_v41 = vmax.f32 %v761_v26, 0.0  ;;  %v7489_v55 = vpack.c.bf16 %v827_v28, %v823_v42  ;;  %v7491_v61 = vpack.c.bf16 %v829_v29, %v825_v43  ;;  %v6857_v28 = vld [vmem:[#allocation10 + $0x188] ss:$16 sps:$4 sm:$0xff]  }
 0x224   :  { %v653_v44 = vpop.f32.mrf.mxu1  ;;  %v766_v45 = vpop.f32.mrf.mxu0  ;;  %v652_v18 = vadd.f32 %v651_v30, %v7372_v23  ;;  %v765_v19 = vadd.f32 %v764_v31, %v7375_v24  ;;  %v6860_v31 = vld [vmem:[#allocation10 + $0x388] ss:$16 sps:$4 sm:$0xff]  }
 0x225   :  { %2276 = vmatpush2.bf16.msra.mxu1 %v6845_v27  ;;  %v7485_v47 = vpack.c.bf16 %v828_v40, %v824_v37  ;;  %v7487_v49 = vpack.c.bf16 %v830_v41, %v826_v39  ;;  %v654_v60 = vadd.f32 %v653_v44, %v7366_v21  ;;  %2389 = vmatpush2.bf16.msra.mxu0 %v6848_v33  ;;  %v6865_v37 = vld [vmem:[#allocation10 + $0x16c] ss:$16 sps:$4 sm:$0xff]  }
 0x226   :  { %v655_v0 = vpop.f32.mrf.mxu1  ;;  %v768_v3 = vpop.f32.mrf.mxu0  ;;  %2277 = vmatprep.subr.bf16.mxu1 %v6853_v36  ;;  %v767_v6 = vadd.f32 %v766_v45, %v7369_v22  ;;  %2390 = vmatprep.subr.bf16.mxu0 %v6856_v46  ;;  %v831_v43 = vmax.f32 %v652_v18, 0.0  ;;  %v833_v44 = vmax.f32 %v765_v19, 0.0  ;;  %v6871_v18 = vld [vmem:[#allocation10 + $0x14c] ss:$16 sps:$4 sm:$0xff]  }
 0x227   :  { %v656_v7 = vadd.f32 %v655_v0, %v7372_v23  ;;  %v769_v8 = vadd.f32 %v768_v3, %v7375_v24  ;;  %2113 = vmatprep.mubr.bf16.mxu1 %v7485_v47  ;;  %2226 = vmatprep.mubr.bf16.mxu0 %v7487_v49  ;;  %v832_v39 = vmax.f32 %v654_v60, 0.0  ;;  %v6868_v0 = vld [vmem:[#allocation10 + $0x36c] ss:$16 sps:$4 sm:$0xff]  }
 0x228   :  { %v657_v20 = vpop.f32.mrf.mxu1  ;;  %v770_v25 = vpop.f32.mrf.mxu0  ;;  %2114 = vmatmul.mubr.bf16.gmra.mxu1 %v7489_v55  ;;  %2227 = vmatmul.mubr.bf16.gmra.mxu0 %v7491_v61  ;;  %v834_v40 = vmax.f32 %v767_v6, 0.0 }
 0x229   :  { %v658_v26 = vadd.f32 %v657_v20, %v7366_v21  ;;  %v771_v27 = vadd.f32 %v770_v25, %v7369_v22  ;;  %2278 = vmatpush2.bf16.msra.mxu1 %v6851_v50  ;;  %v835_v29 = vmax.f32 %v656_v7, 0.0  ;;  %v837_v33 = vmax.f32 %v769_v8, 0.0  ;;  %2391 = vmatpush2.bf16.msra.mxu0 %v6854_v4  ;;  %v6863_v4 = vld [vmem:[#allocation10 + $0x168] ss:$16 sps:$4 sm:$0xff]  }
 0x22a   :  { %v661_v36 = vpop.f32.mrf.mxu1  ;;  %v774_v30 = vpop.f32.mrf.mxu0  ;;  %2279 = vmatprep.subr.bf16.mxu1 %v6859_v5  ;;  %2392 = vmatprep.subr.bf16.mxu0 %v6862_v11  ;;  %v6866_v11 = vld [vmem:[#allocation10 + $0x368] ss:$16 sps:$4 sm:$0xff]  }
 0x22b   :  { %v836_v41 = vmax.f32 %v658_v26, 0.0  ;;  %v838_v42 = vmax.f32 %v771_v27, 0.0  ;;  %v7509_v7 = vpack.c.bf16 %v835_v29, %v831_v43  ;;  %v7511_v5 = vpack.c.bf16 %v837_v33, %v833_v44  ;;  %v6874_v26 = vld [vmem:[#allocation10 + $0x34c] ss:$16 sps:$4 sm:$0xff]  }
 0x22c   :  { %v663_v45 = vpop.f32.mrf.mxu1  ;;  %v776_v46 = vpop.f32.mrf.mxu0  ;;  %v662_v27 = vadd.f32 %v661_v36, %v7372_v23  ;;  %v775_v33 = vadd.f32 %v774_v30, %v7375_v24  ;;  %v6877_v36 = vld [vmem:[#allocation10 + $0x12c] ss:$16 sps:$4 sm:$0xff]  }
 0x22d   :  { %2280 = vmatpush2.bf16.msra.mxu1 %v6857_v28  ;;  %v7505_v50 = vpack.c.bf16 %v836_v41, %v832_v39  ;;  %v7507_v3 = vpack.c.bf16 %v838_v42, %v834_v40  ;;  %v664_v60 = vadd.f32 %v663_v45, %v7366_v21  ;;  %2393 = vmatpush2.bf16.msra.mxu0 %v6860_v31  ;;  %v6869_v39 = vld [vmem:[#allocation10 + $0x148] ss:$16 sps:$4 sm:$0xff]   ;;  %v6880_v30 = vld [vmem:[#allocation10 + $0x32c] ss:$16 sps:$4 sm:$0xff]  }
 0x22e   :  { %v665_v6 = vpop.f32.mrf.mxu1  ;;  %v778_v8 = vpop.f32.mrf.mxu0  ;;  %2281 = vmatprep.subr.bf16.mxu1 %v6865_v37  ;;  %v777_v19 = vadd.f32 %v776_v46, %v7369_v22  ;;  %2394 = vmatprep.subr.bf16.mxu0 %v6868_v0  ;;  %v6875_v0 = vld [vmem:[#allocation10 + $0x128] ss:$16 sps:$4 sm:$0xff]  }
 0x22f   :  { %v666_v20 = vadd.f32 %v665_v6, %v7372_v23  ;;  %v779_v25 = vadd.f32 %v778_v8, %v7375_v24  ;;  %2123 = vmatprep.mubr.bf16.mxu1 %v7505_v50  ;;  %2236 = vmatprep.mubr.bf16.mxu0 %v7507_v3  ;;  %v840_v40 = vmax.f32 %v664_v60, 0.0  ;;  %v6872_v23 = vld [vmem:[#allocation10 + $0x348] ss:$16 sps:$4 sm:$0xff]   ;;  %v839_v24 = vmax.f32 %v662_v27, 0.0  ;;  %v6883_v8 = vld [vmem:[#allocation10 + $0x10c] ss:$16 sps:$4 sm:$0xff]  }
 0x230   :  { %v667_v28 = vpop.f32.mrf.mxu1  ;;  %v780_v29 = vpop.f32.mrf.mxu0  ;;  %2124 = vmatmul.mubr.bf16.gmra.mxu1 %v7509_v7  ;;  %2237 = vmatmul.mubr.bf16.gmra.mxu0 %v7511_v5  ;;  %v842_v42 = vmax.f32 %v777_v19, 0.0  ;;  %v6878_v60 = vld [vmem:[#allocation10 + $0x328] ss:$16 sps:$4 sm:$0xff]  }
 0x231   :  { %v668_v31 = vadd.f32 %v667_v28, %v7366_v21  ;;  %v781_v37 = vadd.f32 %v780_v29, %v7369_v22  ;;  %2282 = vmatpush2.bf16.msra.mxu1 %v6863_v4  ;;  %v843_v41 = vmax.f32 %v666_v20, 0.0  ;;  %2395 = vmatpush2.bf16.msra.mxu0 %v6866_v11  ;;  %v845_v43 = vmax.f32 %v779_v25, 0.0  ;;  %v6886_v11 = vld [vmem:[#allocation10 + $0x30c] ss:$16 sps:$4 sm:$0xff]   ;;  %v6884_v19 = vld [vmem:[#allocation10 + $0x308] ss:$16 sps:$4 sm:$0xff]  }
 0x232   :  { %2283 = vmatprep.subr.bf16.mxu1 %v6871_v18  ;;  %2396 = vmatprep.subr.bf16.mxu0 %v6874_v26  ;;  %v841_v21 = vmax.f32 %v775_v33, 0.0  ;;  %v6881_v18 = vld [vmem:[#allocation10 + $0x108] ss:$16 sps:$4 sm:$0xff]  }
 0x233   :  { %v844_v44 = vmax.f32 %v668_v31, 0.0  ;;  %v846_v45 = vmax.f32 %v781_v37, 0.0  ;;  %v6360_v4 = vpack.c.bf16 %v843_v41, %v839_v24 }
 0x234   :  { %v6362_v6 = vpack.c.bf16 %v845_v43, %v841_v21 }
 0x235   :  { %2284 = vmatpush2.bf16.msra.mxu1 %v6869_v39  ;;  %v6361_v22 = vpack.c.bf16 %v844_v44, %v840_v40  ;;  %v6363_v46 = vpack.c.bf16 %v846_v45, %v842_v42  ;;  %2397 = vmatpush2.bf16.msra.mxu0 %v6872_v23 }
 0x236   :  { %2285 = vmatprep.subr.bf16.mxu1 %v6877_v36  ;;  %2398 = vmatprep.subr.bf16.mxu0 %v6880_v30 }
 0x237   :  { %2133 = vmatprep.mubr.bf16.mxu1 %v6361_v22  ;;  %2246 = vmatprep.mubr.bf16.mxu0 %v6363_v46 }
 0x238   :  { %2134 = vmatmul.mubr.bf16.gmra.mxu1 %v6360_v4  ;;  %2247 = vmatmul.mubr.bf16.gmra.mxu0 %v6362_v6 }
 0x239   :  { %2286 = vmatpush2.bf16.msra.mxu1 %v6875_v0  ;;  %2289 = vmatprep.mubr.bf16.mxu1 %v7385_v52 }
 0x23a   :  { %2399 = vmatpush2.bf16.msra.mxu0 %v6878_v60  ;;  %2402 = vmatprep.mubr.bf16.mxu0 %v7387_v53 }
 0x23b   :  { %2287 = vmatprep.subr.bf16.mxu1 %v6883_v8  ;;  %2400 = vmatprep.subr.bf16.mxu0 %v6886_v11 }
 0x23d   :  { %2288 = vmatpush2.bf16.msra.mxu1 %v6881_v18 }
 0x23e   :  { %2401 = vmatpush2.bf16.msra.mxu0 %v6884_v19 }
 0x240   :  { %2290 = vmatmul.mubr.bf16.vlgmr.msra.gmra.mxu1 %v7389_v56 }
 0x241   :  { %2403 = vmatmul.mubr.bf16.vlgmr.msra.gmra.mxu0 %v7391_v57  ;;  %2299 = vmatprep.mubr.bf16.mxu1 %v7405_v32 }
 0x242   :  { %2412 = vmatprep.mubr.bf16.mxu0 %v7411_v38 }
 0x248   :  { %2300 = vmatmul.mubr.bf16.gmra.mxu1 %v7407_v34 }
 0x249   :  { %2413 = vmatmul.mubr.bf16.gmra.mxu0 %v7409_v35  ;;  %2309 = vmatprep.mubr.bf16.mxu1 %v7425_v9 }
 0x24a   :  { %2422 = vmatprep.mubr.bf16.mxu0 %v7427_v10 }
 0x250   :  { %2310 = vmatmul.mubr.bf16.gmra.mxu1 %v7429_v12 }
 0x251   :  { %2423 = vmatmul.mubr.bf16.gmra.mxu0 %v7431_v13  ;;  %2319 = vmatprep.mubr.bf16.mxu1 %v7445_v62 }
 0x252   :  { %2432 = vmatprep.mubr.bf16.mxu0 %v7447_v63 }
 0x258   :  { %2320 = vmatmul.mubr.bf16.gmra.mxu1 %v7449_v1 }
 0x259   :  { %2433 = vmatmul.mubr.bf16.gmra.mxu0 %v7451_v2  ;;  %2329 = vmatprep.mubr.bf16.mxu1 %v7465_v51 }
 0x25a   :  { %2442 = vmatprep.mubr.bf16.mxu0 %v7467_v54 }
 0x260   :  { %2330 = vmatmul.mubr.bf16.gmra.mxu1 %v7469_v58 }
 0x261   :  { %2443 = vmatmul.mubr.bf16.gmra.mxu0 %v7471_v59  ;;  %2339 = vmatprep.mubr.bf16.mxu1 %v7485_v47 }
 0x262   :  { %2452 = vmatprep.mubr.bf16.mxu0 %v7487_v49 }
 0x268   :  { %2340 = vmatmul.mubr.bf16.gmra.mxu1 %v7489_v55 }
 0x269   :  { %2453 = vmatmul.mubr.bf16.gmra.mxu0 %v7491_v61  ;;  %2349 = vmatprep.mubr.bf16.mxu1 %v7505_v50 }
 0x26a   :  { %2462 = vmatprep.mubr.bf16.mxu0 %v7507_v3 }
 0x270   :  { %2350 = vmatmul.mubr.bf16.gmra.mxu1 %v7509_v7 }
 0x271   :  { %2463 = vmatmul.mubr.bf16.gmra.mxu0 %v7511_v5  ;;  %2359 = vmatprep.mubr.bf16.mxu1 %v6361_v22 }
 0x272   :  { %2472 = vmatprep.mubr.bf16.mxu0 %v6363_v46 }
 0x278   :  { %2360 = vmatmul.mubr.bf16.gmra.mxu1 %v6360_v4 }
 0x279   :  { %2473 = vmatmul.mubr.bf16.gmra.mxu0 %v6362_v6  ;;  %2569 = vmatprep.mubr.bf16.mxu1 %v8571_v48 }
 0x27a   :  { %2682 = vmatprep.mubr.bf16.mxu0 %v8571_v48 }
 0x2c0   :  { %v2065_v52 = vpop.f32.mrf.mxu1  ;;  %v2178_v53 = vpop.f32.mrf.mxu0 }
 0x2c1   :  { %v7555_v56 = vadd.f32 %v2178_v53, %v2065_v52 }
 0x2c2   :  { %v2067_v57 = vpop.f32.mrf.mxu1  ;;  %v2180_v32 = vpop.f32.mrf.mxu0 }
 0x2c3   :  { %8604 = vst [vmem:[#allocation21_spill] sm:$0xff] %v7555_v56  ;;  %v7557_v34 = vadd.f32 %v2180_v32, %v2067_v57 }
 0x2c4   :  { %v2069_v35 = vpop.f32.mrf.mxu1  ;;  %v2182_v38 = vpop.f32.mrf.mxu0 }
 0x2c5   :  { %8605 = vst [vmem:[#allocation22_spill] sm:$0xff] %v7557_v34  ;;  %v7559_v9 = vadd.f32 %v2182_v38, %v2069_v35 }
 0x2c6   :  { %v7561_v10 = vpop.f32.mrf.mxu1  ;;  %v7563_v12 = vpop.f32.mrf.mxu0 }
 0x2c7   :  { %8606 = vst [vmem:[#allocation23_spill] sm:$0xff] %v7559_v9  ;;  %8607 = vst [vmem:[#allocation24_spill] sm:$0xff] %v7561_v10 }
 0x2c8   :  { %8608 = vst [vmem:[#allocation25_spill] sm:$0xff] %v7563_v12  ;;  %v2075_v62 = vpop.f32.mrf.mxu1  ;;  %v2188_v63 = vpop.f32.mrf.mxu0 }
 0x2c9   :  { %v7567_v1 = vadd.f32 %v2188_v63, %v2075_v62 }
 0x2ca   :  { %v2077_v2 = vpop.f32.mrf.mxu1  ;;  %v2190_v51 = vpop.f32.mrf.mxu0 }
 0x2cb   :  { %8609 = vst [vmem:[#allocation26_spill] sm:$0xff] %v7567_v1  ;;  %v7569_v54 = vadd.f32 %v2190_v51, %v2077_v2 }
 0x2cc   :  { %v2079_v58 = vpop.f32.mrf.mxu1  ;;  %v2192_v59 = vpop.f32.mrf.mxu0 }
 0x2cd   :  { %8610 = vst [vmem:[#allocation27_spill] sm:$0xff] %v7569_v54  ;;  %v7571_v47 = vadd.f32 %v2192_v59, %v2079_v58 }
 0x2ce   :  { %v7573_v49 = vpop.f32.mrf.mxu1  ;;  %v7575_v55 = vpop.f32.mrf.mxu0 }
 0x2cf   :  { %8611 = vst [vmem:[#allocation28_spill] sm:$0xff] %v7571_v47  ;;  %8612 = vst [vmem:[#allocation29_spill] sm:$0xff] %v7575_v55 }
 0x2d0   :  { %v2085_v50 = vpop.f32.mrf.mxu1  ;;  %v2198_v3 = vpop.f32.mrf.mxu0 }
 0x2d1   :  { %v7579_v7 = vadd.f32 %v2198_v3, %v2085_v50 }
 0x2d2   :  { %v7581_v5 = vpop.f32.mrf.mxu1  ;;  %v7583_v20 = vpop.f32.mrf.mxu0 }
 0x2d3   :  { %8613 = vst [vmem:[#allocation30_spill] sm:$0xff] %v7579_v7 }
 0x2d4   :  { %v7585_v25 = vpop.f32.mrf.mxu1  ;;  %v7587_v26 = vpop.f32.mrf.mxu0 }
 0x2d6   :  { %v7589_v27 = vpop.f32.mrf.mxu1  ;;  %v7591_v28 = vpop.f32.mrf.mxu0 }
 0x2d8   :  { %v7593_v29 = vpop.f32.mrf.mxu1  ;;  %v7595_v33 = vpop.f32.mrf.mxu0 }
 0x2da   :  { %v7597_v31 = vpop.f32.mrf.mxu1  ;;  %v7599_v37 = vpop.f32.mrf.mxu0 }
 0x2dc   :  { %v7601_v39 = vpop.f32.mrf.mxu1  ;;  %v7603_v40 = vpop.f32.mrf.mxu0 }
 0x2de   :  { %v7605_v41 = vpop.f32.mrf.mxu1  ;;  %v7607_v23 = vpop.f32.mrf.mxu0 }
 0x2e0   :  { %v7609_v36 = vpop.f32.mrf.mxu1  ;;  %v7611_v42 = vpop.f32.mrf.mxu0 }
 0x2e2   :  { %v7613_v43 = vpop.f32.mrf.mxu1  ;;  %v7615_v44 = vpop.f32.mrf.mxu0 }
 0x2e4   :  { %v7617_v45 = vpop.f32.mrf.mxu1  ;;  %v7619_v24 = vpop.f32.mrf.mxu0 }
 0x2e6   :  { %v2111_v30 = vpop.f32.mrf.mxu1  ;;  %v2224_v21 = vpop.f32.mrf.mxu0 }
 0x2e8   :  { %v2115_v22 = vpop.f32.mrf.mxu1  ;;  %v2228_v46 = vpop.f32.mrf.mxu0 }
 0x2ea   :  { %v2117_v0 = vpop.f32.mrf.mxu1  ;;  %v2230_v4 = vpop.f32.mrf.mxu0 }
 0x2ec   :  { %v2119_v60 = vpop.f32.mrf.mxu1  ;;  %v2232_v6 = vpop.f32.mrf.mxu0 }
 0x2ee   :  { %v2121_v8 = vpop.f32.mrf.mxu1  ;;  %v2234_v11 = vpop.f32.mrf.mxu0 }
 0x2ef   :  { %v2235_v10 = vadd.f32 %v2234_v11, %v2121_v8 }
 0x2f0   :  { %v2125_v18 = vpop.f32.mrf.mxu1  ;;  %v2238_v19 = vpop.f32.mrf.mxu0 }
 0x2f2   :  { %v2127_v52 = vpop.f32.mrf.mxu1  ;;  %v2240_v53 = vpop.f32.mrf.mxu0 }
 0x2f3   :  { %v2241_v56 = vadd.f32 %v2240_v53, %v2127_v52  ;;  %v8625_v52 = vld [vmem:[#allocation29_spill] sm:$0xff] }
 0x2f4   :  { %v2129_v57 = vpop.f32.mrf.mxu1  ;;  %v2242_v32 = vpop.f32.mrf.mxu0  ;;  %v2195_v53 = vadd.f32 %v8625_v52, %v7573_v49  ;;  %v6898_v52 = vld [vmem:[#allocation10 + $0x484] ss:$16 sps:$4 sm:$0xff]  }
 0x2f5   :  { %v2243_v34 = vadd.f32 %v2242_v32, %v2129_v57 }
 0x2f6   :  { %v2131_v35 = vpop.f32.mrf.mxu1  ;;  %v2244_v38 = vpop.f32.mrf.mxu0 }
 0x2f7   :  { %v2245_v13 = vadd.f32 %v2244_v38, %v2131_v35  ;;  %v2239_v35 = vadd.f32 %v2238_v19, %v2125_v18  ;;  %v2201_v18 = vadd.f32 %v7583_v20, %v7581_v5  ;;  %v8626_v20 = vld [vmem:[#allocation30_spill] sm:$0xff] }
 0x2f8   :  { %v2135_v62 = vpop.f32.mrf.mxu1  ;;  %v2248_v63 = vpop.f32.mrf.mxu0 }
 0x2f9   :  { %v2249_v14 = vadd.f32 %v2248_v63, %v2135_v62  ;;  %v2508_v7 = vpack.c.bf16 %v2245_v13, %v2241_v56 }
 0x2fa   :  { %v2137_v2 = vpop.f32.mrf.mxu1  ;;  %v2250_v51 = vpop.f32.mrf.mxu0 }
 0x2fb   :  { %v2251_v61 = vadd.f32 %v2250_v51, %v2137_v2  ;;  %v8629_v51 = vld [vmem:[#allocation27_spill] sm:$0xff] }
 0x2fc   :  { %v2139_v58 = vpop.f32.mrf.mxu1  ;;  %v2252_v59 = vpop.f32.mrf.mxu0 }
 0x2fd   :  { %v2253_v3 = vadd.f32 %v2252_v59, %v2139_v58  ;;  %v2488_v59 = vpack.c.bf16 %v2195_v53, %v8629_v51 }
 0x2fe   :  { %v2141_v50 = vpop.f32.mrf.mxu1  ;;  %v2254_v48 = vpop.f32.mrf.mxu0 }
 0x2ff   :  { %v2255_v17 = vadd.f32 %v2254_v48, %v2141_v50  ;;  %v2511_v54 = vpack.c.bf16 %v2253_v3, %v2249_v14  ;;  %v2231_v48 = vadd.f32 %v2230_v4, %v2117_v0  ;;  %v2225_v14 = vadd.f32 %v2224_v21, %v2111_v30 }
 0x300   :  { %v2291_v15 = vpop.f32.mrf.mxu1 }
 0x301   :  { %v2404_v16 = vpop.f32.mrf.mxu0  ;;  %v2512_v9 = vpack.c.bf16 %v2255_v17, %v2251_v61  ;;  %v2504_v8 = vpack.c.bf16 %v2235_v10, %v2231_v48  ;;  %v2215_v10 = vadd.f32 %v7607_v23, %v7605_v41  ;;  %v2213_v41 = vadd.f32 %v7603_v40, %v7601_v39 }
 0x302   :  { %v7621_v1 = vadd.f32 %v2404_v16, %v2291_v15  ;;  %v2293_v47 = vpop.f32.mrf.mxu1  ;;  %v2233_v15 = vadd.f32 %v2232_v6, %v2119_v60  ;;  %v2507_v16 = vpack.c.bf16 %v2243_v34, %v2239_v35  ;;  %v2223_v34 = vadd.f32 %v7619_v24, %v7617_v45  ;;  %v8630_v35 = vld [vmem:[#allocation22_spill] sm:$0xff] }
 0x303   :  { %v2406_v12 = vpop.f32.mrf.mxu0  ;;  %2537 = vmatprep.subr.bf16.mxu1 %v2512_v9  ;;  %v2205_v6 = vadd.f32 %v7591_v28, %v7589_v27  ;;  %v2203_v27 = vadd.f32 %v7587_v26, %v7585_v25  ;;  %v8627_v25 = vld [vmem:[#allocation24_spill] sm:$0xff]  ;;  %v8628_v26 = vld [vmem:[#allocation25_spill] sm:$0xff] }
 0x304   :  { %8614 = vst [vmem:[#allocation31_spill] sm:$0xff] %v7621_v1  ;;  %v7623_v55 = vadd.f32 %v2406_v12, %v2293_v47  ;;  %v2295_v58 = vpop.f32.mrf.mxu1  ;;  %2538 = vmatpush1.bf16.msra.mxu1 %v2511_v54  ;;  %v2229_v12 = vadd.f32 %v2228_v46, %v2115_v22  ;;  %v2221_v54 = vadd.f32 %v7615_v44, %v7613_v43 }
 0x305   :  { %v2408_v38 = vpop.f32.mrf.mxu0  ;;  %2539 = vmatprep.subr.bf16.mxu1 %v2508_v7  ;;  %v2219_v46 = vadd.f32 %v7611_v42, %v7609_v36  ;;  %v2211_v44 = vadd.f32 %v7599_v37, %v7597_v31  ;;  %v2209_v31 = vadd.f32 %v7595_v33, %v7593_v29  ;;  %v2492_v29 = vpack.c.bf16 %v2205_v6, %v2201_v18  ;;  %v6890_v6 = vld [vmem:[#allocation10 + $0x4c0] ss:$16 sps:$4 sm:$0xff]   ;;  %v7748_v42 = vld [vmem:[#allocation3 + $0x18] sm:$0xff]  }
 0x306   :  { %8615 = vst [vmem:[#allocation32_spill] sm:$0xff] %v7623_v55  ;;  %v7625_v62 = vadd.f32 %v2408_v38, %v2295_v58  ;;  %v7627_v17 = vpop.f32.mrf.mxu1  ;;  %v2503_v0 = vpack.c.bf16 %v2233_v15, %v2229_v12  ;;  %v2500_v21 = vpack.c.bf16 %v2225_v14, %v2221_v54  ;;  %v2491_v32 = vpack.c.bf16 %v2203_v27, %v8626_v20  ;;  %v8632_v14 = vld [vmem:[#allocation26_spill] sm:$0xff]  ;;  %v6889_v12 = vld [vmem:[#allocation10 + $0x4e4] ss:$16 sps:$4 sm:$0xff]   ;;  %v6893_v27 = vld [vmem:[#allocation10 + $0x4a0] ss:$16 sps:$4 sm:$0xff]  }
 0x307   :  { %8617 = vst [vmem:[#allocation34_spill] sm:$0xff] %v7627_v17  ;;  %v7629_v61 = vpop.f32.mrf.mxu0  ;;  %v2499_v23 = vpack.c.bf16 %v2223_v34, %v2219_v46  ;;  %v2496_v36 = vpack.c.bf16 %v2215_v10, %v2211_v44  ;;  %v2495_v28 = vpack.c.bf16 %v2213_v41, %v2209_v31  ;;  %v2185_v2 = vadd.f32 %v8628_v26, %v8627_v25  ;;  %v8634_v34 = vld [vmem:[#allocation23_spill] sm:$0xff] }
 0x308   :  { %8616 = vst [vmem:[#allocation33_spill] sm:$0xff] %v7625_v62  ;;  %8618 = vst [vmem:[#allocation35_spill] sm:$0xff] %v7629_v61  ;;  %v2301_v9 = vpop.f32.mrf.mxu1  ;;  %2540 = vmatpush1.bf16.msra.mxu1 %v2507_v16  ;;  %v8631_v16 = vld [vmem:[#allocation28_spill] sm:$0xff]  ;;  %v6887_v10 = vld [vmem:[#allocation10 + $0x4e0] ss:$16 sps:$4 sm:$0xff]  }
 0x309   :  { %v2414_v13 = vpop.f32.mrf.mxu0  ;;  %2541 = vmatprep.subr.bf16.mxu1 %v2504_v8  ;;  %v2484_v38 = vpack.c.bf16 %v2185_v2, %v8630_v35  ;;  %v8633_v8 = vpack.c.bf16 %v8631_v16, %v8632_v14  ;;  %v6896_v25 = vld [vmem:[#allocation10 + $0x480] ss:$16 sps:$4 sm:$0xff]   ;;  %v6901_v2 = vld [vmem:[#allocation10 + $0x464] ss:$16 sps:$4 sm:$0xff]   ;;  %8641 = vst [vmem:[#allocation25_spill] sm:$0xff] %v7748_v42 }
 0x30a   :  { %v7635_v47 = vadd.f32 %v2414_v13, %v2301_v9  ;;  %v2303_v7 = vpop.f32.mrf.mxu1  ;;  %v6904_v14 = vld [vmem:[#allocation10 + $0x444] ss:$16 sps:$4 sm:$0xff]   ;;  %v6911_v61 = vld [vmem:[#allocation10 + $0x5e0] ss:$16 sps:$4 sm:$0xff]  }
 0x30b   :  { %v2416_v30 = vpop.f32.mrf.mxu0 }
 0x30c   :  { %8619 = vst [vmem:[#allocation36_spill] sm:$0xff] %v7635_v47  ;;  %v7641_v4 = vadd.f32 %v2416_v30, %v2303_v7  ;;  %v2305_v22 = vpop.f32.mrf.mxu1  ;;  %2542 = vmatpush1.bf16.msra.mxu1 %v2503_v0  ;;  %v8635_v0 = vld [vmem:[#allocation21_spill] sm:$0xff] }
 0x30d   :  { %v2418_v43 = vpop.f32.mrf.mxu0  ;;  %2543 = vmatprep.subr.bf16.mxu1 %v2500_v21  ;;  %v8636_v30 = vpack.c.bf16 %v8634_v34, %v8635_v0 }
 0x30e   :  { %8620 = vst [vmem:[#allocation37_spill] sm:$0xff] %v7641_v4  ;;  %v7647_v60 = vadd.f32 %v2418_v43, %v2305_v22  ;;  %v7649_v45 = vpop.f32.mrf.mxu1  ;;  %v6892_v22 = vld [vmem:[#allocation10 + $0x4c4] ss:$16 sps:$4 sm:$0xff]   ;;  %v7716_v43 = vld [vmem:[#allocation3] sm:$0xff]  }
 0x30f   :  { %8622 = vst [vmem:[#allocation39_spill] sm:$0xff] %v7649_v45  ;;  %v7653_v24 = vpop.f32.mrf.mxu0  ;;  %8637 = vst [vmem:[#allocation29_spill] sm:$0xff] %v7716_v43  ;;  %v7752_v45 = vld [vmem:[#allocation3 + $0x20] sm:$0xff]  }
 0x310   :  { %8621 = vst [vmem:[#allocation38_spill] sm:$0xff] %v7647_v60  ;;  %8623 = vst [vmem:[#allocation40_spill] sm:$0xff] %v7653_v24  ;;  %v2311_v11 = vpop.f32.mrf.mxu1  ;;  %2544 = vmatpush1.bf16.msra.mxu1 %v2499_v23  ;;  %v8638_v23 = vmov 0  }
 0x311   :  { %v2424_v37 = vpop.f32.mrf.mxu0  ;;  %2545 = vmatprep.subr.bf16.mxu1 %v2496_v36 }
 0x312   :  { %v7663_v39 = vadd.f32 %v2424_v37, %v2311_v11  ;;  %v7665_v40 = vpop.f32.mrf.mxu1  ;;  %v6895_v11 = vld [vmem:[#allocation10 + $0x4a4] ss:$16 sps:$4 sm:$0xff]  }
 0x313   :  { %v7669_v19 = vpop.f32.mrf.mxu0 }
 0x314   :  { %8624 = vst [vmem:[#allocation41_spill] sm:$0xff] %v7663_v39  ;;  %v7673_v33 = vpop.f32.mrf.mxu1  ;;  %2546 = vmatpush1.bf16.msra.mxu1 %v2495_v28  ;;  %v6916_v39 = vld [vmem:[#allocation10 + $0x5c4] ss:$16 sps:$4 sm:$0xff]  }
 0x315   :  { %v7675_v57 = vpop.f32.mrf.mxu0  ;;  %2547 = vmatprep.subr.bf16.mxu1 %v2492_v29  ;;  %v7736_v29 = vld [vmem:[#allocation3 + $0x8] sm:$0xff]  }
 0x316   :  { %v7677_v5 = vpop.f32.mrf.mxu1  ;;  %8639 = vst [vmem:[#allocation30_spill] sm:$0xff] %v7736_v29 }
 0x317   :  { %v7680_v63 = vpop.f32.mrf.mxu0 }
 0x318   :  { %v7685_v50 = vpop.f32.mrf.mxu1  ;;  %2548 = vmatpush1.bf16.msra.mxu1 %v2491_v32 }
 0x319   :  { %v7687_v49 = vpop.f32.mrf.mxu0  ;;  %2549 = vmatprep.subr.bf16.mxu1 %v2488_v59 }
 0x31a   :  { %v7689_v3 = vpop.f32.mrf.mxu1 }
 0x31b   :  { %v7691_v58 = vpop.f32.mrf.mxu0 }
 0x31c   :  { %v7694_v48 = vpop.f32.mrf.mxu1  ;;  %2550 = vmatpush1.bf16.msra.mxu1 %v8633_v8 }
 0x31d   :  { %v7696_v15 = vpop.f32.mrf.mxu0  ;;  %2551 = vmatprep.subr.bf16.mxu1 %v2484_v38  ;;  %v6899_v38 = vld [vmem:[#allocation10 + $0x460] ss:$16 sps:$4 sm:$0xff]  }
 0x31e   :  { %v7701_v9 = vpop.f32.mrf.mxu1 }
 0x31f   :  { %v7703_v13 = vpop.f32.mrf.mxu0 }
 0x320   :  { %v7705_v54 = vpop.f32.mrf.mxu1  ;;  %2552 = vmatpush1.bf16.msra.mxu1 %v8636_v30  ;;  %v6902_v30 = vld [vmem:[#allocation10 + $0x440] ss:$16 sps:$4 sm:$0xff]  }
 0x321   :  { %v7707_v7 = vpop.f32.mrf.mxu0  ;;  %4012 = vmatprep.subr.bf16.mxu1 %v6889_v12  ;;  %v7744_v12 = vld [vmem:[#allocation3 + $0x10] sm:$0xff]  }
 0x322   :  { %v7712_v21 = vpop.f32.mrf.mxu1  ;;  %8640 = vst [vmem:[#allocation24_spill] sm:$0xff] %v7744_v12 }
 0x323   :  { %v7714_v46 = vpop.f32.mrf.mxu0  ;;  %2570 = vmatmul.mubr.bf16.vlgmr.msra.gmra.mxu1 %v7716_v43  ;;  %v6913_v43 = vld [vmem:[#allocation10 + $0x5e4] ss:$16 sps:$4 sm:$0xff]  }
 0x324   :  { %v7719_v44 = vpop.f32.mrf.mxu1  ;;  %2579 = vmatprep.mubr.bf16.mxu1 %v8638_v23  ;;  %4013 = vmatpush1.bf16.msra.mxu1 %v6887_v10 }
 0x325   :  { %v7721_v41 = vpop.f32.mrf.mxu0  ;;  %4014 = vmatprep.subr.bf16.mxu1 %v6892_v22  ;;  %v6907_v22 = vld [vmem:[#allocation10 + $0x424] ss:$16 sps:$4 sm:$0xff]  }
 0x326   :  { %v7724_v36 = vpop.f32.mrf.mxu1 }
 0x327   :  { %v7726_v31 = vpop.f32.mrf.mxu0 }
 0x328   :  { %v7728_v37 = vpop.f32.mrf.mxu1  ;;  %4015 = vmatpush1.bf16.msra.mxu1 %v6890_v6 }
 0x329   :  { %v7730_v18 = vpop.f32.mrf.mxu0  ;;  %4016 = vmatprep.subr.bf16.mxu1 %v6895_v11 }
 0x32a   :  { %v7732_v28 = vpop.f32.mrf.mxu1 }
 0x32b   :  { %v7734_v53 = vpop.f32.mrf.mxu0  ;;  %2580 = vmatmul.mubr.bf16.gmra.mxu1 %v7736_v29 }
 0x32c   :  { %v7739_v20 = vpop.f32.mrf.mxu1  ;;  %2589 = vmatprep.mubr.bf16.mxu1 %v8638_v23  ;;  %4017 = vmatpush1.bf16.msra.mxu1 %v6893_v27 }
 0x32d   :  { %v7741_v32 = vpop.f32.mrf.mxu0  ;;  %4018 = vmatprep.subr.bf16.mxu1 %v6898_v52  ;;  %v6905_v52 = vld [vmem:[#allocation10 + $0x420] ss:$16 sps:$4 sm:$0xff]  }
 0x32e   :  { %v2347_v26 = vpop.f32.mrf.mxu1 }
 0x32f   :  { %v2460_v51 = vpop.f32.mrf.mxu0 }
 0x330   :  { %v2351_v59 = vpop.f32.mrf.mxu1  ;;  %4019 = vmatpush1.bf16.msra.mxu1 %v6896_v25  ;;  %v2461_v24 = vadd.f32 %v2460_v51, %v2347_v26  ;;  %v8648_v26 = vld [vmem:[#allocation32_spill] sm:$0xff] }
 0x331   :  { %v2464_v35 = vpop.f32.mrf.mxu0  ;;  %4020 = vmatprep.subr.bf16.mxu1 %v6901_v2  ;;  %v6910_v2 = vld [vmem:[#allocation10 + $0x404] ss:$16 sps:$4 sm:$0xff]  }
 0x332   :  { %v2353_v16 = vpop.f32.mrf.mxu1 }
 0x333   :  { %v2466_v8 = vpop.f32.mrf.mxu0  ;;  %2590 = vmatmul.mubr.bf16.gmra.mxu1 %v7744_v12 }
 0x334   :  { %v2355_v34 = vpop.f32.mrf.mxu1  ;;  %2599 = vmatprep.mubr.bf16.mxu1 %v8638_v23  ;;  %4021 = vmatpush1.bf16.msra.mxu1 %v6899_v38  ;;  %v6908_v38 = vld [vmem:[#allocation10 + $0x400] ss:$16 sps:$4 sm:$0xff]   ;;  %v2467_v55 = vadd.f32 %v2466_v8, %v2353_v16  ;;  %v8650_v16 = vld [vmem:[#allocation36_spill] sm:$0xff] }
 0x335   :  { %v2468_v0 = vpop.f32.mrf.mxu0  ;;  %4022 = vmatprep.subr.bf16.mxu1 %v6904_v14 }
 0x336   :  { %v2357_v10 = vpop.f32.mrf.mxu1 }
 0x337   :  { %v2470_v6 = vpop.f32.mrf.mxu0 }
 0x338   :  { %v2361_v11 = vpop.f32.mrf.mxu1  ;;  %4023 = vmatpush1.bf16.msra.mxu1 %v6902_v30  ;;  %v2471_v62 = vadd.f32 %v2470_v6, %v2357_v10  ;;  %v8655_v10 = vld [vmem:[#allocation29_spill] sm:$0xff] }
 0x339   :  { %v2474_v27 = vpop.f32.mrf.mxu0  ;;  %4024 = vmatprep.subr.bf16.mxu1 %v6907_v22  ;;  %v6928_v6 = vld [vmem:[#allocation10 + $0x544] ss:$16 sps:$4 sm:$0xff]  }
 0x33a   :  { %v2363_v25 = vpop.f32.mrf.mxu1  ;;  %v2475_v60 = vadd.f32 %v2474_v27, %v2361_v11  ;;  %v6926_v11 = vld [vmem:[#allocation10 + $0x540] ss:$16 sps:$4 sm:$0xff]   ;;  %v6931_v27 = vld [vmem:[#allocation10 + $0x524] ss:$16 sps:$4 sm:$0xff]  }
 0x33b   :  { %v2476_v56 = vpop.f32.mrf.mxu0  ;;  %2600 = vmatmul.mubr.bf16.gmra.mxu1 %v7748_v42  ;;  %v2469_v42 = vadd.f32 %v2468_v0, %v2355_v34  ;;  %v8653_v34 = vld [vmem:[#allocation31_spill] sm:$0xff] }
 0x33c   :  { %v2365_v12 = vpop.f32.mrf.mxu1  ;;  %2609 = vmatprep.mubr.bf16.mxu1 %v8638_v23  ;;  %4025 = vmatpush1.bf16.msra.mxu1 %v6905_v52  ;;  %v2477_v47 = vadd.f32 %v2476_v56, %v2363_v25  ;;  %v2510_v52 = vpack.c.bf16 %v2471_v62, %v2467_v55  ;;  %v2457_v56 = vadd.f32 %v7734_v53, %v7732_v28  ;;  %v6919_v55 = vld [vmem:[#allocation10 + $0x5a4] ss:$16 sps:$4 sm:$0xff]   ;;  %v8643_v53 = vld [vmem:[#allocation40_spill] sm:$0xff]  ;;  %v6929_v25 = vld [vmem:[#allocation10 + $0x520] ss:$16 sps:$4 sm:$0xff]  }
 0x33d   :  { %v2478_v29 = vpop.f32.mrf.mxu0  ;;  %4026 = vmatprep.subr.bf16.mxu1 %v6910_v2  ;;  %v2451_v62 = vadd.f32 %v7726_v31, %v7724_v36  ;;  %v2449_v28 = vadd.f32 %v7721_v41, %v7719_v44  ;;  %v2441_v36 = vadd.f32 %v7703_v13, %v7701_v9  ;;  %v7770_v31 = vld [vmem:[#allocation3 + $0x28] sm:$0xff]   ;;  %v6920_v44 = vld [vmem:[#allocation10 + $0x580] ss:$16 sps:$4 sm:$0xff]   ;;  %v2439_v9 = vadd.f32 %v7696_v15, %v7694_v48 }
 0x33e   :  { %v2367_v14 = vpop.f32.mrf.mxu1  ;;  %v2479_v1 = vadd.f32 %v2478_v29, %v2365_v12  ;;  %v2465_v29 = vadd.f32 %v2464_v35, %v2351_v59  ;;  %v6925_v41 = vld [vmem:[#allocation10 + $0x564] ss:$16 sps:$4 sm:$0xff]   ;;  %v2429_v48 = vadd.f32 %v7675_v57, %v7673_v33  ;;  %v8649_v35 = vld [vmem:[#allocation38_spill] sm:$0xff] }
 0x33f   :  { %v2480_v30 = vpop.f32.mrf.mxu0  ;;  %v8647_v57 = vld [vmem:[#allocation37_spill] sm:$0xff]  ;;  %v7799_v59 = vld [vmem:[#allocation3 + $0x38] sm:$0xff]   ;;  %v8651_v8 = vpack.c.bf16 %v8649_v35, %v8650_v16  ;;  %v8656_v2 = vld [vmem:[#allocation30_spill] sm:$0xff] }
 0x340   :  { %v2481_v22 = vadd.f32 %v2480_v30, %v2367_v14  ;;  %4027 = vmatpush1.bf16.msra.mxu1 %v6908_v38  ;;  %v2513_v17 = vpack.c.bf16 %v2479_v1, %v2475_v60  ;;  %v2459_v1 = vadd.f32 %v7741_v32, %v7739_v20  ;;  %v2509_v60 = vpack.c.bf16 %v2469_v42, %v2465_v29  ;;  %v8652_v12 = vld [vmem:[#allocation33_spill] sm:$0xff]  ;;  %v8657_v29 = vld [vmem:[#allocation24_spill] sm:$0xff] }
 0x341   :  { %4028 = vmatprep.subr.bf16.mxu1 %v6913_v43  ;;  %v2447_v43 = vadd.f32 %v7714_v46, %v7712_v21  ;;  %v2445_v21 = vadd.f32 %v7707_v7, %v7705_v54  ;;  %v2437_v46 = vadd.f32 %v7691_v58, %v7689_v3  ;;  %v2435_v54 = vadd.f32 %v7687_v49, %v7685_v50  ;;  %v6923_v58 = vld [vmem:[#allocation10 + $0x560] ss:$16 sps:$4 sm:$0xff]   ;;  %v8645_v50 = vld [vmem:[#allocation34_spill] sm:$0xff]  ;;  %v6934_v38 = vld [vmem:[#allocation10 + $0x504] ss:$16 sps:$4 sm:$0xff]  }
 0x342   :  { %v2514_v4 = vpack.c.bf16 %v2481_v22, %v2477_v47  ;;  %v6914_v47 = vld [vmem:[#allocation10 + $0x5c0] ss:$16 sps:$4 sm:$0xff]   ;;  %v2427_v3 = vadd.f32 %v7669_v19, %v7665_v40  ;;  %v8654_v0 = vpack.c.bf16 %v8652_v12, %v8653_v34  ;;  %v6937_v30 = vld [vmem:[#allocation10 + $0x6e4] ss:$16 sps:$4 sm:$0xff]   ;;  %v6940_v22 = vld [vmem:[#allocation10 + $0x4ec] ss:$16 sps:$4 sm:$0xff]  }
 0x343   :  { %2610 = vmatmul.mubr.bf16.gmra.mxu1 %v7752_v45  ;;  %v2501_v13 = vpack.c.bf16 %v2449_v28, %v2445_v21  ;;  %v2497_v15 = vpack.c.bf16 %v2439_v9, %v2435_v54  ;;  %v8642_v7 = vld [vmem:[#allocation39_spill] sm:$0xff]  ;;  %v8644_v40 = vld [vmem:[#allocation41_spill] sm:$0xff] }
 0x344   :  { %2650 = vmatprep.subr.bf16.mxu0 %v2514_v4  ;;  %2619 = vmatprep.mubr.bf16.mxu1 %v8638_v23  ;;  %v2506_v4 = vpack.c.bf16 %v2461_v24, %v2457_v56  ;;  %v2502_v24 = vpack.c.bf16 %v2451_v62, %v2447_v43  ;;  %v2421_v20 = vadd.f32 %v8643_v53, %v8642_v7  ;;  %v8646_v49 = vld [vmem:[#allocation35_spill] sm:$0xff]  ;;  %v7033_v53 = vld [vmem:[#allocation10 + $0x6ec] ss:$16 sps:$4 sm:$0xff]  }
 0x345   :  { %2651 = vmatpush1.bf16.msra.mxu0 %v2513_v17  ;;  %4029 = vmatpush2.bf16.msra.mxu1 %v6911_v61  ;;  %v2455_v17 = vadd.f32 %v7730_v18, %v7728_v37  ;;  %v6917_v61 = vld [vmem:[#allocation10 + $0x5a0] ss:$16 sps:$4 sm:$0xff]   ;;  %v2431_v37 = vadd.f32 %v7680_v63, %v7677_v5  ;;  %v2498_v18 = vpack.c.bf16 %v2441_v36, %v2437_v46  ;;  %v6943_v56 = vld [vmem:[#allocation10 + $0x6c4] ss:$16 sps:$4 sm:$0xff]  }
 0x346   :  { %2652 = vmatprep.subr.bf16.mxu0 %v2510_v52  ;;  %4030 = vmatprep.subr.bf16.mxu1 %v6916_v39  ;;  %v6922_v39 = vld [vmem:[#allocation10 + $0x584] ss:$16 sps:$4 sm:$0xff]   ;;  %v7790_v63 = vld [vmem:[#allocation3 + $0x30] sm:$0xff]   ;;  %v2493_v19 = vpack.c.bf16 %v2429_v48, %v8644_v40  ;;  %v2411_v33 = vadd.f32 %v8646_v49, %v8645_v50  ;;  %v2490_v32 = vpack.c.bf16 %v2421_v20, %v8647_v57  ;;  %v7826_v20 = vld [vmem:[%s8567_s5] sm:$0xf] }
 0x347   :  { %v2505_v42 = vpack.c.bf16 %v2459_v1, %v2455_v17  ;;  %v2494_v5 = vpack.c.bf16 %v2431_v37, %v2427_v3  ;;  %v6932_v14 = vld [vmem:[#allocation10 + $0x500] ss:$16 sps:$4 sm:$0xff]   ;;  %v6949_v1 = vld [vmem:[#allocation10 + $0x6a4] ss:$16 sps:$4 sm:$0xff]  }
 0x348   :  { %v2486_v51 = vpack.c.bf16 %v2411_v33, %v8648_v26  ;;  %v6935_v52 = vld [vmem:[#allocation10 + $0x6e0] ss:$16 sps:$4 sm:$0xff]   ;;  %v6955_v62 = vld [vmem:[#allocation10 + $0x684] ss:$16 sps:$4 sm:$0xff]  }
 0x349   :  { %2653 = vmatpush1.bf16.msra.mxu0 %v2509_v60  ;;  %4031 = vmatpush2.bf16.msra.mxu1 %v6914_v47  ;;  %v6941_v47 = vld [vmem:[#allocation10 + $0x6c0] ss:$16 sps:$4 sm:$0xff]   ;;  %v6961_v17 = vld [vmem:[#allocation10 + $0x664] ss:$16 sps:$4 sm:$0xff]  }
 0x34a   :  { %2654 = vmatprep.subr.bf16.mxu0 %v2506_v4  ;;  %4032 = vmatprep.subr.bf16.mxu1 %v6919_v55  ;;  %v6947_v60 = vld [vmem:[#allocation10 + $0x6a0] ss:$16 sps:$4 sm:$0xff]   ;;  %v6979_v36 = vld [vmem:[#allocation10 + $0x604] ss:$16 sps:$4 sm:$0xff]  }
 0x34b   :  { %2620 = vmatmul.mubr.bf16.gmra.mxu1 %v7770_v31  ;;  %v8658_v55 = vld [vmem:[#allocation25_spill] sm:$0xff] }
 0x34c   :  { %2629 = vmatprep.mubr.bf16.mxu1 %v8638_v23  ;;  %v6953_v4 = vld [vmem:[#allocation10 + $0x680] ss:$16 sps:$4 sm:$0xff]   ;;  %v6991_v46 = vld [vmem:[#allocation10 + $0x7c4] ss:$16 sps:$4 sm:$0xff]  }
 0x34d   :  { %2655 = vmatpush1.bf16.msra.mxu0 %v2505_v42  ;;  %4033 = vmatpush2.bf16.msra.mxu1 %v6917_v61  ;;  %v6959_v43 = vld [vmem:[#allocation10 + $0x660] ss:$16 sps:$4 sm:$0xff]   ;;  %v6967_v61 = vld [vmem:[#allocation10 + $0x644] ss:$16 sps:$4 sm:$0xff]  }
 0x34e   :  { %2656 = vmatprep.subr.bf16.mxu0 %v2502_v24  ;;  %4034 = vmatprep.subr.bf16.mxu1 %v6922_v39  ;;  %v6965_v28 = vld [vmem:[#allocation10 + $0x640] ss:$16 sps:$4 sm:$0xff]   ;;  %v6973_v42 = vld [vmem:[#allocation10 + $0x624] ss:$16 sps:$4 sm:$0xff]  }
 0x34f   :  { %v6971_v39 = vld [vmem:[#allocation10 + $0x620] ss:$16 sps:$4 sm:$0xff]   ;;  %v7009_v37 = vld [vmem:[#allocation10 + $0x764] ss:$16 sps:$4 sm:$0xff]  }
 0x350   :  { %v6977_v24 = vld [vmem:[#allocation10 + $0x600] ss:$16 sps:$4 sm:$0xff]   ;;  %v7015_v54 = vld [vmem:[#allocation10 + $0x744] ss:$16 sps:$4 sm:$0xff]  }
 0x351   :  { %2657 = vmatpush1.bf16.msra.mxu0 %v2501_v13  ;;  %4035 = vmatpush2.bf16.msra.mxu1 %v6920_v44  ;;  %v6983_v21 = vld [vmem:[#allocation10 + $0x7e0] ss:$16 sps:$4 sm:$0xff]   ;;  %v7003_v13 = vld [vmem:[#allocation10 + $0x784] ss:$16 sps:$4 sm:$0xff]  }
 0x352   :  { %2658 = vmatprep.subr.bf16.mxu0 %v2498_v18  ;;  %4036 = vmatprep.subr.bf16.mxu1 %v6925_v41  ;;  %v6989_v44 = vld [vmem:[#allocation10 + $0x7c0] ss:$16 sps:$4 sm:$0xff]  }
 0x353   :  { %2630 = vmatmul.mubr.bf16.gmra.mxu1 %v7790_v63  ;;  %v6995_v9 = vld [vmem:[#allocation10 + $0x7a0] ss:$16 sps:$4 sm:$0xff]  }
 0x354   :  { %2639 = vmatprep.mubr.bf16.mxu1 %v8638_v23  ;;  %v7001_v41 = vld [vmem:[#allocation10 + $0x780] ss:$16 sps:$4 sm:$0xff]  }
 0x355   :  { %2659 = vmatpush1.bf16.msra.mxu0 %v2497_v15  ;;  %4037 = vmatpush2.bf16.msra.mxu1 %v6923_v58  ;;  %v7007_v18 = vld [vmem:[#allocation10 + $0x760] ss:$16 sps:$4 sm:$0xff]   ;;  %v7021_v58 = vld [vmem:[#allocation10 + $0x724] ss:$16 sps:$4 sm:$0xff]  }
 0x356   :  { %2660 = vmatprep.subr.bf16.mxu0 %v2494_v5  ;;  %4038 = vmatprep.subr.bf16.mxu1 %v6928_v6  ;;  %v7013_v3 = vld [vmem:[#allocation10 + $0x740] ss:$16 sps:$4 sm:$0xff]   ;;  %v7027_v15 = vld [vmem:[#allocation10 + $0x704] ss:$16 sps:$4 sm:$0xff]  }
 0x357   :  { %v7019_v48 = vld [vmem:[#allocation10 + $0x720] ss:$16 sps:$4 sm:$0xff]  }
 0x358   :  { %v7025_v7 = vld [vmem:[#allocation10 + $0x700] ss:$16 sps:$4 sm:$0xff]  }
 0x359   :  { %2661 = vmatpush1.bf16.msra.mxu0 %v2493_v19  ;;  %4039 = vmatpush2.bf16.msra.mxu1 %v6926_v11  ;;  %v8659_v5 = vld [vmem:[#allocation19_spill] sm:$0xff]  ;;  %v8660_v40 = vld [vmem:[#allocation17_spill] sm:$0xff] }
 0x35a   :  { %2662 = vmatprep.subr.bf16.mxu0 %v2490_v32  ;;  %4040 = vmatprep.subr.bf16.mxu1 %v6931_v27  ;;  %v7834_v19 = vrot.slane %v7826_v20, %v8660_v40 }
 0x35b   :  { %2640 = vmatmul.mubr.bf16.gmra.mxu1 %v7799_v59 }
 0x35d   :  { %2663 = vmatpush1.bf16.msra.mxu0 %v8651_v8  ;;  %4041 = vmatpush2.bf16.msra.mxu1 %v6929_v25  ;;  %v6938_v25 = vld [vmem:[#allocation10 + $0x4e8] ss:$16 sps:$4 sm:$0xff]  }
 0x35e   :  { %2664 = vmatprep.subr.bf16.mxu0 %v2486_v51  ;;  %4042 = vmatprep.subr.bf16.mxu1 %v6934_v38  ;;  %v6946_v38 = vld [vmem:[#allocation10 + $0x4cc] ss:$16 sps:$4 sm:$0xff]  }
 0x361   :  { %2665 = vmatpush1.bf16.msra.mxu0 %v8654_v0  ;;  %4043 = vmatpush2.bf16.msra.mxu1 %v6932_v14 }
 0x362   :  { %4125 = vmatprep.subr.bf16.mxu0 %v6937_v30  ;;  %4238 = vmatprep.subr.bf16.mxu1 %v6940_v22 }
 0x364   :  { %2683 = vmatmul.mubr.bf16.vlgmr.msra.gmra.mxu0 %v8655_v10 }
 0x365   :  { %2692 = vmatprep.mubr.bf16.mxu0 %v8638_v23  ;;  %4126 = vmatpush1.bf16.msra.mxu0 %v6935_v52 }
 0x366   :  { %4127 = vmatprep.subr.bf16.mxu0 %v6943_v56 }
 0x369   :  { %4128 = vmatpush1.bf16.msra.mxu0 %v6941_v47  ;;  %v6944_v47 = vld [vmem:[#allocation10 + $0x4c8] ss:$16 sps:$4 sm:$0xff]  }
 0x36a   :  { %4129 = vmatprep.subr.bf16.mxu0 %v6949_v1 }
 0x36c   :  { %2693 = vmatmul.mubr.bf16.gmra.mxu0 %v8656_v2 }
 0x36d   :  { %2702 = vmatprep.mubr.bf16.mxu0 %v8638_v23  ;;  %4130 = vmatpush1.bf16.msra.mxu0 %v6947_v60  ;;  %v6952_v60 = vld [vmem:[#allocation10 + $0x4ac] ss:$16 sps:$4 sm:$0xff]  }
 0x36e   :  { %4131 = vmatprep.subr.bf16.mxu0 %v6955_v62 }
 0x371   :  { %4132 = vmatpush1.bf16.msra.mxu0 %v6953_v4 }
 0x372   :  { %4133 = vmatprep.subr.bf16.mxu0 %v6961_v17 }
 0x374   :  { %2703 = vmatmul.mubr.bf16.gmra.mxu0 %v8657_v29 }
 0x375   :  { %2712 = vmatprep.mubr.bf16.mxu0 %v8638_v23  ;;  %4134 = vmatpush1.bf16.msra.mxu0 %v6959_v43 }
 0x376   :  { %4135 = vmatprep.subr.bf16.mxu0 %v6967_v61 }
 0x379   :  { %4136 = vmatpush1.bf16.msra.mxu0 %v6965_v28  ;;  %v6950_v28 = vld [vmem:[#allocation10 + $0x4a8] ss:$16 sps:$4 sm:$0xff]  }
 0x37a   :  { %4137 = vmatprep.subr.bf16.mxu0 %v6973_v42 }
 0x37c   :  { %2713 = vmatmul.mubr.bf16.gmra.mxu0 %v8658_v55 }
 0x37d   :  { %2722 = vmatprep.mubr.bf16.mxu0 %v8638_v23  ;;  %4138 = vmatpush1.bf16.msra.mxu0 %v6971_v39  ;;  %v6958_v39 = vld [vmem:[#allocation10 + $0x48c] ss:$16 sps:$4 sm:$0xff]  }
 0x37e   :  { %4139 = vmatprep.subr.bf16.mxu0 %v6979_v36 }
 0x381   :  { %4140 = vmatpush1.bf16.msra.mxu0 %v6977_v24 }
 0x384   :  { %2723 = vmatmul.mubr.bf16.gmra.mxu0 %v7752_v45  ;;  %v6985_v45 = vld [vmem:[#allocation10 + $0x7e4] ss:$16 sps:$4 sm:$0xff]  }
 0x385   :  { %2732 = vmatprep.mubr.bf16.mxu0 %v8638_v23  ;;  %4141 = vmatprep.subr.bf16.mxu0 %v6985_v45 }
 0x386   :  { %4142 = vmatpush2.bf16.msra.mxu0 %v6983_v21 }
 0x387   :  { %4143 = vmatprep.subr.bf16.mxu0 %v6991_v46 }
 0x38a   :  { %4144 = vmatpush2.bf16.msra.mxu0 %v6989_v44 }
 0x38c   :  { %2733 = vmatmul.mubr.bf16.gmra.mxu0 %v7770_v31  ;;  %v6997_v31 = vld [vmem:[#allocation10 + $0x7a4] ss:$16 sps:$4 sm:$0xff]  }
 0x38d   :  { %2742 = vmatprep.mubr.bf16.mxu0 %v8638_v23  ;;  %4145 = vmatprep.subr.bf16.mxu0 %v6997_v31  ;;  %v6956_v31 = vld [vmem:[#allocation10 + $0x488] ss:$16 sps:$4 sm:$0xff]  }
 0x38e   :  { %4146 = vmatpush2.bf16.msra.mxu0 %v6995_v9 }
 0x38f   :  { %4147 = vmatprep.subr.bf16.mxu0 %v7003_v13  ;;  %v6964_v13 = vld [vmem:[#allocation10 + $0x46c] ss:$16 sps:$4 sm:$0xff]  }
 0x392   :  { %4148 = vmatpush2.bf16.msra.mxu0 %v7001_v41 }
 0x393   :  { %4149 = vmatprep.subr.bf16.mxu0 %v7009_v37 }
 0x394   :  { %2743 = vmatmul.mubr.bf16.gmra.mxu0 %v7790_v63  ;;  %v7830_v63 = vrot.slane %v7826_v20, %v8659_v5 }
 0x395   :  { %2752 = vmatprep.mubr.bf16.mxu0 %v8638_v23 }
 0x396   :  { %4150 = vmatpush2.bf16.msra.mxu0 %v7007_v18 }
 0x397   :  { %4151 = vmatprep.subr.bf16.mxu0 %v7015_v54 }
 0x39a   :  { %4152 = vmatpush2.bf16.msra.mxu0 %v7013_v3 }
 0x39b   :  { %4153 = vmatprep.subr.bf16.mxu0 %v7021_v58 }
 0x39c   :  { %2753 = vmatmul.mubr.bf16.gmra.mxu0 %v7799_v59 }
 0x39e   :  { %4154 = vmatpush2.bf16.msra.mxu0 %v7019_v48  ;;  %v6962_v48 = vld [vmem:[#allocation10 + $0x468] ss:$16 sps:$4 sm:$0xff]  }
 0x39f   :  { %4155 = vmatprep.subr.bf16.mxu0 %v7027_v15 }
 0x3a2   :  { %4156 = vmatpush2.bf16.msra.mxu0 %v7025_v7  ;;  %v6970_v7 = vld [vmem:[#allocation10 + $0x44c] ss:$16 sps:$4 sm:$0xff]  }
 0x3a3   :  { %4351 = vmatprep.subr.bf16.mxu0 %v7033_v53 }
 0x3e3   :  { %v2571_v50 = vpop.f32.mrf.mxu1 }
 0x3e4   :  { %v2572_v49 = vadd.f32 %v2571_v50, %v7830_v63 }
 0x3e5   :  { %v2573_v33 = vpop.f32.mrf.mxu1 }
 0x3e6   :  { %v2574_v57 = vadd.f32 %v2573_v33, %v7834_v19  ;;  %v2763_v51 = vmax.f32 %v2572_v49, 0.0 }
 0x3e7   :  { %v2575_v32 = vpop.f32.mrf.mxu1 }
 0x3e8   :  { %v2576_v26 = vadd.f32 %v2575_v32, %v7830_v63  ;;  %v2764_v35 = vmax.f32 %v2574_v57, 0.0 }
 0x3e9   :  { %v2577_v59 = vpop.f32.mrf.mxu1 }
 0x3ea   :  { %v2767_v16 = vmax.f32 %v2576_v26, 0.0  ;;  %v2578_v8 = vadd.f32 %v2577_v59, %v7834_v19  ;;  %v6968_v26 = vld [vmem:[#allocation10 + $0x448] ss:$16 sps:$4 sm:$0xff]   ;;  %v6976_v59 = vld [vmem:[#allocation10 + $0x42c] ss:$16 sps:$4 sm:$0xff]  }
 0x3eb   :  { %v2581_v12 = vpop.f32.mrf.mxu1 }
 0x3ec   :  { %v2768_v34 = vmax.f32 %v2578_v8, 0.0  ;;  %v7840_v0 = vpack.c.bf16 %v2767_v16, %v2763_v51  ;;  %v2582_v10 = vadd.f32 %v2581_v12, %v7830_v63 }
 0x3ed   :  { %v2583_v6 = vpop.f32.mrf.mxu1 }
 0x3ee   :  { %v2584_v11 = vadd.f32 %v2583_v6, %v7834_v19  ;;  %v7844_v27 = vpack.c.bf16 %v2768_v34, %v2764_v35  ;;  %v2771_v30 = vmax.f32 %v2582_v10, 0.0  ;;  %v6974_v6 = vld [vmem:[#allocation10 + $0x428] ss:$16 sps:$4 sm:$0xff]  }
 0x3ef   :  { %v2585_v2 = vpop.f32.mrf.mxu1 }
 0x3f0   :  { %v2586_v14 = vadd.f32 %v2585_v2, %v7830_v63  ;;  %4044 = vmatprep.mubr.bf16.mxu1 %v7844_v27  ;;  %v2772_v52 = vmax.f32 %v2584_v11, 0.0 }
 0x3f1   :  { %v2587_v22 = vpop.f32.mrf.mxu1  ;;  %4045 = vmatmul.mubr.bf16.vlgmr.msra.gmra.mxu1 %v7840_v0 }
 0x3f2   :  { %v2775_v29 = vmax.f32 %v2586_v14, 0.0  ;;  %v2588_v56 = vadd.f32 %v2587_v22, %v7834_v19  ;;  %4239 = vmatpush1.bf16.msra.mxu1 %v6938_v25  ;;  %v6982_v25 = vld [vmem:[#allocation10 + $0x40c] ss:$16 sps:$4 sm:$0xff]  }
 0x3f3   :  { %v2591_v1 = vpop.f32.mrf.mxu1  ;;  %4240 = vmatprep.subr.bf16.mxu1 %v6946_v38 }
 0x3f4   :  { %v2776_v55 = vmax.f32 %v2588_v56, 0.0  ;;  %v7850_v62 = vpack.c.bf16 %v2775_v29, %v2771_v30  ;;  %v2592_v4 = vadd.f32 %v2591_v1, %v7830_v63  ;;  %v6980_v29 = vld [vmem:[#allocation10 + $0x408] ss:$16 sps:$4 sm:$0xff]  }
 0x3f5   :  { %v2593_v17 = vpop.f32.mrf.mxu1 }
 0x3f6   :  { %v2594_v43 = vadd.f32 %v2593_v17, %v7834_v19  ;;  %4241 = vmatpush1.bf16.msra.mxu1 %v6944_v47  ;;  %v7854_v61 = vpack.c.bf16 %v2776_v55, %v2772_v52  ;;  %v2779_v24 = vmax.f32 %v2592_v4, 0.0  ;;  %v6988_v47 = vld [vmem:[#allocation10 + $0x5ec] ss:$16 sps:$4 sm:$0xff]  }
 0x3f7   :  { %v2595_v42 = vpop.f32.mrf.mxu1  ;;  %4242 = vmatprep.subr.bf16.mxu1 %v6952_v60 }
 0x3f8   :  { %v2596_v36 = vadd.f32 %v2595_v42, %v7830_v63  ;;  %4054 = vmatprep.mubr.bf16.mxu1 %v7854_v61  ;;  %v2780_v21 = vmax.f32 %v2594_v43, 0.0 }
 0x3f9   :  { %v2597_v45 = vpop.f32.mrf.mxu1  ;;  %4055 = vmatmul.mubr.bf16.gmra.mxu1 %v7850_v62 }
 0x3fa   :  { %v2783_v46 = vmax.f32 %v2596_v36, 0.0  ;;  %v2598_v44 = vadd.f32 %v2597_v45, %v7834_v19  ;;  %4243 = vmatpush1.bf16.msra.mxu1 %v6950_v28  ;;  %v6986_v28 = vld [vmem:[#allocation10 + $0x5e8] ss:$16 sps:$4 sm:$0xff]  }
 0x3fb   :  { %v2601_v9 = vpop.f32.mrf.mxu1  ;;  %4244 = vmatprep.subr.bf16.mxu1 %v6958_v39  ;;  %v6994_v39 = vld [vmem:[#allocation10 + $0x5cc] ss:$16 sps:$4 sm:$0xff]  }
 0x3fc   :  { %v2784_v41 = vmax.f32 %v2598_v44, 0.0  ;;  %v7860_v37 = vpack.c.bf16 %v2783_v46, %v2779_v24  ;;  %v2602_v18 = vadd.f32 %v2601_v9, %v7830_v63 }
 0x3fd   :  { %v2603_v54 = vpop.f32.mrf.mxu1 }
 0x3fe   :  { %v2604_v3 = vadd.f32 %v2603_v54, %v7834_v19  ;;  %4245 = vmatpush1.bf16.msra.mxu1 %v6956_v31  ;;  %v7864_v58 = vpack.c.bf16 %v2784_v41, %v2780_v21  ;;  %v2787_v50 = vmax.f32 %v2602_v18, 0.0  ;;  %v6992_v31 = vld [vmem:[#allocation10 + $0x5c8] ss:$16 sps:$4 sm:$0xff]  }
 0x3ff   :  { %v2605_v15 = vpop.f32.mrf.mxu1  ;;  %4246 = vmatprep.subr.bf16.mxu1 %v6964_v13  ;;  %v7000_v13 = vld [vmem:[#allocation10 + $0x5ac] ss:$16 sps:$4 sm:$0xff]  }
 0x400   :  { %v2606_v53 = vadd.f32 %v2605_v15, %v7830_v63  ;;  %4064 = vmatprep.mubr.bf16.mxu1 %v7864_v58  ;;  %v2788_v33 = vmax.f32 %v2604_v3, 0.0 }
 0x401   :  { %v2607_v49 = vpop.f32.mrf.mxu1  ;;  %4065 = vmatmul.mubr.bf16.gmra.mxu1 %v7860_v37 }
 0x402   :  { %v2791_v57 = vmax.f32 %v2606_v53, 0.0  ;;  %v2608_v32 = vadd.f32 %v2607_v49, %v7834_v19  ;;  %4247 = vmatpush1.bf16.msra.mxu1 %v6962_v48 }
 0x403   :  { %v2611_v51 = vpop.f32.mrf.mxu1  ;;  %4248 = vmatprep.subr.bf16.mxu1 %v6970_v7  ;;  %v6998_v7 = vld [vmem:[#allocation10 + $0x5a8] ss:$16 sps:$4 sm:$0xff]  }
 0x404   :  { %v2792_v35 = vmax.f32 %v2608_v32, 0.0  ;;  %v7870_v16 = vpack.c.bf16 %v2791_v57, %v2787_v50  ;;  %v2612_v8 = vadd.f32 %v2611_v51, %v7830_v63  ;;  %v7006_v50 = vld [vmem:[#allocation10 + $0x58c] ss:$16 sps:$4 sm:$0xff]  }
 0x405   :  { %v2613_v12 = vpop.f32.mrf.mxu1 }
 0x406   :  { %v2614_v34 = vadd.f32 %v2613_v12, %v7834_v19  ;;  %4249 = vmatpush1.bf16.msra.mxu1 %v6968_v26  ;;  %v7874_v10 = vpack.c.bf16 %v2792_v35, %v2788_v33  ;;  %v2795_v38 = vmax.f32 %v2612_v8, 0.0  ;;  %v7012_v8 = vld [vmem:[#allocation10 + $0x56c] ss:$16 sps:$4 sm:$0xff]  }
 0x407   :  { %v2615_v11 = vpop.f32.mrf.mxu1  ;;  %4250 = vmatprep.subr.bf16.mxu1 %v6976_v59  ;;  %v7004_v59 = vld [vmem:[#allocation10 + $0x588] ss:$16 sps:$4 sm:$0xff]  }
 0x408   :  { %v2616_v2 = vadd.f32 %v2615_v11, %v7830_v63  ;;  %4074 = vmatprep.mubr.bf16.mxu1 %v7874_v10  ;;  %v2796_v30 = vmax.f32 %v2614_v34, 0.0 }
 0x409   :  { %v2617_v14 = vpop.f32.mrf.mxu1  ;;  %4075 = vmatmul.mubr.bf16.gmra.mxu1 %v7870_v16 }
 0x40a   :  { %v2799_v22 = vmax.f32 %v2616_v2, 0.0  ;;  %v2618_v52 = vadd.f32 %v2617_v14, %v7834_v19  ;;  %4251 = vmatpush1.bf16.msra.mxu1 %v6974_v6 }
 0x40b   :  { %v2621_v56 = vpop.f32.mrf.mxu1  ;;  %4252 = vmatprep.subr.bf16.mxu1 %v6982_v25 }
 0x40c   :  { %v2800_v1 = vmax.f32 %v2618_v52, 0.0  ;;  %v7880_v60 = vpack.c.bf16 %v2799_v22, %v2795_v38  ;;  %v2622_v55 = vadd.f32 %v2621_v56, %v7830_v63  ;;  %v7010_v38 = vld [vmem:[#allocation10 + $0x568] ss:$16 sps:$4 sm:$0xff]  }
 0x40d   :  { %v2623_v4 = vpop.f32.mrf.mxu1 }
 0x40e   :  { %v2624_v17 = vadd.f32 %v2623_v4, %v7834_v19  ;;  %4253 = vmatpush1.bf16.msra.mxu1 %v6980_v29  ;;  %v7884_v43 = vpack.c.bf16 %v2800_v1, %v2796_v30  ;;  %v2803_v24 = vmax.f32 %v2622_v55, 0.0  ;;  %v7018_v30 = vld [vmem:[#allocation10 + $0x54c] ss:$16 sps:$4 sm:$0xff]   ;;  %v7016_v55 = vld [vmem:[#allocation10 + $0x548] ss:$16 sps:$4 sm:$0xff]  }
 0x40f   :  { %v2625_v42 = vpop.f32.mrf.mxu1  ;;  %4254 = vmatprep.subr.bf16.mxu1 %v6988_v47 }
 0x410   :  { %v2626_v36 = vadd.f32 %v2625_v42, %v7830_v63  ;;  %4084 = vmatprep.mubr.bf16.mxu1 %v7884_v43  ;;  %v2804_v21 = vmax.f32 %v2624_v17, 0.0  ;;  %v7024_v17 = vld [vmem:[#allocation10 + $0x52c] ss:$16 sps:$4 sm:$0xff]  }
 0x411   :  { %v2627_v45 = vpop.f32.mrf.mxu1  ;;  %4085 = vmatmul.mubr.bf16.gmra.mxu1 %v7880_v60  ;;  %v8661_v42 = vld [vmem:[#allocation18_spill] sm:$0xff] }
 0x412   :  { %v2807_v46 = vmax.f32 %v2626_v36, 0.0  ;;  %v2628_v44 = vadd.f32 %v2627_v45, %v7834_v19  ;;  %4255 = vmatpush2.bf16.msra.mxu1 %v6986_v28  ;;  %v8662_v36 = vld [vmem:[#allocation20_spill] sm:$0xff] }
 0x413   :  { %v2631_v9 = vpop.f32.mrf.mxu1  ;;  %4256 = vmatprep.subr.bf16.mxu1 %v6994_v39  ;;  %v7912_v39 = vrot.slane %v7826_v20, %v8661_v42 }
 0x414   :  { %v2808_v41 = vmax.f32 %v2628_v44, 0.0  ;;  %v7890_v18 = vpack.c.bf16 %v2807_v46, %v2803_v24  ;;  %v2632_v54 = vadd.f32 %v2631_v9, %v7830_v63  ;;  %v7918_v24 = vrot.slane %v7826_v20, %v8662_v36  ;;  %v7030_v44 = vld [vmem:[#allocation10 + $0x50c] ss:$16 sps:$4 sm:$0xff]  }
 0x415   :  { %v2633_v3 = vpop.f32.mrf.mxu1 }
 0x416   :  { %v2634_v48 = vadd.f32 %v2633_v3, %v7834_v19  ;;  %4257 = vmatpush2.bf16.msra.mxu1 %v6992_v31  ;;  %v7894_v15 = vpack.c.bf16 %v2808_v41, %v2804_v21  ;;  %v2811_v33 = vmax.f32 %v2632_v54, 0.0  ;;  %v7028_v54 = vld [vmem:[#allocation10 + $0x508] ss:$16 sps:$4 sm:$0xff]  }
 0x417   :  { %v2635_v53 = vpop.f32.mrf.mxu1  ;;  %4258 = vmatprep.subr.bf16.mxu1 %v7000_v13 }
 0x418   :  { %v2636_v49 = vadd.f32 %v2635_v53, %v7830_v63  ;;  %4094 = vmatprep.mubr.bf16.mxu1 %v7894_v15  ;;  %v2812_v32 = vmax.f32 %v2634_v48, 0.0 }
 0x419   :  { %v2637_v57 = vpop.f32.mrf.mxu1  ;;  %4095 = vmatmul.mubr.bf16.gmra.mxu1 %v7890_v18 }
 0x41a   :  { %v2815_v26 = vmax.f32 %v2636_v49, 0.0  ;;  %v2638_v51 = vadd.f32 %v2637_v57, %v7834_v19  ;;  %4259 = vmatpush2.bf16.msra.mxu1 %v6998_v7  ;;  %v7031_v57 = vld [vmem:[#allocation10 + $0x6e8] ss:$16 sps:$4 sm:$0xff]  }
 0x41b   :  { %v2641_v35 = vpop.f32.mrf.mxu1  ;;  %4260 = vmatprep.subr.bf16.mxu1 %v7006_v50 }
 0x41c   :  { %v2816_v12 = vmax.f32 %v2638_v51, 0.0  ;;  %v7900_v34 = vpack.c.bf16 %v2815_v26, %v2811_v33  ;;  %v2642_v6 = vadd.f32 %v2641_v35, %v7830_v63  ;;  %v7036_v51 = vld [vmem:[#allocation10 + $0x6cc] ss:$16 sps:$4 sm:$0xff]  }
 0x41d   :  { %v2643_v11 = vpop.f32.mrf.mxu1 }
 0x41e   :  { %v2644_v25 = vadd.f32 %v2643_v11, %v7834_v19  ;;  %4261 = vmatpush2.bf16.msra.mxu1 %v7004_v59  ;;  %v7904_v2 = vpack.c.bf16 %v2816_v12, %v2812_v32  ;;  %v2819_v52 = vmax.f32 %v2642_v6, 0.0  ;;  %v7034_v6 = vld [vmem:[#allocation10 + $0x6c8] ss:$16 sps:$4 sm:$0xff]  }
 0x41f   :  { %v2645_v14 = vpop.f32.mrf.mxu1  ;;  %4262 = vmatprep.subr.bf16.mxu1 %v7012_v8 }
 0x420   :  { %v2646_v22 = vadd.f32 %v2645_v14, %v7830_v63  ;;  %4104 = vmatprep.mubr.bf16.mxu1 %v7904_v2  ;;  %v2820_v56 = vmax.f32 %v2644_v25, 0.0 }
 0x421   :  { %v2647_v29 = vpop.f32.mrf.mxu1  ;;  %4105 = vmatmul.mubr.bf16.gmra.mxu1 %v7900_v34 }
 0x422   :  { %v2823_v47 = vmax.f32 %v2646_v22, 0.0  ;;  %v2648_v1 = vadd.f32 %v2647_v29, %v7834_v19  ;;  %4263 = vmatpush2.bf16.msra.mxu1 %v7010_v38  ;;  %v7022_v19 = vld [vmem:[#allocation10 + $0x528] ss:$16 sps:$4 sm:$0xff]   ;;  %v7039_v38 = vld [vmem:[#allocation10 + $0x6ac] ss:$16 sps:$4 sm:$0xff]  }
 0x423   :  { %4264 = vmatprep.subr.bf16.mxu1 %v7018_v30 }
 0x424   :  { %v2684_v4 = vpop.f32.mrf.mxu0  ;;  %v2824_v28 = vmax.f32 %v2648_v1, 0.0  ;;  %v7914_v63 = vpack.c.bf16 %v2823_v47, %v2819_v52  ;;  %v7042_v1 = vld [vmem:[#allocation10 + $0x68c] ss:$16 sps:$4 sm:$0xff]  }
 0x425   :  { %v2685_v13 = vadd.f32 %v2684_v4, %v7918_v24 }
 0x426   :  { %v2686_v45 = vpop.f32.mrf.mxu0  ;;  %4265 = vmatpush2.bf16.msra.mxu1 %v7016_v55  ;;  %v7920_v21 = vpack.c.bf16 %v2824_v28, %v2820_v56  ;;  %v7037_v56 = vld [vmem:[#allocation10 + $0x6a8] ss:$16 sps:$4 sm:$0xff]  }
 0x427   :  { %4266 = vmatprep.subr.bf16.mxu1 %v7024_v17  ;;  %v2687_v31 = vadd.f32 %v2686_v45, %v7912_v39  ;;  %v2765_v50 = vmax.f32 %v2685_v13, 0.0  ;;  %v7040_v45 = vld [vmem:[#allocation10 + $0x688] ss:$16 sps:$4 sm:$0xff]  }
 0x428   :  { %v2688_v46 = vpop.f32.mrf.mxu0  ;;  %4114 = vmatprep.mubr.bf16.mxu1 %v7920_v21 }
 0x429   :  { %v2689_v9 = vadd.f32 %v2688_v46, %v7918_v24  ;;  %4115 = vmatmul.mubr.bf16.gmra.mxu1 %v7914_v63  ;;  %v2766_v7 = vmax.f32 %v2687_v31, 0.0 }
 0x42a   :  { %v2690_v41 = vpop.f32.mrf.mxu0  ;;  %4267 = vmatpush2.bf16.msra.mxu1 %v7022_v19  ;;  %4270 = vmatprep.mubr.bf16.mxu1 %v7844_v27 }
 0x42b   :  { %v2691_v20 = vadd.f32 %v2690_v41, %v7912_v39  ;;  %v2769_v3 = vmax.f32 %v2689_v9, 0.0  ;;  %4268 = vmatprep.subr.bf16.mxu1 %v7030_v44  ;;  %v7045_v44 = vld [vmem:[#allocation10 + $0x66c] ss:$16 sps:$4 sm:$0xff]  }
 0x42c   :  { %v2694_v48 = vpop.f32.mrf.mxu0 }
 0x42d   :  { %v2770_v53 = vmax.f32 %v2691_v20, 0.0  ;;  %v7931_v32 = vpack.c.bf16 %v2769_v3, %v2765_v50  ;;  %v2695_v35 = vadd.f32 %v2694_v48, %v7918_v24  ;;  %v7048_v48 = vld [vmem:[#allocation10 + $0x64c] ss:$16 sps:$4 sm:$0xff]  }
 0x42e   :  { %v2696_v49 = vpop.f32.mrf.mxu0  ;;  %4269 = vmatpush2.bf16.msra.mxu1 %v7028_v54  ;;  %v7043_v54 = vld [vmem:[#allocation10 + $0x668] ss:$16 sps:$4 sm:$0xff]  }
 0x42f   :  { %v7929_v33 = vpack.c.bf16 %v2770_v53, %v2766_v7  ;;  %v2697_v59 = vadd.f32 %v2696_v49, %v7912_v39  ;;  %v2773_v22 = vmax.f32 %v2695_v35, 0.0 }
 0x430   :  { %v2698_v26 = vpop.f32.mrf.mxu0 }
 0x431   :  { %v2699_v27 = vadd.f32 %v2698_v26, %v7918_v24  ;;  %4157 = vmatprep.mubr.bf16.mxu0 %v7929_v33  ;;  %4271 = vmatmul.mubr.bf16.vlgmr.msra.gmra.mxu1 %v7840_v0  ;;  %v2774_v14 = vmax.f32 %v2697_v59, 0.0  ;;  %v7051_v59 = vld [vmem:[#allocation10 + $0x62c] ss:$16 sps:$4 sm:$0xff]  }
 0x432   :  { %v2700_v8 = vpop.f32.mrf.mxu0  ;;  %4158 = vmatmul.mubr.bf16.vlgmr.msra.gmra.mxu0 %v7931_v32  ;;  %4280 = vmatprep.mubr.bf16.mxu1 %v7854_v61 }
 0x433   :  { %v2701_v12 = vadd.f32 %v2700_v8, %v7912_v39  ;;  %4352 = vmatpush1.bf16.msra.mxu0 %v7031_v57  ;;  %v2777_v11 = vmax.f32 %v2699_v27, 0.0  ;;  %v7046_v57 = vld [vmem:[#allocation10 + $0x648] ss:$16 sps:$4 sm:$0xff]  }
 0x434   :  { %v2704_v25 = vpop.f32.mrf.mxu0  ;;  %4353 = vmatprep.subr.bf16.mxu0 %v7036_v51 }
 0x435   :  { %v2778_v30 = vmax.f32 %v2701_v12, 0.0  ;;  %v7943_v47 = vpack.c.bf16 %v2777_v11, %v2773_v22  ;;  %v2705_v4 = vadd.f32 %v2704_v25, %v7918_v24  ;;  %v7049_v11 = vld [vmem:[#allocation10 + $0x628] ss:$16 sps:$4 sm:$0xff]  }
 0x436   :  { %v2706_v52 = vpop.f32.mrf.mxu0 }
 0x437   :  { %4354 = vmatpush1.bf16.msra.mxu0 %v7034_v6  ;;  %v7941_v29 = vpack.c.bf16 %v2778_v30, %v2774_v14  ;;  %v2707_v61 = vadd.f32 %v2706_v52, %v7912_v39  ;;  %v2781_v13 = vmax.f32 %v2705_v4, 0.0 }
 0x438   :  { %v2708_v0 = vpop.f32.mrf.mxu0  ;;  %4355 = vmatprep.subr.bf16.mxu0 %v7039_v38  ;;  %v7054_v38 = vld [vmem:[#allocation10 + $0x60c] ss:$16 sps:$4 sm:$0xff]  }
 0x439   :  { %v2709_v55 = vadd.f32 %v2708_v0, %v7918_v24  ;;  %4167 = vmatprep.mubr.bf16.mxu0 %v7941_v29  ;;  %4281 = vmatmul.mubr.bf16.gmra.mxu1 %v7850_v62  ;;  %v2782_v31 = vmax.f32 %v2707_v61, 0.0  ;;  %v7057_v61 = vld [vmem:[#allocation10 + $0x7ec] ss:$16 sps:$4 sm:$0xff]  }
 0x43a   :  { %v2710_v17 = vpop.f32.mrf.mxu0  ;;  %4168 = vmatmul.mubr.bf16.gmra.mxu0 %v7943_v47  ;;  %4290 = vmatprep.mubr.bf16.mxu1 %v7864_v58 }
 0x43b   :  { %v2711_v28 = vadd.f32 %v2710_v17, %v7912_v39  ;;  %4356 = vmatpush1.bf16.msra.mxu0 %v7037_v56  ;;  %v2785_v19 = vmax.f32 %v2709_v55, 0.0  ;;  %v7052_v56 = vld [vmem:[#allocation10 + $0x608] ss:$16 sps:$4 sm:$0xff]  }
 0x43c   :  { %v2714_v46 = vpop.f32.mrf.mxu0  ;;  %4357 = vmatprep.subr.bf16.mxu0 %v7042_v1 }
 0x43d   :  { %v2786_v9 = vmax.f32 %v2711_v28, 0.0  ;;  %v7955_v3 = vpack.c.bf16 %v2785_v19, %v2781_v13  ;;  %v2715_v53 = vadd.f32 %v2714_v46, %v7918_v24  ;;  %v7055_v19 = vld [vmem:[#allocation10 + $0x7e8] ss:$16 sps:$4 sm:$0xff]  }
 0x43e   :  { %v2716_v41 = vpop.f32.mrf.mxu0 }
 0x43f   :  { %4358 = vmatpush1.bf16.msra.mxu0 %v7040_v45  ;;  %v7953_v20 = vpack.c.bf16 %v2786_v9, %v2782_v31  ;;  %v2717_v58 = vadd.f32 %v2716_v41, %v7912_v39  ;;  %v2789_v8 = vmax.f32 %v2715_v53, 0.0 }
 0x440   :  { %v2718_v62 = vpop.f32.mrf.mxu0  ;;  %4359 = vmatprep.subr.bf16.mxu0 %v7045_v44  ;;  %v7060_v44 = vld [vmem:[#allocation10 + $0x7cc] ss:$16 sps:$4 sm:$0xff]  }
 0x441   :  { %v2719_v7 = vadd.f32 %v2718_v62, %v7918_v24  ;;  %4177 = vmatprep.mubr.bf16.mxu0 %v7953_v20  ;;  %4291 = vmatmul.mubr.bf16.gmra.mxu1 %v7860_v37  ;;  %v2790_v27 = vmax.f32 %v2717_v58, 0.0  ;;  %v7063_v58 = vld [vmem:[#allocation10 + $0x7ac] ss:$16 sps:$4 sm:$0xff]  }
 0x442   :  { %v2720_v50 = vpop.f32.mrf.mxu0  ;;  %4178 = vmatmul.mubr.bf16.gmra.mxu0 %v7955_v3  ;;  %4300 = vmatprep.mubr.bf16.mxu1 %v7874_v10 }
 0x443   :  { %v2721_v49 = vadd.f32 %v2720_v50, %v7912_v39  ;;  %4360 = vmatpush1.bf16.msra.mxu0 %v7043_v54  ;;  %v2793_v26 = vmax.f32 %v2719_v7, 0.0  ;;  %v7058_v54 = vld [vmem:[#allocation10 + $0x7c8] ss:$16 sps:$4 sm:$0xff]  }
 0x444   :  { %v2724_v51 = vpop.f32.mrf.mxu0  ;;  %4361 = vmatprep.subr.bf16.mxu0 %v7048_v48 }
 0x445   :  { %v2794_v35 = vmax.f32 %v2721_v49, 0.0  ;;  %v7967_v25 = vpack.c.bf16 %v2793_v26, %v2789_v8  ;;  %v2725_v30 = vadd.f32 %v2724_v51, %v7918_v24  ;;  %v7061_v26 = vld [vmem:[#allocation10 + $0x7a8] ss:$16 sps:$4 sm:$0xff]  }
 0x446   :  { %v2726_v12 = vpop.f32.mrf.mxu0 }
 0x447   :  { %4362 = vmatpush1.bf16.msra.mxu0 %v7046_v57  ;;  %v7965_v6 = vpack.c.bf16 %v2794_v35, %v2790_v27  ;;  %v2727_v10 = vadd.f32 %v2726_v12, %v7912_v39  ;;  %v2797_v17 = vmax.f32 %v2725_v30, 0.0 }
 0x448   :  { %v2728_v37 = vpop.f32.mrf.mxu0  ;;  %4363 = vmatprep.subr.bf16.mxu0 %v7051_v59  ;;  %v7066_v59 = vld [vmem:[#allocation10 + $0x78c] ss:$16 sps:$4 sm:$0xff]  }
 0x449   :  { %v2729_v14 = vadd.f32 %v2728_v37, %v7918_v24  ;;  %4187 = vmatprep.mubr.bf16.mxu0 %v7965_v6  ;;  %4301 = vmatmul.mubr.bf16.gmra.mxu1 %v7870_v16  ;;  %v2798_v55 = vmax.f32 %v2727_v10, 0.0  ;;  %v7069_v10 = vld [vmem:[#allocation10 + $0x76c] ss:$16 sps:$4 sm:$0xff]  }
 0x44a   :  { %v2730_v22 = vpop.f32.mrf.mxu0  ;;  %4188 = vmatmul.mubr.bf16.gmra.mxu0 %v7967_v25  ;;  %4310 = vmatprep.mubr.bf16.mxu1 %v7884_v43 }
 0x44b   :  { %v2731_v52 = vadd.f32 %v2730_v22, %v7912_v39  ;;  %4364 = vmatpush1.bf16.msra.mxu0 %v7049_v11  ;;  %v2801_v0 = vmax.f32 %v2729_v14, 0.0  ;;  %v7064_v11 = vld [vmem:[#allocation10 + $0x788] ss:$16 sps:$4 sm:$0xff]  }
 0x44c   :  { %v2734_v1 = vpop.f32.mrf.mxu0  ;;  %4365 = vmatprep.subr.bf16.mxu0 %v7054_v38 }
 0x44d   :  { %v2802_v4 = vmax.f32 %v2731_v52, 0.0  ;;  %v7979_v46 = vpack.c.bf16 %v2801_v0, %v2797_v17  ;;  %v2735_v9 = vadd.f32 %v2734_v1, %v7918_v24  ;;  %v7067_v0 = vld [vmem:[#allocation10 + $0x768] ss:$16 sps:$4 sm:$0xff]  }
 0x44e   :  { %v2736_v28 = vpop.f32.mrf.mxu0 }
 0x44f   :  { %4366 = vmatpush1.bf16.msra.mxu0 %v7052_v56  ;;  %v7977_v45 = vpack.c.bf16 %v2802_v4, %v2798_v55  ;;  %v2737_v43 = vadd.f32 %v2736_v28, %v7912_v39  ;;  %v2805_v50 = vmax.f32 %v2735_v9, 0.0 }
 0x450   :  { %v2738_v16 = vpop.f32.mrf.mxu0  ;;  %4367 = vmatprep.subr.bf16.mxu0 %v7057_v61 }
 0x451   :  { %v2739_v31 = vadd.f32 %v2738_v16, %v7918_v24  ;;  %4197 = vmatprep.mubr.bf16.mxu0 %v7977_v45  ;;  %4311 = vmatmul.mubr.bf16.gmra.mxu1 %v7880_v60  ;;  %v2806_v7 = vmax.f32 %v2737_v43, 0.0 }
 0x452   :  { %v2740_v13 = vpop.f32.mrf.mxu0  ;;  %4198 = vmatmul.mubr.bf16.gmra.mxu0 %v7979_v46  ;;  %4320 = vmatprep.mubr.bf16.mxu1 %v7894_v15 }
 0x453   :  { %v2741_v41 = vadd.f32 %v2740_v13, %v7912_v39  ;;  %4368 = vmatpush2.bf16.msra.mxu0 %v7055_v19  ;;  %v2809_v62 = vmax.f32 %v2739_v31, 0.0  ;;  %v7070_v19 = vld [vmem:[#allocation10 + $0x748] ss:$16 sps:$4 sm:$0xff]  }
 0x454   :  { %v2744_v48 = vpop.f32.mrf.mxu0  ;;  %4369 = vmatprep.subr.bf16.mxu0 %v7060_v44  ;;  %v7075_v44 = vld [vmem:[#allocation10 + $0x72c] ss:$16 sps:$4 sm:$0xff]  }
 0x455   :  { %v2810_v53 = vmax.f32 %v2741_v41, 0.0  ;;  %v7991_v51 = vpack.c.bf16 %v2809_v62, %v2805_v50  ;;  %v2745_v35 = vadd.f32 %v2744_v48, %v7918_v24  ;;  %v7073_v41 = vld [vmem:[#allocation10 + $0x728] ss:$16 sps:$4 sm:$0xff]  }
 0x456   :  { %v2746_v49 = vpop.f32.mrf.mxu0 }
 0x457   :  { %4370 = vmatpush2.bf16.msra.mxu0 %v7058_v54  ;;  %v7989_v57 = vpack.c.bf16 %v2810_v53, %v2806_v7  ;;  %v2747_v15 = vadd.f32 %v2746_v49, %v7912_v39  ;;  %v2813_v22 = vmax.f32 %v2745_v35, 0.0  ;;  %v7078_v54 = vld [vmem:[#allocation10 + $0x70c] ss:$16 sps:$4 sm:$0xff]  }
 0x458   :  { %v2748_v60 = vpop.f32.mrf.mxu0  ;;  %4371 = vmatprep.subr.bf16.mxu0 %v7063_v58 }
 0x459   :  { %v2749_v27 = vadd.f32 %v2748_v60, %v7918_v24  ;;  %4207 = vmatprep.mubr.bf16.mxu0 %v7989_v57  ;;  %4321 = vmatmul.mubr.bf16.gmra.mxu1 %v7890_v18  ;;  %v2814_v14 = vmax.f32 %v2747_v15, 0.0  ;;  %v7072_v18 = vld [vmem:[#allocation10 + $0x74c] ss:$16 sps:$4 sm:$0xff]  }
 0x45a   :  { %v2750_v8 = vpop.f32.mrf.mxu0  ;;  %4208 = vmatmul.mubr.bf16.gmra.mxu0 %v7991_v51  ;;  %4330 = vmatprep.mubr.bf16.mxu1 %v7904_v2 }
 0x45b   :  { %v2751_v12 = vadd.f32 %v2750_v8, %v7912_v39  ;;  %4372 = vmatpush2.bf16.msra.mxu0 %v7061_v26  ;;  %v2817_v37 = vmax.f32 %v2749_v27, 0.0 }
 0x45c   :  { %v2754_v38 = vpop.f32.mrf.mxu0  ;;  %4373 = vmatprep.subr.bf16.mxu0 %v7066_v59 }
 0x45d   :  { %v2818_v30 = vmax.f32 %v2751_v12, 0.0  ;;  %v6390_v1 = vpack.c.bf16 %v2817_v37, %v2813_v22  ;;  %v2755_v4 = vadd.f32 %v2754_v38, %v7918_v24 }
 0x45e   :  { %v2756_v52 = vpop.f32.mrf.mxu0 }
 0x45f   :  { %4374 = vmatpush2.bf16.msra.mxu0 %v7064_v11  ;;  %v6391_v56 = vpack.c.bf16 %v2818_v30, %v2814_v14  ;;  %v2757_v55 = vadd.f32 %v2756_v52, %v7912_v39  ;;  %v2821_v9 = vmax.f32 %v2755_v4, 0.0 }
 0x460   :  { %v2758_v61 = vpop.f32.mrf.mxu0  ;;  %4375 = vmatprep.subr.bf16.mxu0 %v7069_v10 }
 0x461   :  { %v2759_v2 = vadd.f32 %v2758_v61, %v7918_v24  ;;  %4217 = vmatprep.mubr.bf16.mxu0 %v6391_v56  ;;  %4331 = vmatmul.mubr.bf16.gmra.mxu1 %v7900_v34  ;;  %v2822_v43 = vmax.f32 %v2757_v55, 0.0  ;;  %v7076_v34 = vld [vmem:[#allocation10 + $0x708] ss:$16 sps:$4 sm:$0xff]  }
 0x462   :  { %v2760_v17 = vpop.f32.mrf.mxu0  ;;  %4218 = vmatmul.mubr.bf16.gmra.mxu0 %v6390_v1  ;;  %4340 = vmatprep.mubr.bf16.mxu1 %v7920_v21 }
 0x463   :  { %v2761_v28 = vadd.f32 %v2760_v17, %v7912_v39  ;;  %4376 = vmatpush2.bf16.msra.mxu0 %v7067_v0  ;;  %v2825_v16 = vmax.f32 %v2759_v2, 0.0 }
 0x464   :  { %4377 = vmatprep.subr.bf16.mxu0 %v7072_v18 }
 0x465   :  { %v2826_v31 = vmax.f32 %v2761_v28, 0.0  ;;  %v6394_v24 = vpack.c.bf16 %v2825_v16, %v2821_v9 }
 0x467   :  { %4378 = vmatpush2.bf16.msra.mxu0 %v7070_v19  ;;  %v6395_v13 = vpack.c.bf16 %v2826_v31, %v2822_v43 }
 0x468   :  { %4379 = vmatprep.subr.bf16.mxu0 %v7075_v44 }
 0x469   :  { %4227 = vmatprep.mubr.bf16.mxu0 %v6395_v13  ;;  %4341 = vmatmul.mubr.bf16.gmra.mxu1 %v7914_v63 }
 0x46a   :  { %4228 = vmatmul.mubr.bf16.gmra.mxu0 %v6394_v24  ;;  %4551 = vmatprep.mubr.bf16.mxu1 %v8638_v23 }
 0x46b   :  { %4380 = vmatpush2.bf16.msra.mxu0 %v7073_v41  ;;  %4383 = vmatprep.mubr.bf16.mxu0 %v7929_v33 }
 0x46c   :  { %4381 = vmatprep.subr.bf16.mxu0 %v7078_v54 }
 0x46f   :  { %4382 = vmatpush2.bf16.msra.mxu0 %v7076_v34 }
 0x472   :  { %4384 = vmatmul.mubr.bf16.vlgmr.msra.gmra.mxu0 %v7931_v32 }
 0x473   :  { %4393 = vmatprep.mubr.bf16.mxu0 %v7941_v29 }
 0x47a   :  { %4394 = vmatmul.mubr.bf16.gmra.mxu0 %v7943_v47 }
 0x47b   :  { %4403 = vmatprep.mubr.bf16.mxu0 %v7953_v20 }
 0x482   :  { %4404 = vmatmul.mubr.bf16.gmra.mxu0 %v7955_v3 }
 0x483   :  { %4413 = vmatprep.mubr.bf16.mxu0 %v7965_v6 }
 0x48a   :  { %4414 = vmatmul.mubr.bf16.gmra.mxu0 %v7967_v25 }
 0x48b   :  { %4423 = vmatprep.mubr.bf16.mxu0 %v7977_v45 }
 0x492   :  { %4424 = vmatmul.mubr.bf16.gmra.mxu0 %v7979_v46 }
 0x493   :  { %4433 = vmatprep.mubr.bf16.mxu0 %v7989_v57 }
 0x49a   :  { %4434 = vmatmul.mubr.bf16.gmra.mxu0 %v7991_v51 }
 0x49b   :  { %4443 = vmatprep.mubr.bf16.mxu0 %v6391_v56 }
 0x4a2   :  { %4444 = vmatmul.mubr.bf16.gmra.mxu0 %v6390_v1 }
 0x4a3   :  { %4453 = vmatprep.mubr.bf16.mxu0 %v6395_v13 }
 0x4aa   :  { %4454 = vmatmul.mubr.bf16.gmra.mxu0 %v6394_v24 }
 0x4ab   :  { %4664 = vmatprep.mubr.bf16.mxu0 %v8638_v23 }
 0x4b1   :  { %v4046_v39 = vpop.f32.mrf.mxu1 }
 0x4b3   :  { %v4048_v63 = vpop.f32.mrf.mxu1 }
 0x4b5   :  { %v4050_v21 = vpop.f32.mrf.mxu1 }
 0x4b7   :  { %v8022_v33 = vpop.f32.mrf.mxu1 }
 0x4b8   :  { %8663 = vst [vmem:[#allocation27_spill] sm:$0xff] %v8022_v33 }
 0x4b9   :  { %v4056_v32 = vpop.f32.mrf.mxu1 }
 0x4bb   :  { %v4058_v29 = vpop.f32.mrf.mxu1 }
 0x4bd   :  { %v4060_v47 = vpop.f32.mrf.mxu1 }
 0x4bf   :  { %v8024_v20 = vpop.f32.mrf.mxu1 }
 0x4c0   :  { %8664 = vst [vmem:[#allocation22_spill] sm:$0xff] %v8024_v20 }
 0x4c1   :  { %v4066_v3 = vpop.f32.mrf.mxu1 }
 0x4c3   :  { %v8026_v6 = vpop.f32.mrf.mxu1 }
 0x4c5   :  { %v8028_v25 = vpop.f32.mrf.mxu1 }
 0x4c6   :  { %8665 = vst [vmem:[#allocation28_spill] sm:$0xff] %v8028_v25 }
 0x4c7   :  { %v8030_v45 = vpop.f32.mrf.mxu1 }
 0x4c9   :  { %v8032_v46 = vpop.f32.mrf.mxu1 }
 0x4cb   :  { %v8034_v62 = vpop.f32.mrf.mxu1 }
 0x4cd   :  { %v8036_v48 = vpop.f32.mrf.mxu1 }
 0x4cf   :  { %v8038_v58 = vpop.f32.mrf.mxu1 }
 0x4d1   :  { %v8040_v7 = vpop.f32.mrf.mxu1 }
 0x4d3   :  { %v8042_v53 = vpop.f32.mrf.mxu1 }
 0x4d5   :  { %v8044_v50 = vpop.f32.mrf.mxu1 }
 0x4d7   :  { %v8046_v49 = vpop.f32.mrf.mxu1 }
 0x4d9   :  { %v8048_v57 = vpop.f32.mrf.mxu1 }
 0x4db   :  { %v8050_v26 = vpop.f32.mrf.mxu1 }
 0x4dd   :  { %v8052_v51 = vpop.f32.mrf.mxu1 }
 0x4df   :  { %v8054_v60 = vpop.f32.mrf.mxu1 }
 0x4e1   :  { %v8056_v59 = vpop.f32.mrf.mxu1 }
 0x4e3   :  { %v8058_v15 = vpop.f32.mrf.mxu1 }
 0x4e5   :  { %v8060_v27 = vpop.f32.mrf.mxu1 }
 0x4e7   :  { %v8062_v35 = vpop.f32.mrf.mxu1 }
 0x4e9   :  { %v8064_v8 = vpop.f32.mrf.mxu1 }
 0x4eb   :  { %v4118_v12 = vpop.f32.mrf.mxu1 }
 0x4ed   :  { %v4120_v11 = vpop.f32.mrf.mxu1 }
 0x4ef   :  { %v4122_v37 = vpop.f32.mrf.mxu1 }
 0x4f1   :  { %v8068_v14 = vpop.f32.mrf.mxu1 }
 0x4f2   :  { %v4159_v38 = vpop.f32.mrf.mxu0 }
 0x4f3   :  { %v8066_v10 = vadd.f32 %v4159_v38, %v4046_v39  ;;  %v8074_v0 = vpop.f32.mrf.mxu1 }
 0x4f4   :  { %v4161_v30 = vpop.f32.mrf.mxu0 }
 0x4f5   :  { %8666 = vst [vmem:[#allocation26_spill] sm:$0xff] %v8066_v10  ;;  %v8070_v22 = vadd.f32 %v4161_v30, %v4048_v63  ;;  %v8082_v2 = vpop.f32.mrf.mxu1 }
 0x4f6   :  { %v4163_v52 = vpop.f32.mrf.mxu0 }
 0x4f7   :  { %8667 = vst [vmem:[#allocation23_spill] sm:$0xff] %v8070_v22  ;;  %v8072_v56 = vadd.f32 %v4163_v52, %v4050_v21  ;;  %v8088_v16 = vpop.f32.mrf.mxu1 }
 0x4f8   :  { %v8076_v1 = vpop.f32.mrf.mxu0 }
 0x4f9   :  { %8668 = vst [vmem:[#allocation21_spill] sm:$0xff] %v8072_v56  ;;  %8669 = vst [vmem:[#allocation39_spill] sm:$0xff] %v8076_v1  ;;  %v8096_v13 = vpop.f32.mrf.mxu1 }
 0x4fa   :  { %v4169_v18 = vpop.f32.mrf.mxu0 }
 0x4fb   :  { %v8080_v55 = vadd.f32 %v4169_v18, %v4056_v32  ;;  %v8102_v54 = vpop.f32.mrf.mxu1 }
 0x4fc   :  { %v4171_v4 = vpop.f32.mrf.mxu0 }
 0x4fd   :  { %8670 = vst [vmem:[#allocation40_spill] sm:$0xff] %v8080_v55  ;;  %v8084_v17 = vadd.f32 %v4171_v4, %v4058_v29  ;;  %v8108_v63 = vpop.f32.mrf.mxu1 }
 0x4fe   :  { %v4173_v28 = vpop.f32.mrf.mxu0 }
 0x4ff   :  { %8671 = vst [vmem:[#allocation41_spill] sm:$0xff] %v8084_v17  ;;  %v8086_v19 = vadd.f32 %v4173_v28, %v4060_v47  ;;  %v8114_v29 = vpop.f32.mrf.mxu1 }
 0x500   :  { %v8090_v44 = vpop.f32.mrf.mxu0 }
 0x501   :  { %8672 = vst [vmem:[#allocation34_spill] sm:$0xff] %v8086_v19  ;;  %8673 = vst [vmem:[#allocation35_spill] sm:$0xff] %v8090_v44  ;;  %v8120_v38 = vpop.f32.mrf.mxu1 }
 0x502   :  { %v4179_v31 = vpop.f32.mrf.mxu0  ;;  %8676 = vst [vmem:[#allocation38_spill] sm:$0xff] %v8120_v38 }
 0x503   :  { %v8094_v9 = vadd.f32 %v4179_v31, %v4066_v3  ;;  %v8122_v18 = vpop.f32.mrf.mxu1 }
 0x504   :  { %v8098_v41 = vpop.f32.mrf.mxu0  ;;  %8677 = vst [vmem:[#allocation36_spill] sm:$0xff] %v8122_v18 }
 0x505   :  { %8674 = vst [vmem:[#allocation37_spill] sm:$0xff] %v8094_v9  ;;  %v8124_v31 = vpop.f32.mrf.mxu1 }
 0x506   :  { %v8100_v24 = vpop.f32.mrf.mxu0  ;;  %8678 = vst [vmem:[#allocation33_spill] sm:$0xff] %v8124_v31 }
 0x507   :  { %8675 = vst [vmem:[#allocation32_spill] sm:$0xff] %v8100_v24  ;;  %v8126_v36 = vpop.f32.mrf.mxu1 }
 0x508   :  { %v8104_v34 = vpop.f32.mrf.mxu0  ;;  %8679 = vst [vmem:[#allocation31_spill] sm:$0xff] %v8126_v36 }
 0x509   :  { %v8128_v5 = vpop.f32.mrf.mxu1 }
 0x50a   :  { %v8106_v39 = vpop.f32.mrf.mxu0  ;;  %8680 = vst [vmem:[#allocation29_spill] sm:$0xff] %v8128_v5 }
 0x50b   :  { %v8130_v56 = vpop.f32.mrf.mxu1 }
 0x50c   :  { %v8110_v21 = vpop.f32.mrf.mxu0  ;;  %8681 = vst [vmem:[#allocation30_spill] sm:$0xff] %v8130_v56 }
 0x50d   :  { %v8132_v22 = vpop.f32.mrf.mxu1 }
 0x50e   :  { %v8112_v32 = vpop.f32.mrf.mxu0  ;;  %8682 = vst [vmem:[#allocation24_spill] sm:$0xff] %v8132_v22 }
 0x50f   :  { %v8134_v1 = vpop.f32.mrf.mxu1 }
 0x510   :  { %v8116_v47 = vpop.f32.mrf.mxu0  ;;  %8683 = vst [vmem:[#allocation25_spill] sm:$0xff] %v8134_v1 }
 0x511   :  { %v8142_v22 = vpop.f32.mrf.mxu1 }
 0x512   :  { %v8118_v3 = vpop.f32.mrf.mxu0 }
 0x514   :  { %v4201_v30 = vpop.f32.mrf.mxu0 }
 0x516   :  { %v4203_v52 = vpop.f32.mrf.mxu0 }
 0x518   :  { %v4205_v4 = vpop.f32.mrf.mxu0 }
 0x51a   :  { %v4209_v28 = vpop.f32.mrf.mxu0 }
 0x51c   :  { %v4211_v61 = vpop.f32.mrf.mxu0 }
 0x51e   :  { %v4213_v43 = vpop.f32.mrf.mxu0 }
 0x520   :  { %v4215_v42 = vpop.f32.mrf.mxu0 }
 0x522   :  { %v4219_v40 = vpop.f32.mrf.mxu0 }
 0x524   :  { %v4221_v23 = vpop.f32.mrf.mxu0 }
 0x525   :  { %v4222_v24 = vadd.f32 %v4221_v23, %v8058_v15 }
 0x526   :  { %v4223_v10 = vpop.f32.mrf.mxu0 }
 0x527   :  { %v4224_v38 = vadd.f32 %v4223_v10, %v8060_v27  ;;  %v8154_v27 = vpop.f32.mrf.mxu1  ;;  %v4202_v10 = vadd.f32 %v4201_v30, %v8042_v53  ;;  %v4200_v53 = vadd.f32 %v8118_v3, %v8040_v7 }
 0x528   :  { %v4225_v55 = vpop.f32.mrf.mxu0 }
 0x529   :  { %v4226_v36 = vadd.f32 %v4225_v55, %v8062_v35 }
 0x52a   :  { %v4229_v19 = vpop.f32.mrf.mxu0 }
 0x52b   :  { %v4230_v5 = vadd.f32 %v4229_v19, %v8064_v8  ;;  %v4489_v35 = vpack.c.bf16 %v4226_v36, %v4222_v24  ;;  %v4220_v8 = vadd.f32 %v4219_v40, %v8056_v59  ;;  %v4192_v19 = vadd.f32 %v8110_v21, %v8034_v62  ;;  %v8684_v21 = vld [vmem:[#allocation38_spill] sm:$0xff] }
 0x52c   :  { %v4231_v18 = vpop.f32.mrf.mxu0  ;;  %v4190_v24 = vadd.f32 %v8106_v39, %v8032_v46  ;;  %v8687_v46 = vld [vmem:[#allocation22_spill] sm:$0xff]  ;;  %v8688_v39 = vld [vmem:[#allocation35_spill] sm:$0xff] }
 0x52d   :  { %v4232_v9 = vadd.f32 %v4231_v18, %v4118_v12  ;;  %v4176_v30 = vadd.f32 %v8688_v39, %v8687_v46  ;;  %v8254_v39 = vld [vmem:[#allocation3 + $0x8] sm:$0xff]  }
 0x52e   :  { %v4233_v17 = vpop.f32.mrf.mxu0 }
 0x52f   :  { %v4234_v31 = vadd.f32 %v4233_v17, %v4120_v11  ;;  %v4216_v17 = vadd.f32 %v4215_v42, %v8054_v60  ;;  %v4488_v42 = vpack.c.bf16 %v4224_v38, %v4220_v8  ;;  %v4206_v60 = vadd.f32 %v4205_v4, %v8046_v49 }
 0x530   :  { %v4235_v33 = vpop.f32.mrf.mxu0  ;;  %v4204_v49 = vadd.f32 %v4203_v52, %v8044_v50 }
 0x531   :  { %v4236_v44 = vadd.f32 %v4235_v33, %v4122_v37  ;;  %v4492_v1 = vpack.c.bf16 %v4234_v31, %v4230_v5  ;;  %v4214_v5 = vadd.f32 %v4213_v43, %v8052_v51  ;;  %v8690_v31 = vld [vmem:[#allocation27_spill] sm:$0xff] }
 0x532   :  { %v4385_v20 = vpop.f32.mrf.mxu0 }
 0x533   :  { %v4493_v56 = vpack.c.bf16 %v4236_v44, %v4232_v9  ;;  %v8140_v25 = vadd.f32 %v4385_v20, %v8068_v14  ;;  %v4212_v20 = vadd.f32 %v4211_v61, %v8050_v26  ;;  %v4210_v26 = vadd.f32 %v4209_v28, %v8048_v57 }
 0x534   :  { %v4387_v11 = vpop.f32.mrf.mxu0  ;;  %v4196_v57 = vadd.f32 %v8116_v47, %v8038_v58  ;;  %v4481_v61 = vpack.c.bf16 %v4206_v60, %v4202_v10  ;;  %v4480_v58 = vpack.c.bf16 %v4204_v49, %v4200_v53  ;;  %v4186_v9 = vadd.f32 %v8104_v34, %v8030_v45  ;;  %v8685_v34 = vld [vmem:[#allocation28_spill] sm:$0xff] }
 0x535   :  { %v8147_v33 = vadd.f32 %v4387_v11, %v8074_v0  ;;  %4519 = vmatprep.subr.bf16.mxu1 %v4493_v56  ;;  %v4485_v12 = vpack.c.bf16 %v4216_v17, %v4212_v20  ;;  %v8171_v56 = vpop.f32.mrf.mxu1  ;;  %v4484_v0 = vpack.c.bf16 %v4214_v5, %v4210_v26  ;;  %v8691_v11 = vld [vmem:[#allocation39_spill] sm:$0xff]  ;;  %v8695_v26 = vld [vmem:[#allocation40_spill] sm:$0xff] }
 0x536   :  { %v4389_v23 = vpop.f32.mrf.mxu0  ;;  %4520 = vmatpush1.bf16.msra.mxu1 %v4492_v1  ;;  %v4477_v7 = vpack.c.bf16 %v4196_v57, %v4192_v19  ;;  %v4166_v17 = vadd.f32 %v8691_v11, %v8690_v31  ;;  %v7079_v10 = vld [vmem:[#allocation11 + $0x78] sm:$0xff]   ;;  %v8697_v57 = vld [vmem:[#allocation21_spill] sm:$0xff]  ;;  %v7081_v19 = vld [vmem:[#allocation11 + $0x70] sm:$0xff]  }
 0x537   :  { %v8152_v15 = vadd.f32 %v4389_v23, %v8082_v2  ;;  %4521 = vmatprep.subr.bf16.mxu1 %v4489_v35  ;;  %v8187_v44 = vpop.f32.mrf.mxu1  ;;  %v8692_v35 = vld [vmem:[#allocation41_spill] sm:$0xff] }
 0x538   :  { %v4391_v36 = vpop.f32.mrf.mxu0  ;;  %v4469_v8 = vpack.c.bf16 %v4176_v30, %v8692_v35 }
 0x539   :  { %v8161_v59 = vadd.f32 %v4391_v36, %v8088_v16  ;;  %v4194_v16 = vadd.f32 %v8112_v32, %v8036_v48  ;;  %v4182_v48 = vadd.f32 %v8098_v41, %v8026_v6  ;;  %v8686_v32 = vld [vmem:[#allocation32_spill] sm:$0xff]  ;;  %v8207_v3 = vpop.f32.mrf.mxu1  ;;  %v8689_v41 = vld [vmem:[#allocation37_spill] sm:$0xff] }
 0x53a   :  { %v4395_v37 = vpop.f32.mrf.mxu0  ;;  %4522 = vmatpush1.bf16.msra.mxu1 %v4488_v42  ;;  %v4184_v47 = vadd.f32 %v8686_v32, %v8685_v34  ;;  %v8693_v42 = vld [vmem:[#allocation23_spill] sm:$0xff]  ;;  %v7084_v32 = vld [vmem:[#allocation11 + $0x28] sm:$0xff]  }
 0x53b   :  { %v8168_v14 = vadd.f32 %v4395_v37, %v8096_v13  ;;  %4523 = vmatprep.subr.bf16.mxu1 %v4485_v12  ;;  %v4473_v52 = vpack.c.bf16 %v4186_v9, %v4182_v48  ;;  %v8216_v4 = vpop.f32.mrf.mxu1  ;;  %v4465_v36 = vpack.c.bf16 %v4166_v17, %v8693_v42  ;;  %v8694_v12 = vld [vmem:[#allocation34_spill] sm:$0xff]  ;;  %v7089_v17 = vld [vmem:[#allocation11 + $0x18] sm:$0xff]  }
 0x53c   :  { %v4397_v1 = vpop.f32.mrf.mxu0  ;;  %v4472_v18 = vpack.c.bf16 %v4184_v47, %v8689_v41  ;;  %v8696_v37 = vpack.c.bf16 %v8694_v12, %v8695_v26  ;;  %v7085_v47 = vld [vmem:[#allocation11 + $0x60] sm:$0xff]   ;;  %v7087_v41 = vld [vmem:[#allocation11 + $0x58] sm:$0xff]   ;;  %v8258_v42 = vld [vmem:[#allocation3 + $0x10] sm:$0xff]  }
 0x53d   :  { %v8176_v55 = vadd.f32 %v4397_v1, %v8102_v54  ;;  %v8225_v20 = vpop.f32.mrf.mxu1  ;;  %8701 = vst [vmem:[#allocation38_spill] sm:$0xff] %v8258_v42 }
 0x53e   :  { %v4399_v2 = vpop.f32.mrf.mxu0  ;;  %4524 = vmatpush1.bf16.msra.mxu1 %v4484_v0 }
 0x53f   :  { %v8183_v50 = vadd.f32 %v4399_v2, %v8108_v63  ;;  %4525 = vmatprep.subr.bf16.mxu1 %v4481_v61  ;;  %v8235_v49 = vpop.f32.mrf.mxu1  ;;  %v8698_v61 = vld [vmem:[#allocation26_spill] sm:$0xff]  ;;  %v7080_v2 = vld [vmem:[#allocation11 + $0x38] sm:$0xff]  }
 0x540   :  { %v4401_v43 = vpop.f32.mrf.mxu0  ;;  %v8699_v53 = vpack.c.bf16 %v8697_v57, %v8698_v61  ;;  %v8262_v61 = vld [vmem:[#allocation3 + $0x18] sm:$0xff]  }
 0x541   :  { %v8194_v62 = vadd.f32 %v4401_v43, %v8114_v29  ;;  %v4476_v29 = vpack.c.bf16 %v4194_v16, %v4190_v24  ;;  %v8244_v16 = vpop.f32.mrf.mxu1  ;;  %v8248_v43 = vld [vmem:[#allocation3] sm:$0xff]   ;;  %v7082_v24 = vld [vmem:[#allocation11 + $0x30] sm:$0xff]   ;;  %8702 = vst [vmem:[#allocation28_spill] sm:$0xff] %v8262_v61 }
 0x542   :  { %v4405_v54 = vpop.f32.mrf.mxu0  ;;  %4526 = vmatpush1.bf16.msra.mxu1 %v4480_v58 }
 0x543   :  { %v8203_v45 = vadd.f32 %v4405_v54, %v8684_v21  ;;  %4527 = vmatprep.subr.bf16.mxu1 %v4477_v7  ;;  %v8700_v7 = vmov 0   ;;  %v7083_v54 = vld [vmem:[#allocation11 + $0x68] sm:$0xff]   ;;  %v4334_v48 = vpop.f32.mrf.mxu1 }
 0x544   :  { %v8209_v38 = vpop.f32.mrf.mxu0 }
 0x546   :  { %v8213_v6 = vpop.f32.mrf.mxu0  ;;  %4528 = vmatpush1.bf16.msra.mxu1 %v4476_v29  ;;  %v4336_v29 = vpop.f32.mrf.mxu1 }
 0x547   :  { %4529 = vmatprep.subr.bf16.mxu1 %v4473_v52  ;;  %v7086_v52 = vld [vmem:[#allocation11 + $0x20] sm:$0xff]  }
 0x548   :  { %v8218_v28 = vpop.f32.mrf.mxu0 }
 0x54a   :  { %v8223_v23 = vpop.f32.mrf.mxu0  ;;  %4530 = vmatpush1.bf16.msra.mxu1 %v4472_v18  ;;  %v4338_v18 = vpop.f32.mrf.mxu1 }
 0x54b   :  { %4531 = vmatprep.subr.bf16.mxu1 %v4469_v8 }
 0x54c   :  { %v8227_v5 = vpop.f32.mrf.mxu0  ;;  %v4342_v35 = vpop.f32.mrf.mxu1 }
 0x54e   :  { %v8230_v60 = vpop.f32.mrf.mxu0  ;;  %4532 = vmatpush1.bf16.msra.mxu1 %v8696_v37  ;;  %v4344_v12 = vpop.f32.mrf.mxu1 }
 0x54f   :  { %4533 = vmatprep.subr.bf16.mxu1 %v4465_v36 }
 0x550   :  { %v8237_v0 = vpop.f32.mrf.mxu0 }
 0x552   :  { %v8239_v1 = vpop.f32.mrf.mxu0  ;;  %4534 = vmatpush1.bf16.msra.mxu1 %v8699_v53 }
 0x553   :  { %6444 = vmatprep.subr.bf16.mxu1 %v7079_v10  ;;  %v4346_v10 = vpop.f32.mrf.mxu1 }
 0x554   :  { %v8246_v58 = vpop.f32.mrf.mxu0 }
 0x555   :  { %4552 = vmatmul.mubr.bf16.vlgmr.msra.gmra.mxu1 %v8248_v43 }
 0x556   :  { %v8251_v9 = vpop.f32.mrf.mxu0  ;;  %4561 = vmatprep.mubr.bf16.mxu1 %v8700_v7  ;;  %6445 = vmatpush3.bf16.msra.mxu1 %v7080_v2  ;;  %v4348_v2 = vpop.f32.mrf.mxu1 }
 0x557   :  { %6446 = vmatprep.subr.bf16.mxu1 %v7081_v19 }
 0x558   :  { %v4431_v21 = vpop.f32.mrf.mxu0 }
 0x55a   :  { %v4435_v34 = vpop.f32.mrf.mxu0  ;;  %6447 = vmatpush3.bf16.msra.mxu1 %v7082_v24 }
 0x55b   :  { %6448 = vmatprep.subr.bf16.mxu1 %v7083_v54 }
 0x55c   :  { %v4437_v46 = vpop.f32.mrf.mxu0 }
 0x55d   :  { %4562 = vmatmul.mubr.bf16.gmra.mxu1 %v8254_v39 }
 0x55e   :  { %v4439_v30 = vpop.f32.mrf.mxu0  ;;  %4571 = vmatprep.mubr.bf16.mxu1 %v8700_v7  ;;  %6449 = vmatpush3.bf16.msra.mxu1 %v7084_v32 }
 0x55f   :  { %6450 = vmatprep.subr.bf16.mxu1 %v7085_v47 }
 0x560   :  { %v4441_v31 = vpop.f32.mrf.mxu0 }
 0x561   :  { %v4442_v13 = vadd.f32 %v4441_v31, %v8235_v49  ;;  %v4436_v31 = vadd.f32 %v4435_v34, %v8207_v3 }
 0x562   :  { %v4445_v11 = vpop.f32.mrf.mxu0  ;;  %6451 = vmatpush3.bf16.msra.mxu1 %v7086_v52 }
 0x563   :  { %6452 = vmatprep.subr.bf16.mxu1 %v7087_v41 }
 0x564   :  { %v4447_v8 = vpop.f32.mrf.mxu0 }
 0x565   :  { %4572 = vmatmul.mubr.bf16.gmra.mxu1 %v8258_v42  ;;  %v4448_v41 = vadd.f32 %v4447_v8, %v4334_v48  ;;  %v8267_v42 = vld [vmem:[#allocation3 + $0x20] sm:$0xff]   ;;  %v4440_v48 = vadd.f32 %v4439_v30, %v8225_v20  ;;  %v4428_v8 = vadd.f32 %v8246_v58, %v8154_v27  ;;  %v8282_v20 = vld [vmem:[#allocation3 + $0x28] sm:$0xff]  }
 0x566   :  { %v4449_v36 = vpop.f32.mrf.mxu0  ;;  %4581 = vmatprep.mubr.bf16.mxu1 %v8700_v7  ;;  %6453 = vmatpush3.bf16.msra.mxu1 %v7089_v17  ;;  %v8704_v27 = vld [vmem:[#allocation30_spill] sm:$0xff] }
 0x567   :  { %v4450_v40 = vadd.f32 %v4449_v36, %v4336_v29 }
 0x568   :  { %v4451_v26 = vpop.f32.mrf.mxu0 }
 0x569   :  { %v4452_v54 = vadd.f32 %v4451_v26, %v4338_v18  ;;  %v4438_v18 = vadd.f32 %v4437_v46, %v8216_v4  ;;  %v8709_v46 = vld [vmem:[#allocation33_spill] sm:$0xff]  ;;  %v7088_v26 = vld [vmem:[#allocation11 + $0xf8] sm:$0xff]  }
 0x56a   :  { %v4455_v37 = vpop.f32.mrf.mxu0 }
 0x56b   :  { %v4456_v52 = vadd.f32 %v4455_v37, %v4342_v35  ;;  %v4491_v63 = vpack.c.bf16 %v4452_v54, %v4448_v41  ;;  %v4432_v35 = vadd.f32 %v4431_v21, %v8187_v44  ;;  %v4487_v49 = vpack.c.bf16 %v4442_v13, %v4438_v18  ;;  %v8707_v21 = vld [vmem:[#allocation29_spill] sm:$0xff]  ;;  %v8356_v54 = vld [vmem:[#allocation11 + $0x90] sm:$0xff]  }
 0x56c   :  { %v4457_v57 = vpop.f32.mrf.mxu0  ;;  %v4418_v44 = vadd.f32 %v8227_v5, %v8704_v27  ;;  %v4416_v34 = vadd.f32 %v8223_v23, %v8707_v21  ;;  %v4410_v5 = vadd.f32 %v8213_v6, %v8709_v46  ;;  %v8710_v23 = vpack.c.bf16 %v8194_v62, %v8176_v55  ;;  %v8319_v55 = vld [vmem:[#allocation11 + $0xf0] sm:$0xff]   ;;  %v8329_v62 = vld [vmem:[#allocation11 + $0xa8] sm:$0xff]   ;;  %v8717_v18 = vld [vmem:[#allocation17_spill] sm:$0xff] }
 0x56d   :  { %4582 = vmatmul.mubr.bf16.gmra.mxu1 %v8262_v61  ;;  %v4458_v32 = vadd.f32 %v4457_v57, %v4344_v12  ;;  %v4446_v61 = vadd.f32 %v4445_v11, %v8244_v16  ;;  %v4486_v16 = vpack.c.bf16 %v4440_v48, %v4436_v31  ;;  %v8703_v11 = vld [vmem:[#allocation25_spill] sm:$0xff]  ;;  %v4483_v4 = vpack.c.bf16 %v4432_v35, %v4428_v8  ;;  %v7125_v12 = vld [vmem:[#allocation3 + $0x30] sm:$0xff]  }
 0x56e   :  { %v4459_v53 = vpop.f32.mrf.mxu0  ;;  %4591 = vmatprep.mubr.bf16.mxu1 %v8700_v7  ;;  %v8711_v6 = vpack.c.bf16 %v8183_v50, %v8168_v14  ;;  %v8713_v37 = vpack.c.bf16 %v8152_v15, %v8140_v25  ;;  %v7091_v14 = vld [vmem:[#allocation11 + $0x50] sm:$0xff]   ;;  %v7095_v25 = vld [vmem:[#allocation11 + $0x48] sm:$0xff]   ;;  %v8335_v57 = vld [vmem:[#allocation11 + $0xa0] sm:$0xff]  }
 0x56f   :  { %v4460_v19 = vadd.f32 %v4459_v53, %v4346_v10  ;;  %v4490_v29 = vpack.c.bf16 %v4450_v40, %v4446_v61  ;;  %v4426_v40 = vadd.f32 %v8239_v1, %v8142_v22  ;;  %v8708_v22 = vld [vmem:[#allocation36_spill] sm:$0xff]  ;;  %v7093_v50 = vld [vmem:[#allocation11 + $0x10] sm:$0xff]   ;;  %6454 = vmatprep.subr.bf16.mxu1 %v7091_v14  ;;  %v8327_v15 = vld [vmem:[#allocation11 + $0xe8] sm:$0xff]  }
 0x570   :  { %v4461_v24 = vpop.f32.mrf.mxu0  ;;  %v4408_v1 = vadd.f32 %v8209_v38, %v8708_v22  ;;  %v7126_v38 = vld [vmem:[#allocation3 + $0x38] sm:$0xff]   ;;  %6455 = vmatpush3.bf16.msra.mxu1 %v7093_v50  ;;  %v8332_v10 = vld [vmem:[#allocation11 + $0xe0] sm:$0xff]   ;;  %v8714_v61 = vld [vmem:[#allocation38_spill] sm:$0xff] }
 0x571   :  { %v4462_v47 = vadd.f32 %v4461_v24, %v4348_v2  ;;  %v4494_v51 = vpack.c.bf16 %v4460_v19, %v4456_v52  ;;  %6456 = vmatprep.subr.bf16.mxu1 %v7095_v25  ;;  %v8341_v53 = vld [vmem:[#allocation11 + $0xd8] sm:$0xff]   ;;  %v8354_v24 = vld [vmem:[#allocation11 + $0xd0] sm:$0xff]   ;;  %v8375_v52 = vld [vmem:[%s8567_s5 + $0x4] sm:$0xf] }
 0x572   :  { %v8343_v2 = vld [vmem:[#allocation11 + $0x98] sm:$0xff]   ;;  %v8716_v41 = vld [vmem:[#allocation19_spill] sm:$0xff]  ;;  %v8383_v48 = vrot.slane %v8375_v52, %v8717_v18 }
 0x573   :  { %v4495_v17 = vpack.c.bf16 %v4462_v47, %v4458_v32  ;;  %v8715_v19 = vld [vmem:[#allocation28_spill] sm:$0xff]  ;;  %v8360_v32 = vld [vmem:[#allocation11 + $0xc8] sm:$0xff]   ;;  %v8366_v47 = vld [vmem:[#allocation11 + $0xc0] sm:$0xff]  }
 0x575   :  { %4632 = vmatprep.subr.bf16.mxu0 %v4495_v17  ;;  %4592 = vmatmul.mubr.bf16.gmra.mxu1 %v8267_v42  ;;  %v8379_v17 = vrot.slane %v8375_v52, %v8716_v41 }
 0x576   :  { %4633 = vmatpush1.bf16.msra.mxu0 %v4494_v51  ;;  %4601 = vmatprep.mubr.bf16.mxu1 %v8700_v7  ;;  %v4430_v51 = vadd.f32 %v8251_v9, %v8171_v56  ;;  %v8705_v56 = vld [vmem:[#allocation24_spill] sm:$0xff] }
 0x577   :  { %4634 = vmatprep.subr.bf16.mxu0 %v4491_v63  ;;  %v4422_v63 = vadd.f32 %v8237_v0, %v8703_v11  ;;  %v4420_v13 = vadd.f32 %v8230_v60, %v8705_v56  ;;  %v8706_v0 = vld [vmem:[#allocation31_spill] sm:$0xff]  ;;  %v8712_v60 = vpack.c.bf16 %v8161_v59, %v8147_v33  ;;  %v7097_v59 = vld [vmem:[#allocation11 + $0x8] sm:$0xff]  }
 0x578   :  { %v4482_v3 = vpack.c.bf16 %v4430_v51, %v4426_v40  ;;  %v4412_v58 = vadd.f32 %v8218_v28, %v8706_v0  ;;  %v4474_v28 = vpack.c.bf16 %v4410_v5, %v8203_v45  ;;  %v8314_v45 = vld [vmem:[#allocation11 + $0xb8] sm:$0xff]   ;;  %v8321_v33 = vld [vmem:[#allocation11 + $0xb0] sm:$0xff]   ;;  %6457 = vmatpush3.bf16.msra.mxu1 %v7097_v59 }
 0x579   :  { %v4479_v9 = vpack.c.bf16 %v4422_v63, %v4418_v44  ;;  %v4478_v30 = vpack.c.bf16 %v4420_v13, %v4416_v34 }
 0x57a   :  { %4635 = vmatpush1.bf16.msra.mxu0 %v4490_v29  ;;  %v4475_v36 = vpack.c.bf16 %v4412_v58, %v4408_v1 }
 0x57b   :  { %4636 = vmatprep.subr.bf16.mxu0 %v4487_v49 }
 0x57d   :  { %4602 = vmatmul.mubr.bf16.gmra.mxu1 %v8282_v20 }
 0x57e   :  { %4637 = vmatpush1.bf16.msra.mxu0 %v4486_v16  ;;  %4611 = vmatprep.mubr.bf16.mxu1 %v8700_v7 }
 0x57f   :  { %4638 = vmatprep.subr.bf16.mxu0 %v4483_v4 }
 0x582   :  { %4639 = vmatpush1.bf16.msra.mxu0 %v4482_v3 }
 0x583   :  { %4640 = vmatprep.subr.bf16.mxu0 %v4479_v9 }
 0x585   :  { %4612 = vmatmul.mubr.bf16.gmra.mxu1 %v7125_v12 }
 0x586   :  { %4641 = vmatpush1.bf16.msra.mxu0 %v4478_v30  ;;  %4621 = vmatprep.mubr.bf16.mxu1 %v8700_v7 }
 0x587   :  { %4642 = vmatprep.subr.bf16.mxu0 %v4475_v36 }
 0x58a   :  { %4643 = vmatpush1.bf16.msra.mxu0 %v4474_v28 }
 0x58b   :  { %4644 = vmatprep.subr.bf16.mxu0 %v8710_v23 }
 0x58d   :  { %4622 = vmatmul.mubr.bf16.gmra.mxu1 %v7126_v38 }
 0x58e   :  { %4645 = vmatpush1.bf16.msra.mxu0 %v8711_v6 }
 0x58f   :  { %4646 = vmatprep.subr.bf16.mxu0 %v8712_v60 }
 0x592   :  { %4647 = vmatpush1.bf16.msra.mxu0 %v8713_v37 }
 0x593   :  { %6508 = vmatprep.subr.bf16.mxu0 %v7088_v26 }
 0x595   :  { %4665 = vmatmul.mubr.bf16.vlgmr.msra.gmra.mxu0 %v8248_v43  ;;  %v7099_v43 = vld [vmem:[#allocation11 + $0x40] sm:$0xff]  }
 0x596   :  { %4674 = vmatprep.mubr.bf16.mxu0 %v8700_v7  ;;  %6509 = vmatpush3.bf16.msra.mxu0 %v8314_v45 }
 0x597   :  { %6510 = vmatprep.subr.bf16.mxu0 %v8319_v55  ;;  %6458 = vmatprep.subr.bf16.mxu1 %v7099_v43 }
 0x59a   :  { %6511 = vmatpush3.bf16.msra.mxu0 %v8321_v33 }
 0x59b   :  { %6512 = vmatprep.subr.bf16.mxu0 %v8327_v15 }
 0x59d   :  { %4675 = vmatmul.mubr.bf16.gmra.mxu0 %v8254_v39  ;;  %v7101_v39 = vld [vmem:[#allocation11] sm:$0xff]  }
 0x59e   :  { %4684 = vmatprep.mubr.bf16.mxu0 %v8700_v7  ;;  %6513 = vmatpush3.bf16.msra.mxu0 %v8329_v62 }
 0x59f   :  { %6514 = vmatprep.subr.bf16.mxu0 %v8332_v10  ;;  %6459 = vmatpush3.bf16.msra.mxu1 %v7101_v39 }
 0x5a0   :  { %6604 = vmatprep.subr.bf16.mxu1 %v7088_v26 }
 0x5a2   :  { %6515 = vmatpush3.bf16.msra.mxu0 %v8335_v57 }
 0x5a3   :  { %6516 = vmatprep.subr.bf16.mxu0 %v8341_v53 }
 0x5a5   :  { %4685 = vmatmul.mubr.bf16.gmra.mxu0 %v8714_v61 }
 0x5a6   :  { %4694 = vmatprep.mubr.bf16.mxu0 %v8700_v7  ;;  %6517 = vmatpush3.bf16.msra.mxu0 %v8343_v2 }
 0x5a7   :  { %6518 = vmatprep.subr.bf16.mxu0 %v8354_v24 }
 0x5aa   :  { %6519 = vmatpush3.bf16.msra.mxu0 %v8356_v54 }
 0x5ab   :  { %6520 = vmatprep.subr.bf16.mxu0 %v8360_v32 }
 0x5ad   :  { %4695 = vmatmul.mubr.bf16.gmra.mxu0 %v8715_v19 }
 0x5ae   :  { %4704 = vmatprep.mubr.bf16.mxu0 %v8700_v7 }
 0x5b5   :  { %4705 = vmatmul.mubr.bf16.gmra.mxu0 %v8267_v42  ;;  %v8362_v42 = vld [vmem:[#allocation11 + $0x88] sm:$0xff]  }
 0x5b6   :  { %4714 = vmatprep.mubr.bf16.mxu0 %v8700_v7  ;;  %6521 = vmatpush3.bf16.msra.mxu0 %v8362_v42 }
 0x5b7   :  { %6522 = vmatprep.subr.bf16.mxu0 %v8366_v47 }
 0x5bd   :  { %4715 = vmatmul.mubr.bf16.gmra.mxu0 %v8282_v20 }
 0x5be   :  { %4724 = vmatprep.mubr.bf16.mxu0 %v8700_v7 }
 0x5c5   :  { %4725 = vmatmul.mubr.bf16.gmra.mxu0 %v7125_v12 }
 0x5c6   :  { %4734 = vmatprep.mubr.bf16.mxu0 %v8700_v7  ;;  %v8368_v7 = vld [vmem:[#allocation11 + $0x80] sm:$0xff]  }
 0x5c7   :  { %6523 = vmatpush3.bf16.msra.mxu0 %v8368_v7 }
 0x5cd   :  { %4735 = vmatmul.mubr.bf16.gmra.mxu0 %v7126_v38 }
 0x615   :  { %v4553_v29 = vpop.f32.mrf.mxu1 }
 0x616   :  { %v4554_v35 = vadd.f32 %v4553_v29, %v8379_v17 }
 0x617   :  { %v4555_v49 = vpop.f32.mrf.mxu1 }
 0x618   :  { %v4556_v31 = vadd.f32 %v4555_v49, %v8383_v48  ;;  %v4745_v16 = vmax.f32 %v4554_v35, 0.0 }
 0x619   :  { %v4557_v8 = vpop.f32.mrf.mxu1 }
 0x61a   :  { %v4558_v51 = vadd.f32 %v4557_v8, %v8379_v17  ;;  %v4746_v63 = vmax.f32 %v4556_v31, 0.0 }
 0x61b   :  { %v4559_v11 = vpop.f32.mrf.mxu1 }
 0x61c   :  { %v4749_v4 = vmax.f32 %v4558_v51, 0.0  ;;  %v4560_v20 = vadd.f32 %v4559_v11, %v8383_v48 }
 0x61d   :  { %v4563_v40 = vpop.f32.mrf.mxu1 }
 0x61e   :  { %v4750_v27 = vmax.f32 %v4560_v20, 0.0  ;;  %v6396_v44 = vpack.c.bf16 %v4749_v4, %v4745_v16  ;;  %v4564_v56 = vadd.f32 %v4563_v40, %v8379_v17 }
 0x61f   :  { %v4565_v13 = vpop.f32.mrf.mxu1 }
 0x620   :  { %v6397_v3 = vpack.c.bf16 %v4750_v27, %v4746_v63  ;;  %v4566_v0 = vadd.f32 %v4565_v13, %v8383_v48  ;;  %v4753_v21 = vmax.f32 %v4564_v56, 0.0 }
 0x621   :  { %v4567_v58 = vpop.f32.mrf.mxu1 }
 0x622   :  { %v4568_v9 = vadd.f32 %v4567_v58, %v8379_v17  ;;  %5520 = vmatprep.mubr.bf16.mxu1 %v6397_v3  ;;  %v4754_v22 = vmax.f32 %v4566_v0, 0.0 }
 0x623   :  { %v4569_v34 = vpop.f32.mrf.mxu1  ;;  %5521 = vmatmul.mubr.bf16.vlgmr.msra.gmra.mxu1 %v6396_v44 }
 0x624   :  { %v4757_v1 = vmax.f32 %v4568_v9, 0.0  ;;  %v4570_v46 = vadd.f32 %v4569_v34, %v8383_v48  ;;  %6612 = vmatpush3.bf16.msra.mxu1 %v8314_v45 }
 0x625   :  { %v4573_v5 = vpop.f32.mrf.mxu1  ;;  %6605 = vmatprep.subr.bf16.mxu1 %v8319_v55 }
 0x626   :  { %v4758_v30 = vmax.f32 %v4570_v46, 0.0  ;;  %v6400_v36 = vpack.c.bf16 %v4757_v1, %v4753_v21  ;;  %v4574_v12 = vadd.f32 %v4573_v5, %v8379_v17 }
 0x627   :  { %v4575_v28 = vpop.f32.mrf.mxu1 }
 0x628   :  { %v6401_v23 = vpack.c.bf16 %v4758_v30, %v4754_v22  ;;  %v4576_v38 = vadd.f32 %v4575_v28, %v8383_v48  ;;  %6613 = vmatpush3.bf16.msra.mxu1 %v8321_v33  ;;  %v4761_v26 = vmax.f32 %v4574_v12, 0.0 }
 0x629   :  { %v4577_v6 = vpop.f32.mrf.mxu1  ;;  %6606 = vmatprep.subr.bf16.mxu1 %v8327_v15 }
 0x62a   :  { %v4578_v60 = vadd.f32 %v4577_v6, %v8379_v17  ;;  %5528 = vmatprep.mubr.bf16.mxu1 %v6401_v23  ;;  %v4762_v45 = vmax.f32 %v4576_v38, 0.0 }
 0x62b   :  { %v4579_v37 = vpop.f32.mrf.mxu1  ;;  %5529 = vmatmul.mubr.bf16.gmra.mxu1 %v6400_v36 }
 0x62c   :  { %v4765_v14 = vmax.f32 %v4578_v60, 0.0  ;;  %v4580_v55 = vadd.f32 %v4579_v37, %v8383_v48  ;;  %6614 = vmatpush3.bf16.msra.mxu1 %v8329_v62 }
 0x62d   :  { %v4583_v50 = vpop.f32.mrf.mxu1  ;;  %6607 = vmatprep.subr.bf16.mxu1 %v8332_v10 }
 0x62e   :  { %v4766_v25 = vmax.f32 %v4580_v55, 0.0  ;;  %v6404_v33 = vpack.c.bf16 %v4765_v14, %v4761_v26  ;;  %v4584_v59 = vadd.f32 %v4583_v50, %v8379_v17 }
 0x62f   :  { %v4585_v15 = vpop.f32.mrf.mxu1 }
 0x630   :  { %v6405_v43 = vpack.c.bf16 %v4766_v25, %v4762_v45  ;;  %v4586_v39 = vadd.f32 %v4585_v15, %v8383_v48  ;;  %6615 = vmatpush3.bf16.msra.mxu1 %v8335_v57  ;;  %v4769_v62 = vmax.f32 %v4584_v59, 0.0 }
 0x631   :  { %v4587_v61 = vpop.f32.mrf.mxu1  ;;  %6608 = vmatprep.subr.bf16.mxu1 %v8341_v53 }
 0x632   :  { %v4588_v19 = vadd.f32 %v4587_v61, %v8379_v17  ;;  %5536 = vmatprep.mubr.bf16.mxu1 %v6405_v43  ;;  %v4770_v10 = vmax.f32 %v4586_v39, 0.0 }
 0x633   :  { %v4589_v41 = vpop.f32.mrf.mxu1  ;;  %5537 = vmatmul.mubr.bf16.gmra.mxu1 %v6404_v33 }
 0x634   :  { %v4773_v18 = vmax.f32 %v4588_v19, 0.0  ;;  %v4590_v29 = vadd.f32 %v4589_v41, %v8383_v48  ;;  %6616 = vmatpush3.bf16.msra.mxu1 %v8343_v2  ;;  %v8718_v41 = vld [vmem:[#allocation18_spill] sm:$0xff] }
 0x635   :  { %v4593_v35 = vpop.f32.mrf.mxu1  ;;  %6609 = vmatprep.subr.bf16.mxu1 %v8354_v24 }
 0x636   :  { %v4774_v49 = vmax.f32 %v4590_v29, 0.0  ;;  %v6408_v57 = vpack.c.bf16 %v4773_v18, %v4769_v62  ;;  %v4594_v31 = vadd.f32 %v4593_v35, %v8379_v17  ;;  %v8719_v29 = vld [vmem:[#allocation20_spill] sm:$0xff] }
 0x637   :  { %v4595_v53 = vpop.f32.mrf.mxu1  ;;  %v8438_v35 = vrot.slane %v8375_v52, %v8719_v29 }
 0x638   :  { %v6409_v8 = vpack.c.bf16 %v4774_v49, %v4770_v10  ;;  %v4596_v51 = vadd.f32 %v4595_v53, %v8383_v48  ;;  %6617 = vmatpush3.bf16.msra.mxu1 %v8356_v54  ;;  %v4777_v2 = vmax.f32 %v4594_v31, 0.0  ;;  %v8434_v10 = vrot.slane %v8375_v52, %v8718_v41 }
 0x639   :  { %v4597_v16 = vpop.f32.mrf.mxu1  ;;  %6610 = vmatprep.subr.bf16.mxu1 %v8360_v32 }
 0x63a   :  { %v4598_v11 = vadd.f32 %v4597_v16, %v8379_v17  ;;  %5544 = vmatprep.mubr.bf16.mxu1 %v6409_v8  ;;  %v4778_v24 = vmax.f32 %v4596_v51, 0.0 }
 0x63b   :  { %v4599_v63 = vpop.f32.mrf.mxu1  ;;  %5545 = vmatmul.mubr.bf16.gmra.mxu1 %v6408_v57 }
 0x63c   :  { %v4781_v4 = vmax.f32 %v4598_v11, 0.0  ;;  %v4600_v20 = vadd.f32 %v4599_v63, %v8383_v48  ;;  %6618 = vmatpush3.bf16.msra.mxu1 %v8362_v42 }
 0x63d   :  { %v4603_v40 = vpop.f32.mrf.mxu1  ;;  %6611 = vmatprep.subr.bf16.mxu1 %v8366_v47 }
 0x63e   :  { %v4782_v27 = vmax.f32 %v4600_v20, 0.0  ;;  %v6412_v54 = vpack.c.bf16 %v4781_v4, %v4777_v2  ;;  %v4604_v44 = vadd.f32 %v4603_v40, %v8379_v17 }
 0x63f   :  { %v4605_v32 = vpop.f32.mrf.mxu1 }
 0x640   :  { %v6413_v56 = vpack.c.bf16 %v4782_v27, %v4778_v24  ;;  %v4606_v13 = vadd.f32 %v4605_v32, %v8383_v48  ;;  %6619 = vmatpush3.bf16.msra.mxu1 %v8368_v7  ;;  %v4785_v58 = vmax.f32 %v4604_v44, 0.0 }
 0x641   :  { %v4607_v3 = vpop.f32.mrf.mxu1 }
 0x642   :  { %v4608_v0 = vadd.f32 %v4607_v3, %v8379_v17  ;;  %5552 = vmatprep.mubr.bf16.mxu1 %v6413_v56  ;;  %v4786_v42 = vmax.f32 %v4606_v13, 0.0 }
 0x643   :  { %v4609_v9 = vpop.f32.mrf.mxu1  ;;  %5553 = vmatmul.mubr.bf16.gmra.mxu1 %v6412_v54 }
 0x644   :  { %v4789_v21 = vmax.f32 %v4608_v0, 0.0  ;;  %v4610_v47 = vadd.f32 %v4609_v9, %v8383_v48 }
 0x645   :  { %v4613_v34 = vpop.f32.mrf.mxu1 }
 0x646   :  { %v4790_v22 = vmax.f32 %v4610_v47, 0.0  ;;  %v6416_v1 = vpack.c.bf16 %v4789_v21, %v4785_v58  ;;  %v4614_v46 = vadd.f32 %v4613_v34, %v8379_v17 }
 0x647   :  { %v4615_v5 = vpop.f32.mrf.mxu1 }
 0x648   :  { %v6417_v30 = vpack.c.bf16 %v4790_v22, %v4786_v42  ;;  %v4616_v7 = vadd.f32 %v4615_v5, %v8383_v48  ;;  %v4793_v28 = vmax.f32 %v4614_v46, 0.0 }
 0x649   :  { %v4617_v36 = vpop.f32.mrf.mxu1 }
 0x64a   :  { %v4618_v12 = vadd.f32 %v4617_v36, %v8379_v17  ;;  %5560 = vmatprep.mubr.bf16.mxu1 %v6417_v30  ;;  %v4794_v38 = vmax.f32 %v4616_v7, 0.0 }
 0x64b   :  { %v4619_v23 = vpop.f32.mrf.mxu1  ;;  %5561 = vmatmul.mubr.bf16.gmra.mxu1 %v6416_v1 }
 0x64c   :  { %v4797_v6 = vmax.f32 %v4618_v12, 0.0  ;;  %v4620_v60 = vadd.f32 %v4619_v23, %v8383_v48 }
 0x64d   :  { %v4623_v26 = vpop.f32.mrf.mxu1 }
 0x64e   :  { %v4798_v37 = vmax.f32 %v4620_v60, 0.0  ;;  %v6420_v45 = vpack.c.bf16 %v4797_v6, %v4793_v28  ;;  %v4624_v14 = vadd.f32 %v4623_v26, %v8379_v17 }
 0x64f   :  { %v4625_v55 = vpop.f32.mrf.mxu1 }
 0x650   :  { %v6421_v50 = vpack.c.bf16 %v4798_v37, %v4794_v38  ;;  %v4626_v25 = vadd.f32 %v4625_v55, %v8383_v48  ;;  %v4801_v15 = vmax.f32 %v4624_v14, 0.0 }
 0x651   :  { %v4627_v33 = vpop.f32.mrf.mxu1 }
 0x652   :  { %v4628_v59 = vadd.f32 %v4627_v33, %v8379_v17  ;;  %5568 = vmatprep.mubr.bf16.mxu1 %v6421_v50  ;;  %v4802_v39 = vmax.f32 %v4626_v25, 0.0 }
 0x653   :  { %v4629_v43 = vpop.f32.mrf.mxu1  ;;  %5569 = vmatmul.mubr.bf16.gmra.mxu1 %v6420_v45 }
 0x654   :  { %v4805_v61 = vmax.f32 %v4628_v59, 0.0  ;;  %v4630_v19 = vadd.f32 %v4629_v43, %v8383_v48 }
 0x655   :  { %v4666_v62 = vpop.f32.mrf.mxu0 }
 0x656   :  { %v4806_v18 = vmax.f32 %v4630_v19, 0.0  ;;  %v6424_v17 = vpack.c.bf16 %v4805_v61, %v4801_v15  ;;  %v4667_v48 = vadd.f32 %v4666_v62, %v8438_v35 }
 0x657   :  { %v4668_v49 = vpop.f32.mrf.mxu0 }
 0x658   :  { %v6425_v57 = vpack.c.bf16 %v4806_v18, %v4802_v39  ;;  %v4669_v53 = vadd.f32 %v4668_v49, %v8434_v10  ;;  %v4747_v24 = vmax.f32 %v4667_v48, 0.0 }
 0x659   :  { %v4670_v31 = vpop.f32.mrf.mxu0 }
 0x65a   :  { %v4671_v8 = vadd.f32 %v4670_v31, %v8438_v35  ;;  %5576 = vmatprep.mubr.bf16.mxu1 %v6425_v57  ;;  %v4748_v63 = vmax.f32 %v4669_v53, 0.0 }
 0x65b   :  { %v4672_v51 = vpop.f32.mrf.mxu0  ;;  %5577 = vmatmul.mubr.bf16.gmra.mxu1 %v6424_v17 }
 0x65c   :  { %v4673_v16 = vadd.f32 %v4672_v51, %v8434_v10  ;;  %v4751_v11 = vmax.f32 %v4671_v8, 0.0 }
 0x65d   :  { %v4676_v2 = vpop.f32.mrf.mxu0 }
 0x65e   :  { %v4752_v52 = vmax.f32 %v4673_v16, 0.0  ;;  %v6398_v40 = vpack.c.bf16 %v4751_v11, %v4747_v24  ;;  %v4677_v32 = vadd.f32 %v4676_v2, %v8438_v35 }
 0x65f   :  { %v4678_v4 = vpop.f32.mrf.mxu0 }
 0x660   :  { %v6399_v20 = vpack.c.bf16 %v4752_v52, %v4748_v63  ;;  %v4679_v54 = vadd.f32 %v4678_v4, %v8434_v10  ;;  %v4755_v42 = vmax.f32 %v4677_v32, 0.0 }
 0x661   :  { %v4680_v27 = vpop.f32.mrf.mxu0 }
 0x662   :  { %v4681_v44 = vadd.f32 %v4680_v27, %v8438_v35  ;;  %5617 = vmatprep.mubr.bf16.mxu0 %v6399_v20  ;;  %v4756_v58 = vmax.f32 %v4679_v54, 0.0 }
 0x663   :  { %v4682_v56 = vpop.f32.mrf.mxu0  ;;  %5618 = vmatmul.mubr.bf16.vlgmr.msra.gmra.mxu0 %v6398_v40 }
 0x664   :  { %v4683_v13 = vadd.f32 %v4682_v56, %v8434_v10  ;;  %v4759_v3 = vmax.f32 %v4681_v44, 0.0 }
 0x665   :  { %v4686_v0 = vpop.f32.mrf.mxu0 }
 0x666   :  { %v4760_v9 = vmax.f32 %v4683_v13, 0.0  ;;  %v6402_v34 = vpack.c.bf16 %v4759_v3, %v4755_v42  ;;  %v4687_v5 = vadd.f32 %v4686_v0, %v8438_v35 }
 0x667   :  { %v4688_v21 = vpop.f32.mrf.mxu0 }
 0x668   :  { %v6403_v47 = vpack.c.bf16 %v4760_v9, %v4756_v58  ;;  %v4689_v1 = vadd.f32 %v4688_v21, %v8434_v10  ;;  %v4763_v38 = vmax.f32 %v4687_v5, 0.0 }
 0x669   :  { %v4690_v22 = vpop.f32.mrf.mxu0 }
 0x66a   :  { %v4691_v46 = vadd.f32 %v4690_v22, %v8438_v35  ;;  %5625 = vmatprep.mubr.bf16.mxu0 %v6403_v47  ;;  %v4764_v28 = vmax.f32 %v4689_v1, 0.0 }
 0x66b   :  { %v4692_v30 = vpop.f32.mrf.mxu0  ;;  %5626 = vmatmul.mubr.bf16.gmra.mxu0 %v6402_v34 }
 0x66c   :  { %v4693_v7 = vadd.f32 %v4692_v30, %v8434_v10  ;;  %v4767_v36 = vmax.f32 %v4691_v46, 0.0 }
 0x66d   :  { %v4696_v12 = vpop.f32.mrf.mxu0 }
 0x66e   :  { %v4768_v23 = vmax.f32 %v4693_v7, 0.0  ;;  %v6406_v26 = vpack.c.bf16 %v4767_v36, %v4763_v38  ;;  %v4697_v55 = vadd.f32 %v4696_v12, %v8438_v35 }
 0x66f   :  { %v4698_v6 = vpop.f32.mrf.mxu0 }
 0x670   :  { %v6407_v60 = vpack.c.bf16 %v4768_v23, %v4764_v28  ;;  %v4699_v45 = vadd.f32 %v4698_v6, %v8434_v10  ;;  %v4771_v39 = vmax.f32 %v4697_v55, 0.0 }
 0x671   :  { %v4700_v37 = vpop.f32.mrf.mxu0 }
 0x672   :  { %v4701_v14 = vadd.f32 %v4700_v37, %v8438_v35  ;;  %5633 = vmatprep.mubr.bf16.mxu0 %v6407_v60  ;;  %v4772_v15 = vmax.f32 %v4699_v45, 0.0 }
 0x673   :  { %v4702_v50 = vpop.f32.mrf.mxu0  ;;  %5634 = vmatmul.mubr.bf16.gmra.mxu0 %v6406_v26 }
 0x674   :  { %v4703_v25 = vadd.f32 %v4702_v50, %v8434_v10  ;;  %v4775_v33 = vmax.f32 %v4701_v14, 0.0 }
 0x675   :  { %v4706_v59 = vpop.f32.mrf.mxu0 }
 0x676   :  { %v4776_v43 = vmax.f32 %v4703_v25, 0.0  ;;  %v6410_v62 = vpack.c.bf16 %v4775_v33, %v4771_v39  ;;  %v4707_v49 = vadd.f32 %v4706_v59, %v8438_v35 }
 0x677   :  { %v4708_v61 = vpop.f32.mrf.mxu0 }
 0x678   :  { %v6411_v19 = vpack.c.bf16 %v4776_v43, %v4772_v15  ;;  %v4709_v18 = vadd.f32 %v4708_v61, %v8434_v10  ;;  %v4779_v51 = vmax.f32 %v4707_v49, 0.0 }
 0x679   :  { %v4710_v41 = vpop.f32.mrf.mxu0 }
 0x67a   :  { %v4711_v29 = vadd.f32 %v4710_v41, %v8438_v35  ;;  %5641 = vmatprep.mubr.bf16.mxu0 %v6411_v19  ;;  %v4780_v8 = vmax.f32 %v4709_v18, 0.0 }
 0x67b   :  { %v4712_v17 = vpop.f32.mrf.mxu0  ;;  %5642 = vmatmul.mubr.bf16.gmra.mxu0 %v6410_v62 }
 0x67c   :  { %v4713_v57 = vadd.f32 %v4712_v17, %v8434_v10  ;;  %v4783_v31 = vmax.f32 %v4711_v29, 0.0 }
 0x67d   :  { %v4716_v53 = vpop.f32.mrf.mxu0 }
 0x67e   :  { %v4784_v48 = vmax.f32 %v4713_v57, 0.0  ;;  %v6414_v2 = vpack.c.bf16 %v4783_v31, %v4779_v51  ;;  %v4717_v4 = vadd.f32 %v4716_v53, %v8438_v35 }
 0x67f   :  { %v4718_v16 = vpop.f32.mrf.mxu0 }
 0x680   :  { %v6415_v11 = vpack.c.bf16 %v4784_v48, %v4780_v8  ;;  %v4719_v52 = vadd.f32 %v4718_v16, %v8434_v10  ;;  %v4787_v56 = vmax.f32 %v4717_v4, 0.0  ;;  %v8483_v16 = vld [vmem:[%s8569_s7] ss:$0 sm:$0xff] }
 0x681   :  { %v4720_v63 = vpop.f32.mrf.mxu0 }
 0x682   :  { %v4721_v24 = vadd.f32 %v4720_v63, %v8438_v35  ;;  %5649 = vmatprep.mubr.bf16.mxu0 %v6415_v11  ;;  %v4788_v44 = vmax.f32 %v4719_v52, 0.0 }
 0x683   :  { %v4722_v20 = vpop.f32.mrf.mxu0  ;;  %5650 = vmatmul.mubr.bf16.gmra.mxu0 %v6414_v2 }
 0x684   :  { %v4723_v40 = vadd.f32 %v4722_v20, %v8434_v10  ;;  %v4791_v27 = vmax.f32 %v4721_v24, 0.0 }
 0x685   :  { %v4726_v54 = vpop.f32.mrf.mxu0 }
 0x686   :  { %v4792_v32 = vmax.f32 %v4723_v40, 0.0  ;;  %v6418_v0 = vpack.c.bf16 %v4791_v27, %v4787_v56  ;;  %v4727_v21 = vadd.f32 %v4726_v54, %v8438_v35 }
 0x687   :  { %v4728_v13 = vpop.f32.mrf.mxu0 }
 0x688   :  { %v6419_v3 = vpack.c.bf16 %v4792_v32, %v4788_v44  ;;  %v4729_v9 = vadd.f32 %v4728_v13, %v8434_v10  ;;  %v4795_v30 = vmax.f32 %v4727_v21, 0.0 }
 0x689   :  { %v4730_v58 = vpop.f32.mrf.mxu0 }
 0x68a   :  { %v4731_v42 = vadd.f32 %v4730_v58, %v8438_v35  ;;  %5657 = vmatprep.mubr.bf16.mxu0 %v6419_v3  ;;  %v4796_v46 = vmax.f32 %v4729_v9, 0.0 }
 0x68b   :  { %v4732_v47 = vpop.f32.mrf.mxu0  ;;  %5658 = vmatmul.mubr.bf16.gmra.mxu0 %v6418_v0 }
 0x68c   :  { %v4733_v34 = vadd.f32 %v4732_v47, %v8434_v10  ;;  %v4799_v22 = vmax.f32 %v4731_v42, 0.0 }
 0x68d   :  { %v4736_v1 = vpop.f32.mrf.mxu0 }
 0x68e   :  { %v4800_v5 = vmax.f32 %v4733_v34, 0.0  ;;  %v6422_v12 = vpack.c.bf16 %v4799_v22, %v4795_v30  ;;  %v4737_v6 = vadd.f32 %v4736_v1, %v8438_v35 }
 0x68f   :  { %v4738_v7 = vpop.f32.mrf.mxu0 }
 0x690   :  { %v6423_v36 = vpack.c.bf16 %v4800_v5, %v4796_v46  ;;  %v4739_v23 = vadd.f32 %v4738_v7, %v8434_v10  ;;  %v4803_v55 = vmax.f32 %v4737_v6, 0.0 }
 0x691   :  { %v4740_v28 = vpop.f32.mrf.mxu0 }
 0x692   :  { %v4741_v38 = vadd.f32 %v4740_v28, %v8438_v35  ;;  %5665 = vmatprep.mubr.bf16.mxu1 %v6423_v36  ;;  %v4804_v45 = vmax.f32 %v4739_v23, 0.0 }
 0x693   :  { %v4742_v60 = vpop.f32.mrf.mxu0  ;;  %5666 = vmatmul.mubr.bf16.vlgmr.msra.gmra.mxu1 %v6422_v12 }
 0x694   :  { %v4743_v26 = vadd.f32 %v4742_v60, %v8434_v10  ;;  %v4807_v37 = vmax.f32 %v4741_v38, 0.0 }
 0x696   :  { %v4808_v14 = vmax.f32 %v4743_v26, 0.0  ;;  %v6426_v25 = vpack.c.bf16 %v4807_v37, %v4803_v55 }
 0x698   :  { %v6427_v50 = vpack.c.bf16 %v4808_v14, %v4804_v45 }
 0x69a   :  { %5673 = vmatprep.mubr.bf16.mxu1 %v6427_v50 }
 0x69b   :  { %5674 = vmatmul.mubr.bf16.gmra.mxu1 %v6426_v25 }
 0x6e3   :  { %v6460_v33 = vpop.f32.mrf.mxu1 }
 0x6e5   :  { %v6461_v59 = vpop.f32.mrf.mxu1 }
 0x6e6   :  { %v6462_v51 = vadd.f32 %v6461_v59, %v6460_v33 }
 0x6e7   :  { %v6463_v15 = vpop.f32.mrf.mxu1 }
 0x6e8   :  { %v5523_v52 = vadd.f32 %v6462_v51, %v8483_v16 }
 0x6e9   :  { %v6464_v43 = vpop.f32.mrf.mxu1 }
 0x6ea   :  { %v6465_v24 = vadd.f32 %v6464_v43, %v6463_v15 }
 0x6eb   :  { %v6466_v39 = vpop.f32.mrf.mxu1 }
 0x6ec   :  { %v5526_v44 = vadd.f32 %v6465_v24, %v8483_v16 }
 0x6ed   :  { %v6467_v61 = vpop.f32.mrf.mxu1 }
 0x6ee   :  { %v6468_v32 = vadd.f32 %v6467_v61, %v6466_v39 }
 0x6ef   :  { %v6469_v19 = vpop.f32.mrf.mxu1 }
 0x6f0   :  { %v5531_v9 = vadd.f32 %v6468_v32, %v8483_v16 }
 0x6f1   :  { %v6470_v35 = vpop.f32.mrf.mxu1 }
 0x6f2   :  { %v6471_v42 = vadd.f32 %v6470_v35, %v6469_v19 }
 0x6f3   :  { %v6472_v62 = vpop.f32.mrf.mxu1 }
 0x6f4   :  { %v5534_v46 = vadd.f32 %v6471_v42, %v8483_v16 }
 0x6f5   :  { %v6473_v41 = vpop.f32.mrf.mxu1 }
 0x6f6   :  { %v6474_v5 = vadd.f32 %v6473_v41, %v6472_v62 }
 0x6f7   :  { %v6475_v18 = vpop.f32.mrf.mxu1 }
 0x6f8   :  { %v5539_v23 = vadd.f32 %v6474_v5, %v8483_v16 }
 0x6f9   :  { %v6476_v10 = vpop.f32.mrf.mxu1 }
 0x6fa   :  { %v6477_v38 = vadd.f32 %v6476_v10, %v6475_v18 }
 0x6fb   :  { %v6478_v29 = vpop.f32.mrf.mxu1 }
 0x6fc   :  { %v5542_v14 = vadd.f32 %v6477_v38, %v8483_v16 }
 0x6fd   :  { %v6479_v49 = vpop.f32.mrf.mxu1 }
 0x6fe   :  { %v6480_v55 = vadd.f32 %v6479_v49, %v6478_v29 }
 0x6ff   :  { %v6481_v17 = vpop.f32.mrf.mxu1 }
 0x700   :  { %v5547_v43 = vadd.f32 %v6480_v55, %v8483_v16 }
 0x701   :  { %v6482_v57 = vpop.f32.mrf.mxu1 }
 0x702   :  { %v6483_v39 = vadd.f32 %v6482_v57, %v6481_v17 }
 0x703   :  { %v8472_v31 = vpop.f32.mrf.mxu1 }
 0x704   :  { %v5550_v18 = vadd.f32 %v6483_v39, %v8483_v16 }
 0x705   :  { %v8474_v53 = vpop.f32.mrf.mxu1 }
 0x706   :  { %v6486_v10 = vadd.f32 %v8474_v53, %v8472_v31 }
 0x707   :  { %v8476_v8 = vpop.f32.mrf.mxu1 }
 0x709   :  { %v8478_v48 = vpop.f32.mrf.mxu1 }
 0x70b   :  { %v8485_v63 = vpop.f32.mrf.mxu1 }
 0x70d   :  { %v8488_v54 = vpop.f32.mrf.mxu1 }
 0x70f   :  { %v8494_v58 = vpop.f32.mrf.mxu1 }
 0x711   :  { %v6494_v1 = vpop.f32.mrf.mxu1 }
 0x713   :  { %v6496_v28 = vpop.f32.mrf.mxu1 }
 0x715   :  { %v6497_v45 = vpop.f32.mrf.mxu1 }
 0x717   :  { %v6499_v15 = vpop.f32.mrf.mxu1 }
 0x719   :  { %v6500_v41 = vpop.f32.mrf.mxu1 }
 0x71b   :  { %v6502_v51 = vpop.f32.mrf.mxu1 }
 0x723   :  { %v6524_v11 = vpop.f32.mrf.mxu0 }
 0x725   :  { %v6525_v2 = vpop.f32.mrf.mxu0 }
 0x726   :  { %v6526_v4 = vadd.f32 %v6525_v2, %v6524_v11  ;;  %v5555_v11 = vadd.f32 %v6486_v10, %v8483_v16  ;;  %v6489_v2 = vadd.f32 %v8478_v48, %v8476_v8 }
 0x727   :  { %v6527_v20 = vpop.f32.mrf.mxu0 }
 0x728   :  { %v5620_v40 = vadd.f32 %v6526_v4, %v5523_v52  ;;  %v6503_v4 = vpop.f32.mrf.mxu1 }
 0x729   :  { %v6528_v27 = vpop.f32.mrf.mxu0 }
 0x72a   :  { %5682 = vst [vmem:[%s8570_s8] sm:$0xff] %v5620_v40  ;;  %v6529_v56 = vadd.f32 %v6528_v27, %v6527_v20  ;;  %v5558_v20 = vadd.f32 %v6489_v2, %v8483_v16  ;;  %v6492_v40 = vadd.f32 %v8488_v54, %v8485_v63  ;;  %v6505_v32 = vpop.f32.mrf.mxu1 }
 0x72b   :  { %v6530_v13 = vpop.f32.mrf.mxu0 }
 0x72c   :  { %v5623_v3 = vadd.f32 %v6529_v56, %v5526_v44  ;;  %v5563_v56 = vadd.f32 %v6492_v40, %v8483_v16  ;;  %v6506_v54 = vpop.f32.mrf.mxu1 }
 0x72d   :  { %v6531_v0 = vpop.f32.mrf.mxu0 }
 0x72e   :  { %5683 = vst [vmem:[%s8570_s8 + $0x8] sm:$0xff] %v5623_v3  ;;  %v6532_v21 = vadd.f32 %v6531_v0, %v6530_v13  ;;  %v6495_v13 = vadd.f32 %v6494_v1, %v8494_v58 }
 0x72f   :  { %v6533_v47 = vpop.f32.mrf.mxu0 }
 0x730   :  { %v5628_v34 = vadd.f32 %v6532_v21, %v5531_v9  ;;  %v5566_v42 = vadd.f32 %v6495_v13, %v8483_v16  ;;  %v6498_v21 = vadd.f32 %v6497_v45, %v6496_v28  ;;  %v6504_v28 = vadd.f32 %v6503_v4, %v6502_v51 }
 0x731   :  { %v6534_v22 = vpop.f32.mrf.mxu0 }
 0x732   :  { %5684 = vst [vmem:[%s8570_s8 + $0x10] sm:$0xff] %v5628_v34  ;;  %v6535_v30 = vadd.f32 %v6534_v22, %v6533_v47  ;;  %v5571_v1 = vadd.f32 %v6498_v21, %v8483_v16 }
 0x733   :  { %v6536_v7 = vpop.f32.mrf.mxu0 }
 0x734   :  { %v5631_v36 = vadd.f32 %v6535_v30, %v5534_v46  ;;  %v6501_v46 = vadd.f32 %v6500_v41, %v6499_v15 }
 0x735   :  { %v6537_v12 = vpop.f32.mrf.mxu0 }
 0x736   :  { %5685 = vst [vmem:[%s8570_s8 + $0x18] sm:$0xff] %v5631_v36  ;;  %v6538_v6 = vadd.f32 %v6537_v12, %v6536_v7  ;;  %v5574_v12 = vadd.f32 %v6501_v46, %v8483_v16 }
 0x737   :  { %v6539_v60 = vpop.f32.mrf.mxu0 }
 0x738   :  { %v5636_v26 = vadd.f32 %v6538_v6, %v5539_v23 }
 0x739   :  { %v6540_v37 = vpop.f32.mrf.mxu0 }
 0x73a   :  { %5686 = vst [vmem:[%s8570_s8 + $0x20] sm:$0xff] %v5636_v26  ;;  %v6541_v50 = vadd.f32 %v6540_v37, %v6539_v60  ;;  %v5579_v26 = vadd.f32 %v6504_v28, %v8483_v16  ;;  %v6507_v37 = vadd.f32 %v6506_v54, %v6505_v32 }
 0x73b   :  { %v6542_v25 = vpop.f32.mrf.mxu0 }
 0x73c   :  { %v5639_v33 = vadd.f32 %v6541_v50, %v5542_v14 }
 0x73d   :  { %v6543_v59 = vpop.f32.mrf.mxu0 }
 0x73e   :  { %5687 = vst [vmem:[%s8570_s8 + $0x28] sm:$0xff] %v5639_v33  ;;  %v6544_v61 = vadd.f32 %v6543_v59, %v6542_v25  ;;  %v5582_v25 = vadd.f32 %v6507_v37, %v8483_v16 }
 0x73f   :  { %v6545_v19 = vpop.f32.mrf.mxu0 }
 0x740   :  { %v5644_v35 = vadd.f32 %v6544_v61, %v5547_v43 }
 0x741   :  { %v6546_v62 = vpop.f32.mrf.mxu0 }
 0x742   :  { %5688 = vst [vmem:[%s8570_s8 + $0x30] sm:$0xff] %v5644_v35  ;;  %v6547_v29 = vadd.f32 %v6546_v62, %v6545_v19 }
 0x743   :  { %v6548_v49 = vpop.f32.mrf.mxu0 }
 0x744   :  { %v5647_v17 = vadd.f32 %v6547_v29, %v5550_v18 }
 0x745   :  { %v6549_v57 = vpop.f32.mrf.mxu0 }
 0x746   :  { %5689 = vst [vmem:[%s8570_s8 + $0x38] sm:$0xff] %v5647_v17  ;;  %v6550_v52 = vadd.f32 %v6549_v57, %v6548_v49 }
 0x747   :  { %v6551_v31 = vpop.f32.mrf.mxu0 }
 0x748   :  { %v5652_v53 = vadd.f32 %v6550_v52, %v5555_v11 }
 0x749   :  { %v6552_v24 = vpop.f32.mrf.mxu0 }
 0x74a   :  { %5690 = vst [vmem:[%s8570_s8 + $0x40] sm:$0xff] %v5652_v53  ;;  %v6553_v27 = vadd.f32 %v6552_v24, %v6551_v31 }
 0x74b   :  { %v6554_v8 = vpop.f32.mrf.mxu0 }
 0x74c   :  { %v5655_v48 = vadd.f32 %v6553_v27, %v5558_v20 }
 0x74d   :  { %v6555_v44 = vpop.f32.mrf.mxu0 }
 0x74e   :  { %5691 = vst [vmem:[%s8570_s8 + $0x48] sm:$0xff] %v5655_v48  ;;  %v6556_v3 = vadd.f32 %v6555_v44, %v6554_v8 }
 0x74f   :  { %v6557_v0 = vpop.f32.mrf.mxu0 }
 0x750   :  { %v5660_v63 = vadd.f32 %v6556_v3, %v5563_v56 }
 0x751   :  { %v6558_v9 = vpop.f32.mrf.mxu0 }
 0x752   :  { %5692 = vst [vmem:[%s8570_s8 + $0x50] sm:$0xff] %v5660_v63  ;;  %v6559_v47 = vadd.f32 %v6558_v9, %v6557_v0 }
 0x753   :  { %v6560_v34 = vpop.f32.mrf.mxu1 }
 0x754   :  { %v5663_v22 = vadd.f32 %v6559_v47, %v5566_v42 }
 0x755   :  { %v6561_v58 = vpop.f32.mrf.mxu1 }
 0x756   :  { %5693 = vst [vmem:[%s8570_s8 + $0x58] sm:$0xff] %v5663_v22  ;;  %v6562_v5 = vadd.f32 %v6561_v58, %v6560_v34 }
 0x757   :  { %v6563_v30 = vpop.f32.mrf.mxu1 }
 0x758   :  { %v5668_v7 = vadd.f32 %v6562_v5, %v5571_v1 }
 0x759   :  { %v6564_v36 = vpop.f32.mrf.mxu1 }
 0x75a   :  { %5694 = vst [vmem:[%s8570_s8 + $0x60] sm:$0xff] %v5668_v7  ;;  %v6565_v23 = vadd.f32 %v6564_v36, %v6563_v30 }
 0x75b   :  { %v6566_v38 = vpop.f32.mrf.mxu1 }
 0x75c   :  { %v5671_v6 = vadd.f32 %v6565_v23, %v5574_v12 }
 0x75d   :  { %v6567_v60 = vpop.f32.mrf.mxu1 }
 0x75e   :  { %5695 = vst [vmem:[%s8570_s8 + $0x68] sm:$0xff] %v5671_v6  ;;  %v6568_v45 = vadd.f32 %v6567_v60, %v6566_v38 }
 0x75f   :  { %v6569_v14 = vpop.f32.mrf.mxu1 }
 0x760   :  { %v5676_v55 = vadd.f32 %v6568_v45, %v5579_v26 }
 0x761   :  { %v6570_v50 = vpop.f32.mrf.mxu1 }
 0x762   :  { %5696 = vst [vmem:[%s8570_s8 + $0x70] sm:$0xff] %v5676_v55  ;;  %v6571_v33 = vadd.f32 %v6570_v50, %v6569_v14 }
 0x764   :  { %v5679_v59 = vadd.f32 %v6571_v33, %v5582_v25 }
 0x766   :  { %5697 = vst [vmem:[%s8570_s8 + $0x78] sm:$0xff] %v5679_v59 }
 0x767   :  { %5702 = vsyncpa [#allocation4], 1 }
 0x768   :  { %5703 = vsyncpa [#allocation6], 1 }
 0x769   :  { %5704 = vsyncpa [#allocation9], 1 }
 0x76a   :  { %5705 = vsyncpa [#allocation12], 1 }

</bundles_post_ra>
